<compile_context>
chip_gen: v7x
topology: tpu7x:2x2x1
jax: 0.10.0
libtpu: 0.0.40
codegen_flags: <defaults>
</compile_context>

<pallas_src>
import math

import jax
import jax.numpy as jnp
from jax.experimental import pallas as pl
from jax.experimental.pallas import tpu as pltpu

NUM_SUPPORTS = 2          # forward + backward random-walk transition matrices
MAX_DIFFUSION_STEP = 2    # K
NUM_MATRICES = NUM_SUPPORTS * MAX_DIFFUSION_STEP + 1   # identity + K per support
LANE = 128


def _round_up(v, m):
    return (v + m - 1) // m * m


# ----------------------------- in-kernel helpers ------------------------------
def _d2g(t_d, bt, c):
    """Diffusion layout (N, bt*c) -> gate layout (bt*N, c); rows ordered (b, n)."""
    if bt == 1:
        return t_d
    return jnp.concatenate([t_d[:, b * c:(b + 1) * c] for b in range(bt)], axis=0)


def _g2d(t_g, bt, n):
    """Gate layout (bt*n, c) -> diffusion layout (n, bt*c)."""
    if bt == 1:
        return t_g
    return jnp.concatenate([t_g[b * n:(b + 1) * n, :] for b in range(bt)], axis=1)


def _gconv(sup_ref, z_d, z_g, w_ref, acc):
    """acc += sum_m gate_layout(T_m(z)) @ w_ref[m]  (Chebyshev diffusion series).

    T_0 = z, T_1 = S z, T_k = 2 S T_{k-1} - T_{k-2} per support S.
    Only t0/t1 stay live (f32); MXU operands bf16, accumulation f32.
    """
    c = z_g.shape[-1]
    bt = z_d.shape[-1] // c

    def contract(t_gate, m, a):
        return a + jnp.dot(t_gate.astype(jnp.bfloat16), w_ref[m],
                           preferred_element_type=jnp.float32)

    acc = contract(z_g, 0, acc)                              # identity term
    m = 1
    for s in range(NUM_SUPPORTS):
        sup = sup_ref[s]                                     # (N, N) bf16
        t0 = z_d
        t1 = jnp.dot(sup, z_d.astype(jnp.bfloat16),
                     preferred_element_type=jnp.float32)
        acc = contract(_d2g(t1, bt, c), m, acc)
        m += 1
        for _ in range(2, MAX_DIFFUSION_STEP + 1):
            t2 = 2.0 * jnp.dot(sup, t1.astype(jnp.bfloat16),
                               preferred_element_type=jnp.float32) - t0
            acc = contract(_d2g(t2, bt, c), m, acc)
            m += 1
            t0, t1 = t1, t2
    return acc


# ----------------------------- Pallas kernel ----------------------------------
def make_dcgru_kernel(num_layers, n_nodes, bt, in_dim, hid_dim, hid_pad):
    """refs = (x, h_all, supports, [wx, wh, whc, b]*L, out)."""
    H, Hp = hid_dim, hid_pad
    rows = bt * n_nodes

    def kernel(*refs):
        x_ref, h_ref, sup_ref = refs[0], refs[1], refs[2]
        w_refs = refs[3:3 + 4 * num_layers]
        out_ref = refs[3 + 4 * num_layers]

        x_d = x_ref[...].astype(jnp.float32)                 # (N, bt*Ci)  diffusion layout
        x_g = _d2g(x_d, bt, in_dim)                          # (rows, Ci)  gate layout

        for l in range(num_layers):                          # static unroll: h stays in VMEM
            wx_ref, wh_ref, whc_ref, b_ref = w_refs[4 * l:4 * l + 4]
            h_d = h_ref[l].astype(jnp.float32)               # (N, bt*H)
            h_g = _d2g(h_d, bt, H)                           # (rows, H)

            # fused gate pre-activations: [r | u | c(x-part)], each padded to Hp lanes
            gacc = jnp.zeros((rows, 3 * Hp), jnp.float32)
            gacc = _gconv(sup_ref, x_d, x_g, wx_ref, gacc)
            gacc = _gconv(sup_ref, h_d, h_g, wh_ref, gacc)
            gates = gacc + b_ref[...]                        # (1, 3Hp) bias broadcast

            r = jax.nn.sigmoid(gates[:, 0:H])                # lane-aligned slices
            u = jax.nn.sigmoid(gates[:, Hp:Hp + H])

            rh_g = r * h_g                                   # (rows, H) f32
            rh_d = _g2d(rh_g, bt, n_nodes)                   # back to diffusion layout
            cacc = jnp.zeros((rows, Hp), jnp.float32)
            cacc = _gconv(sup_ref, rh_d, rh_g, whc_ref, cacc)
            c = jnp.tanh(gates[:, 2 * Hp:2 * Hp + H] + cacc[:, 0:H])

            h_new_g = u * h_g + (1.0 - u) * c                # GRU blend, f32
            h_new_d = _g2d(h_new_g, bt, n_nodes)             # (N, bt*H)
            out_ref[l] = h_new_d.astype(out_ref.dtype)

            x_d, x_g = h_new_d, h_new_g                      # feed next layer

    return kernel


# ----------------------------- one-time preparation ---------------------------
def stack_layer_params(p, hid_dim, in_rows, hid_pad):
    """Pack per-matrix/per-gate weights into lane-padded fused matmul operands."""
    H, Hp = hid_dim, hid_pad
    ci = p["wx_r"].shape[1]

    def pad_cols(a):                      # (*, H) -> (*, Hp)
        return jnp.pad(a, ((0, 0), (0, Hp - H)))

    wx, wh, whc = [], [], []
    for m in range(NUM_MATRICES):
        wx_m = jnp.concatenate([pad_cols(p["wx_r"][m]), pad_cols(p["wx_u"][m]),
                                pad_cols(p["wx_c"][m])], axis=1)        # (ci, 3Hp)
        wx.append(jnp.pad(wx_m, ((0, in_rows - ci), (0, 0))))           # zero rows for padded channels
        wh.append(jnp.concatenate([pad_cols(p["wh_r"][m]), pad_cols(p["wh_u"][m]),
                                   jnp.zeros((H, Hp), jnp.float32)], axis=1))
        whc.append(pad_cols(p["wh_c"][m]))
    wx = jnp.stack(wx, axis=0).astype(jnp.bfloat16)                     # (M, in_rows, 3Hp)
    wh = jnp.stack(wh, axis=0).astype(jnp.bfloat16)                     # (M, H, 3Hp)
    whc = jnp.stack(whc, axis=0).astype(jnp.bfloat16)                   # (M, H, Hp)
    b = jnp.concatenate([pad_cols(p["b_r"]), pad_cols(p["b_u"]),
                         pad_cols(p["b_c"])], axis=1).astype(jnp.float32)  # (1, 3Hp)
    return wx, wh, whc, b


def _pick_batch_tile(batch, hid_dim):
    """Largest proper divisor of `batch` whose h-tile lane width (bt*H) is a
    multiple of 128; falls back to the full batch (grid of one)."""
    for bt in range(batch - 1, 0, -1):
        if batch % bt == 0 and (bt * hid_dim) % LANE == 0:
            return bt
    return batch


def prepare_dcgru(supports, layer_params, in_dim, hid_dim, batch, batch_tile=None):
    """Hoisted out of the timestep loop: bf16 supports, packed lane-aligned
    weights, batch-tile / channel-padding geometry."""
    H = hid_dim
    Hp = _round_up(H, LANE)
    bt = batch_tile if batch_tile is not None else _pick_batch_tile(batch, H)
    assert batch % bt == 0
    grid_n = batch // bt
    if grid_n == 1:
        ci_pad = in_dim                                   # full-batch block: no lane constraint
    else:
        assert (bt * H) % LANE == 0
        step = LANE // math.gcd(bt, LANE)
        ci_pad = _round_up(in_dim, step)                  # x tile lane width -> 128-aligned

    weights = []
    for l, p in enumerate(layer_params):
        in_rows = ci_pad if l == 0 else H
        weights.extend(stack_layer_params(p, H, in_rows, Hp))

    return dict(sup=supports.astype(jnp.bfloat16), weights=tuple(weights),
                num_layers=len(layer_params), in_dim=in_dim, ci_pad=ci_pad,
                hid_dim=H, hid_pad=Hp, batch=batch, batch_tile=bt)


# ----------------------------- forward wrappers --------------------------------
def dcgru_forward_flat(x_d, h_d, prep):
    """x_d: (N, B*ci_pad), h_d: (L, N, B*H), node-major 'diffusion' layout.
    Returns the new hidden states with the same layout/shape as h_d (aliased to
    h_d's buffer for in-place recurrent-state update when jitted)."""
    N = x_d.shape[0]
    B, bt = prep["batch"], prep["batch_tile"]
    H, Hp = prep["hid_dim"], prep["hid_pad"]
    cip, L = prep["ci_pad"], prep["num_layers"]
    grid_n = B // bt

    def full_spec(a):
        return pl.BlockSpec(a.shape, lambda i, _nd=a.ndim: (0,) * _nd)

    in_specs = [
        pl.BlockSpec((N, bt * cip), lambda i: (0, i)),        # x batch tile
        pl.BlockSpec((L, N, bt * H), lambda i: (0, 0, i)),    # h batch tile
        full_spec(prep["sup"]),                               # supports, resident
    ] + [full_spec(w) for w in prep["weights"]]               # packed weights, resident
    out_spec = pl.BlockSpec((L, N, bt * H), lambda i: (0, 0, i))

    kernel = make_dcgru_kernel(L, N, bt, cip, H, Hp)
    return pl.pallas_call(
        kernel,
        grid=(grid_n,),
        in_specs=in_specs,
        out_specs=out_spec,
        out_shape=jax.ShapeDtypeStruct((L, N, B * H), jnp.float32),
        input_output_aliases={1: 0},                          # h updated in place
        compiler_params=pltpu.CompilerParams(
            dimension_semantics=("parallel",),                # batch tiles -> megacore
            vmem_limit_bytes=48 * 1024 * 1024),
    )(x_d, h_d, prep["sup"], *prep["weights"])


def dcgru_forward(inputs, hidden_state, prep):
    """PyTorch-layout adapter for DCGRU.forward.
    inputs:       (B, input_dim, N)
    hidden_state: (num_layers, B, hid_dim, N)
    returns list of per-layer new hidden states, each (B, hid_dim, N).
    (A real DCRNN timestep loop should keep the state flat and call
    dcgru_forward_flat directly to avoid per-step transposes.)"""
    B, ci, N = inputs.shape
    L, H, cip = prep["num_layers"], prep["hid_dim"], prep["ci_pad"]

    x = jnp.transpose(inputs, (2, 0, 1))                      # (N, B, ci)
    if cip > ci:
        x = jnp.pad(x, ((0, 0), (0, 0), (0, cip - ci)))
    x_d = x.reshape(N, B * cip)
    h_d = jnp.transpose(hidden_state, (0, 3, 1, 2)).reshape(L, N, B * H)

    out = dcgru_forward_flat(x_d, h_d, prep)                  # (L, N, B*H)
    out = jnp.transpose(out.reshape(L, N, B, H), (0, 2, 3, 1))  # (L, B, H, N)
    return [out[i] for i in range(L)]


# ----------------------------- pure-JAX reference ------------------------------
def _diffuse_ref(supports, z):
    mats = [z]
    for s in range(NUM_SUPPORTS):
        Smat = supports[s]
        z0, z1 = z, jnp.einsum("nm,bmc->bnc", Smat, z)
        mats.append(z1)
        for _ in range(2, MAX_DIFFUSION_STEP + 1):
            z2 = 2.0 * jnp.einsum("nm,bmc->bnc", Smat, z1) - z0
            mats.append(z2)
            z0, z1 = z1, z2
    return mats


def _gconv_ref(xm, hm, wx, wh, b):
    acc = jnp.zeros((xm[0].shape[0], xm[0].shape[1], wx.shape[-1]), jnp.float32)
    for m in range(NUM_MATRICES):
        acc = acc + jnp.einsum("bnc,co->bno", xm[m], wx[m])
        acc = acc + jnp.einsum("bnh,ho->bno", hm[m], wh[m])
    return acc + b[None]


def dcgru_cell_ref(x, h, supports, p):
    xm, hm = _diffuse_ref(supports, x), _diffuse_ref(supports, h)
    r = jax.nn.sigmoid(_gconv_ref(xm, hm, p["wx_r"], p["wh_r"], p["b_r"]))
    u = jax.nn.sigmoid(_gconv_ref(xm, hm, p["wx_u"], p["wh_u"], p["b_u"]))
    rhm = _diffuse_ref(supports, r * h)
    c = jnp.tanh(_gconv_ref(xm, rhm, p["wx_c"], p["wh_c"], p["b_c"]))
    return u * h + (1.0 - u) * c


def dcgru_forward_ref(inputs, hidden_state, supports, layer_params):
    x = jnp.transpose(inputs, (0, 2, 1))
    outs = []
    for layer_idx, p in enumerate(layer_params):
        hcur = jnp.transpose(hidden_state[layer_idx], (0, 2, 1))
        x = dcgru_cell_ref(x, hcur, supports, p)
        outs.append(jnp.transpose(x, (0, 2, 1)))
    return outs


# ----------------------------- params ------------------------------------------
def init_params(key, input_dim, hid_dim, num_layers):
    layer_params = []
    for layer in range(num_layers):
        ci = input_dim if layer == 0 else hid_dim
        ks = jax.random.split(jax.random.fold_in(key, layer), 6)
        scale = 0.1
        layer_params.append(dict(
            wx_r=scale * jax.random.normal(ks[0], (NUM_MATRICES, ci, hid_dim), jnp.float32),
            wh_r=scale * jax.random.normal(ks[1], (NUM_MATRICES, hid_dim, hid_dim), jnp.float32),
            b_r=jnp.full((1, hid_dim), 1.0, jnp.float32),     # DCRNN gate-bias init = 1.0
            wx_u=scale * jax.random.normal(ks[2], (NUM_MATRICES, ci, hid_dim), jnp.float32),
            wh_u=scale * jax.random.normal(ks[3], (NUM_MATRICES, hid_dim, hid_dim), jnp.float32),
            b_u=jnp.full((1, hid_dim), 1.0, jnp.float32),
            wx_c=scale * jax.random.normal(ks[4], (NUM_MATRICES, ci, hid_dim), jnp.float32),
            wh_c=scale * jax.random.normal(ks[5], (NUM_MATRICES, hid_dim, hid_dim), jnp.float32),
            b_c=jnp.zeros((1, hid_dim), jnp.float32),
        ))
    return layer_params


# ----------------------------- main ---------------------------------------------
if __name__ == "__main__":
    B, input_dim, N, hid_dim, num_layers = 8, 4, 16, 32, 2

    key = jax.random.PRNGKey(0)
    k_in, k_h, k_adj, k_w = jax.random.split(key, 4)

    inputs = jax.random.normal(k_in, (B, input_dim, N), jnp.float32)          # (B, C, N)
    hidden_state = 0.1 * jax.random.normal(k_h, (num_layers, B, hid_dim, N), jnp.float32)

    # forward / backward random-walk transition matrices as diffusion supports
    adj = jax.random.uniform(k_adj, (N, N), jnp.float32) + 1e-3
    sup_fwd = adj / jnp.sum(adj, axis=1, keepdims=True)
    sup_bwd = adj.T / jnp.sum(adj.T, axis=1, keepdims=True)
    supports = jnp.stack([sup_fwd, sup_bwd], axis=0)                          # (S, N, N)

    layer_params = init_params(k_w, input_dim, hid_dim, num_layers)

    # one-time prep (hoisted out of the per-timestep path)
    prep = prepare_dcgru(supports, layer_params, input_dim, hid_dim, B)
    # demo geometry: batch_tile=4 -> grid=(2,), x tile (16,128), h/out tile (2,16,128)

    out = dcgru_forward(inputs, hidden_state, prep)
    out = [jax.block_until_ready(o) for o in out]

    ref = dcgru_forward_ref(inputs, hidden_state, supports, layer_params)
    for o, r in zip(out, ref):
        assert o.shape == (B, hid_dim, N)
        assert bool(jnp.all(jnp.isfinite(o)))
        # bf16 MXU operands with f32 accumulation -> slightly looser tolerance
        assert bool(jnp.allclose(o, r, atol=3e-2, rtol=3e-2)), "mismatch vs JAX reference"

    print("KERNEL_OK")
</pallas_src>

<mosaic_0001>
module attributes {stable_mosaic.version = 11 : i64} {
  func.func @kernel(%arg0: i32, %arg1: memref<16x128xf32, #tpu.memory_space<vmem>>, %arg2: memref<2x16x128xf32, #tpu.memory_space<vmem>>, %arg3: memref<2x16x16xbf16, #tpu.memory_space<vmem>>, %arg4: memref<5x32x384xbf16, #tpu.memory_space<vmem>>, %arg5: memref<5x32x384xbf16, #tpu.memory_space<vmem>>, %arg6: memref<5x32x128xbf16, #tpu.memory_space<vmem>>, %arg7: memref<1x384xf32, #tpu.memory_space<vmem>>, %arg8: memref<5x32x384xbf16, #tpu.memory_space<vmem>>, %arg9: memref<5x32x384xbf16, #tpu.memory_space<vmem>>, %arg10: memref<5x32x128xbf16, #tpu.memory_space<vmem>>, %arg11: memref<1x384xf32, #tpu.memory_space<vmem>>, %arg12: memref<2x16x128xf32, #tpu.memory_space<vmem>>) attributes {dimension_semantics = [#tpu.dimension_semantics<parallel>], iteration_bounds = array<i64: 2>, scalar_prefetch = 0 : i64, scratch_operands = 0 : i64, tpu.core_type = #tpu.core_type<tc>, window_params = [{transform_indices = @transform_0, window_bounds = array<i64: 16, 128>}, {transform_indices = @transform_1, window_bounds = array<i64: 2, 16, 128>}, {pipeline_mode = #tpu.pipeline_mode<synchronous>, transform_indices = @transform_2, window_bounds = array<i64: 2, 16, 16>}, {pipeline_mode = #tpu.pipeline_mode<synchronous>, transform_indices = @transform_3, window_bounds = array<i64: 5, 32, 384>}, {pipeline_mode = #tpu.pipeline_mode<synchronous>, transform_indices = @transform_4, window_bounds = array<i64: 5, 32, 384>}, {pipeline_mode = #tpu.pipeline_mode<synchronous>, transform_indices = @transform_5, window_bounds = array<i64: 5, 32, 128>}, {pipeline_mode = #tpu.pipeline_mode<synchronous>, transform_indices = @transform_6, window_bounds = array<i64: 1, 384>}, {pipeline_mode = #tpu.pipeline_mode<synchronous>, transform_indices = @transform_7, window_bounds = array<i64: 5, 32, 384>}, {pipeline_mode = #tpu.pipeline_mode<synchronous>, transform_indices = @transform_8, window_bounds = array<i64: 5, 32, 384>}, {pipeline_mode = #tpu.pipeline_mode<synchronous>, transform_indices = @transform_9, window_bounds = array<i64: 5, 32, 128>}, {pipeline_mode = #tpu.pipeline_mode<synchronous>, transform_indices = @transform_10, window_bounds = array<i64: 1, 384>}, {transform_indices = @transform_11, window_bounds = array<i64: 2, 16, 128>}]} {
    %c0 = arith.constant 0 : index
    %c0_0 = arith.constant 0 : index
    %0 = vector.load %arg1[%c0, %c0_0] : memref<16x128xf32, #tpu.memory_space<vmem>>, vector<16x128xf32>
    %1 = vector.extract_strided_slice %0 {offsets = [0, 0], sizes = [16, 32], strides = [1, 1]} : vector<16x128xf32> to vector<16x32xf32>
    %2 = vector.extract_strided_slice %0 {offsets = [0, 32], sizes = [16, 32], strides = [1, 1]} : vector<16x128xf32> to vector<16x32xf32>
    %3 = vector.extract_strided_slice %0 {offsets = [0, 64], sizes = [16, 32], strides = [1, 1]} : vector<16x128xf32> to vector<16x32xf32>
    %4 = vector.extract_strided_slice %0 {offsets = [0, 96], sizes = [16, 32], strides = [1, 1]} : vector<16x128xf32> to vector<16x32xf32>
    %5 = tpu.concatenate %1, %2, %3, %4 in 0 : vector<16x32xf32>, vector<16x32xf32>, vector<16x32xf32>, vector<16x32xf32> -> vector<64x32xf32>
    %c0_1 = arith.constant 0 : index
    %c0_2 = arith.constant 0 : index
    %c0_3 = arith.constant 0 : index
    %6 = vector.load %arg2[%c0_1, %c0_2, %c0_3] : memref<2x16x128xf32, #tpu.memory_space<vmem>>, vector<1x16x128xf32>
    %7 = vector.shape_cast %6 : vector<1x16x128xf32> to vector<16x128xf32>
    %8 = vector.extract_strided_slice %7 {offsets = [0, 0], sizes = [16, 32], strides = [1, 1]} : vector<16x128xf32> to vector<16x32xf32>
    %9 = vector.extract_strided_slice %7 {offsets = [0, 32], sizes = [16, 32], strides = [1, 1]} : vector<16x128xf32> to vector<16x32xf32>
    %10 = vector.extract_strided_slice %7 {offsets = [0, 64], sizes = [16, 32], strides = [1, 1]} : vector<16x128xf32> to vector<16x32xf32>
    %11 = vector.extract_strided_slice %7 {offsets = [0, 96], sizes = [16, 32], strides = [1, 1]} : vector<16x128xf32> to vector<16x32xf32>
    %12 = tpu.concatenate %8, %9, %10, %11 in 0 : vector<16x32xf32>, vector<16x32xf32>, vector<16x32xf32>, vector<16x32xf32> -> vector<64x32xf32>
    %cst = arith.constant 0.000000e+00 : f32
    %13 = vector.broadcast %cst : f32 to vector<64x384xf32>
    %14 = arith.truncf %5 : vector<64x32xf32> to vector<64x32xbf16>
    %c0_4 = arith.constant 0 : index
    %c0_5 = arith.constant 0 : index
    %c0_6 = arith.constant 0 : index
    %15 = vector.load %arg4[%c0_4, %c0_5, %c0_6] : memref<5x32x384xbf16, #tpu.memory_space<vmem>>, vector<1x32x384xbf16>
    %16 = vector.shape_cast %15 : vector<1x32x384xbf16> to vector<32x384xbf16>
    %cst_7 = arith.constant dense<0.000000e+00> : vector<64x384xf32>
    %17 = tpu.matmul %14, %16, %cst_7 {dimension_numbers = #tpu.dot_dimension_numbers<[1], [0], [0], [1], [0, 0, 1, 1], [], []>} : vector<64x32xbf16>, vector<32x384xbf16>, vector<64x384xf32> -> vector<64x384xf32>
    %18 = arith.addf %13, %17 : vector<64x384xf32>
    %c0_8 = arith.constant 0 : index
    %c0_9 = arith.constant 0 : index
    %c0_10 = arith.constant 0 : index
    %19 = vector.load %arg3[%c0_8, %c0_9, %c0_10] : memref<2x16x16xbf16, #tpu.memory_space<vmem>>, vector<1x16x16xbf16>
    %20 = vector.shape_cast %19 : vector<1x16x16xbf16> to vector<16x16xbf16>
    %21 = arith.truncf %0 : vector<16x128xf32> to vector<16x128xbf16>
    %cst_11 = arith.constant dense<0.000000e+00> : vector<16x128xf32>
    %22 = tpu.matmul %20, %21, %cst_11 {dimension_numbers = #tpu.dot_dimension_numbers<[1], [0], [0], [1], [0, 0, 1, 1], [], []>} : vector<16x16xbf16>, vector<16x128xbf16>, vector<16x128xf32> -> vector<16x128xf32>
    %23 = vector.extract_strided_slice %22 {offsets = [0, 0], sizes = [16, 32], strides = [1, 1]} : vector<16x128xf32> to vector<16x32xf32>
    %24 = vector.extract_strided_slice %22 {offsets = [0, 32], sizes = [16, 32], strides = [1, 1]} : vector<16x128xf32> to vector<16x32xf32>
    %25 = vector.extract_strided_slice %22 {offsets = [0, 64], sizes = [16, 32], strides = [1, 1]} : vector<16x128xf32> to vector<16x32xf32>
    %26 = vector.extract_strided_slice %22 {offsets = [0, 96], sizes = [16, 32], strides = [1, 1]} : vector<16x128xf32> to vector<16x32xf32>
    %27 = tpu.concatenate %23, %24, %25, %26 in 0 : vector<16x32xf32>, vector<16x32xf32>, vector<16x32xf32>, vector<16x32xf32> -> vector<64x32xf32>
    %28 = arith.truncf %27 : vector<64x32xf32> to vector<64x32xbf16>
    %c1 = arith.constant 1 : index
    %c0_12 = arith.constant 0 : index
    %c0_13 = arith.constant 0 : index
    %29 = vector.load %arg4[%c1, %c0_12, %c0_13] : memref<5x32x384xbf16, #tpu.memory_space<vmem>>, vector<1x32x384xbf16>
    %30 = vector.shape_cast %29 : vector<1x32x384xbf16> to vector<32x384xbf16>
    %cst_14 = arith.constant dense<0.000000e+00> : vector<64x384xf32>
    %31 = tpu.matmul %28, %30, %cst_14 {dimension_numbers = #tpu.dot_dimension_numbers<[1], [0], [0], [1], [0, 0, 1, 1], [], []>} : vector<64x32xbf16>, vector<32x384xbf16>, vector<64x384xf32> -> vector<64x384xf32>
    %32 = arith.addf %18, %31 : vector<64x384xf32>
    %33 = arith.truncf %22 : vector<16x128xf32> to vector<16x128xbf16>
    %cst_15 = arith.constant dense<0.000000e+00> : vector<16x128xf32>
    %34 = tpu.matmul %20, %33, %cst_15 {dimension_numbers = #tpu.dot_dimension_numbers<[1], [0], [0], [1], [0, 0, 1, 1], [], []>} : vector<16x16xbf16>, vector<16x128xbf16>, vector<16x128xf32> -> vector<16x128xf32>
    %cst_16 = arith.constant 2.000000e+00 : f32
    %35 = vector.broadcast %cst_16 : f32 to vector<16x128xf32>
    %36 = arith.mulf %35, %34 : vector<16x128xf32>
    %37 = arith.subf %36, %0 : vector<16x128xf32>
    %38 = vector.extract_strided_slice %37 {offsets = [0, 0], sizes = [16, 32], strides = [1, 1]} : vector<16x128xf32> to vector<16x32xf32>
    %39 = vector.extract_strided_slice %37 {offsets = [0, 32], sizes = [16, 32], strides = [1, 1]} : vector<16x128xf32> to vector<16x32xf32>
    %40 = vector.extract_strided_slice %37 {offsets = [0, 64], sizes = [16, 32], strides = [1, 1]} : vector<16x128xf32> to vector<16x32xf32>
    %41 = vector.extract_strided_slice %37 {offsets = [0, 96], sizes = [16, 32], strides = [1, 1]} : vector<16x128xf32> to vector<16x32xf32>
    %42 = tpu.concatenate %38, %39, %40, %41 in 0 : vector<16x32xf32>, vector<16x32xf32>, vector<16x32xf32>, vector<16x32xf32> -> vector<64x32xf32>
    %43 = arith.truncf %42 : vector<64x32xf32> to vector<64x32xbf16>
    %c2 = arith.constant 2 : index
    %c0_17 = arith.constant 0 : index
    %c0_18 = arith.constant 0 : index
    %44 = vector.load %arg4[%c2, %c0_17, %c0_18] : memref<5x32x384xbf16, #tpu.memory_space<vmem>>, vector<1x32x384xbf16>
    %45 = vector.shape_cast %44 : vector<1x32x384xbf16> to vector<32x384xbf16>
    %cst_19 = arith.constant dense<0.000000e+00> : vector<64x384xf32>
    %46 = tpu.matmul %43, %45, %cst_19 {dimension_numbers = #tpu.dot_dimension_numbers<[1], [0], [0], [1], [0, 0, 1, 1], [], []>} : vector<64x32xbf16>, vector<32x384xbf16>, vector<64x384xf32> -> vector<64x384xf32>
    %47 = arith.addf %32, %46 : vector<64x384xf32>
    %c1_20 = arith.constant 1 : index
    %c0_21 = arith.constant 0 : index
    %c0_22 = arith.constant 0 : index
    %48 = vector.load %arg3[%c1_20, %c0_21, %c0_22] : memref<2x16x16xbf16, #tpu.memory_space<vmem>>, vector<1x16x16xbf16>
    %49 = vector.shape_cast %48 : vector<1x16x16xbf16> to vector<16x16xbf16>
    %50 = arith.truncf %0 : vector<16x128xf32> to vector<16x128xbf16>
    %cst_23 = arith.constant dense<0.000000e+00> : vector<16x128xf32>
    %51 = tpu.matmul %49, %50, %cst_23 {dimension_numbers = #tpu.dot_dimension_numbers<[1], [0], [0], [1], [0, 0, 1, 1], [], []>} : vector<16x16xbf16>, vector<16x128xbf16>, vector<16x128xf32> -> vector<16x128xf32>
    %52 = vector.extract_strided_slice %51 {offsets = [0, 0], sizes = [16, 32], strides = [1, 1]} : vector<16x128xf32> to vector<16x32xf32>
    %53 = vector.extract_strided_slice %51 {offsets = [0, 32], sizes = [16, 32], strides = [1, 1]} : vector<16x128xf32> to vector<16x32xf32>
    %54 = vector.extract_strided_slice %51 {offsets = [0, 64], sizes = [16, 32], strides = [1, 1]} : vector<16x128xf32> to vector<16x32xf32>
    %55 = vector.extract_strided_slice %51 {offsets = [0, 96], sizes = [16, 32], strides = [1, 1]} : vector<16x128xf32> to vector<16x32xf32>
    %56 = tpu.concatenate %52, %53, %54, %55 in 0 : vector<16x32xf32>, vector<16x32xf32>, vector<16x32xf32>, vector<16x32xf32> -> vector<64x32xf32>
    %57 = arith.truncf %56 : vector<64x32xf32> to vector<64x32xbf16>
    %c3 = arith.constant 3 : index
    %c0_24 = arith.constant 0 : index
    %c0_25 = arith.constant 0 : index
    %58 = vector.load %arg4[%c3, %c0_24, %c0_25] : memref<5x32x384xbf16, #tpu.memory_space<vmem>>, vector<1x32x384xbf16>
    %59 = vector.shape_cast %58 : vector<1x32x384xbf16> to vector<32x384xbf16>
    %cst_26 = arith.constant dense<0.000000e+00> : vector<64x384xf32>
    %60 = tpu.matmul %57, %59, %cst_26 {dimension_numbers = #tpu.dot_dimension_numbers<[1], [0], [0], [1], [0, 0, 1, 1], [], []>} : vector<64x32xbf16>, vector<32x384xbf16>, vector<64x384xf32> -> vector<64x384xf32>
    %61 = arith.addf %47, %60 : vector<64x384xf32>
    %62 = arith.truncf %51 : vector<16x128xf32> to vector<16x128xbf16>
    %cst_27 = arith.constant dense<0.000000e+00> : vector<16x128xf32>
    %63 = tpu.matmul %49, %62, %cst_27 {dimension_numbers = #tpu.dot_dimension_numbers<[1], [0], [0], [1], [0, 0, 1, 1], [], []>} : vector<16x16xbf16>, vector<16x128xbf16>, vector<16x128xf32> -> vector<16x128xf32>
    %cst_28 = arith.constant 2.000000e+00 : f32
    %64 = vector.broadcast %cst_28 : f32 to vector<16x128xf32>
    %65 = arith.mulf %64, %63 : vector<16x128xf32>
    %66 = arith.subf %65, %0 : vector<16x128xf32>
    %67 = vector.extract_strided_slice %66 {offsets = [0, 0], sizes = [16, 32], strides = [1, 1]} : vector<16x128xf32> to vector<16x32xf32>
    %68 = vector.extract_strided_slice %66 {offsets = [0, 32], sizes = [16, 32], strides = [1, 1]} : vector<16x128xf32> to vector<16x32xf32>
    %69 = vector.extract_strided_slice %66 {offsets = [0, 64], sizes = [16, 32], strides = [1, 1]} : vector<16x128xf32> to vector<16x32xf32>
    %70 = vector.extract_strided_slice %66 {offsets = [0, 96], sizes = [16, 32], strides = [1, 1]} : vector<16x128xf32> to vector<16x32xf32>
    %71 = tpu.concatenate %67, %68, %69, %70 in 0 : vector<16x32xf32>, vector<16x32xf32>, vector<16x32xf32>, vector<16x32xf32> -> vector<64x32xf32>
    %72 = arith.truncf %71 : vector<64x32xf32> to vector<64x32xbf16>
    %c4 = arith.constant 4 : index
    %c0_29 = arith.constant 0 : index
    %c0_30 = arith.constant 0 : index
    %73 = vector.load %arg4[%c4, %c0_29, %c0_30] : memref<5x32x384xbf16, #tpu.memory_space<vmem>>, vector<1x32x384xbf16>
    %74 = vector.shape_cast %73 : vector<1x32x384xbf16> to vector<32x384xbf16>
    %cst_31 = arith.constant dense<0.000000e+00> : vector<64x384xf32>
    %75 = tpu.matmul %72, %74, %cst_31 {dimension_numbers = #tpu.dot_dimension_numbers<[1], [0], [0], [1], [0, 0, 1, 1], [], []>} : vector<64x32xbf16>, vector<32x384xbf16>, vector<64x384xf32> -> vector<64x384xf32>
    %76 = arith.addf %61, %75 : vector<64x384xf32>
    %77 = arith.truncf %12 : vector<64x32xf32> to vector<64x32xbf16>
    %c0_32 = arith.constant 0 : index
    %c0_33 = arith.constant 0 : index
    %c0_34 = arith.constant 0 : index
    %78 = vector.load %arg5[%c0_32, %c0_33, %c0_34] : memref<5x32x384xbf16, #tpu.memory_space<vmem>>, vector<1x32x384xbf16>
    %79 = vector.shape_cast %78 : vector<1x32x384xbf16> to vector<32x384xbf16>
    %cst_35 = arith.constant dense<0.000000e+00> : vector<64x384xf32>
    %80 = tpu.matmul %77, %79, %cst_35 {dimension_numbers = #tpu.dot_dimension_numbers<[1], [0], [0], [1], [0, 0, 1, 1], [], []>} : vector<64x32xbf16>, vector<32x384xbf16>, vector<64x384xf32> -> vector<64x384xf32>
    %81 = arith.addf %76, %80 : vector<64x384xf32>
    %c0_36 = arith.constant 0 : index
    %c0_37 = arith.constant 0 : index
    %c0_38 = arith.constant 0 : index
    %82 = vector.load %arg3[%c0_36, %c0_37, %c0_38] : memref<2x16x16xbf16, #tpu.memory_space<vmem>>, vector<1x16x16xbf16>
    %83 = vector.shape_cast %82 : vector<1x16x16xbf16> to vector<16x16xbf16>
    %84 = arith.truncf %7 : vector<16x128xf32> to vector<16x128xbf16>
    %cst_39 = arith.constant dense<0.000000e+00> : vector<16x128xf32>
    %85 = tpu.matmul %83, %84, %cst_39 {dimension_numbers = #tpu.dot_dimension_numbers<[1], [0], [0], [1], [0, 0, 1, 1], [], []>} : vector<16x16xbf16>, vector<16x128xbf16>, vector<16x128xf32> -> vector<16x128xf32>
    %86 = vector.extract_strided_slice %85 {offsets = [0, 0], sizes = [16, 32], strides = [1, 1]} : vector<16x128xf32> to vector<16x32xf32>
    %87 = vector.extract_strided_slice %85 {offsets = [0, 32], sizes = [16, 32], strides = [1, 1]} : vector<16x128xf32> to vector<16x32xf32>
    %88 = vector.extract_strided_slice %85 {offsets = [0, 64], sizes = [16, 32], strides = [1, 1]} : vector<16x128xf32> to vector<16x32xf32>
    %89 = vector.extract_strided_slice %85 {offsets = [0, 96], sizes = [16, 32], strides = [1, 1]} : vector<16x128xf32> to vector<16x32xf32>
    %90 = tpu.concatenate %86, %87, %88, %89 in 0 : vector<16x32xf32>, vector<16x32xf32>, vector<16x32xf32>, vector<16x32xf32> -> vector<64x32xf32>
    %91 = arith.truncf %90 : vector<64x32xf32> to vector<64x32xbf16>
    %c1_40 = arith.constant 1 : index
    %c0_41 = arith.constant 0 : index
    %c0_42 = arith.constant 0 : index
    %92 = vector.load %arg5[%c1_40, %c0_41, %c0_42] : memref<5x32x384xbf16, #tpu.memory_space<vmem>>, vector<1x32x384xbf16>
    %93 = vector.shape_cast %92 : vector<1x32x384xbf16> to vector<32x384xbf16>
    %cst_43 = arith.constant dense<0.000000e+00> : vector<64x384xf32>
    %94 = tpu.matmul %91, %93, %cst_43 {dimension_numbers = #tpu.dot_dimension_numbers<[1], [0], [0], [1], [0, 0, 1, 1], [], []>} : vector<64x32xbf16>, vector<32x384xbf16>, vector<64x384xf32> -> vector<64x384xf32>
    %95 = arith.addf %81, %94 : vector<64x384xf32>
    %96 = arith.truncf %85 : vector<16x128xf32> to vector<16x128xbf16>
    %cst_44 = arith.constant dense<0.000000e+00> : vector<16x128xf32>
    %97 = tpu.matmul %83, %96, %cst_44 {dimension_numbers = #tpu.dot_dimension_numbers<[1], [0], [0], [1], [0, 0, 1, 1], [], []>} : vector<16x16xbf16>, vector<16x128xbf16>, vector<16x128xf32> -> vector<16x128xf32>
    %cst_45 = arith.constant 2.000000e+00 : f32
    %98 = vector.broadcast %cst_45 : f32 to vector<16x128xf32>
    %99 = arith.mulf %98, %97 : vector<16x128xf32>
    %100 = arith.subf %99, %7 : vector<16x128xf32>
    %101 = vector.extract_strided_slice %100 {offsets = [0, 0], sizes = [16, 32], strides = [1, 1]} : vector<16x128xf32> to vector<16x32xf32>
    %102 = vector.extract_strided_slice %100 {offsets = [0, 32], sizes = [16, 32], strides = [1, 1]} : vector<16x128xf32> to vector<16x32xf32>
    %103 = vector.extract_strided_slice %100 {offsets = [0, 64], sizes = [16, 32], strides = [1, 1]} : vector<16x128xf32> to vector<16x32xf32>
    %104 = vector.extract_strided_slice %100 {offsets = [0, 96], sizes = [16, 32], strides = [1, 1]} : vector<16x128xf32> to vector<16x32xf32>
    %105 = tpu.concatenate %101, %102, %103, %104 in 0 : vector<16x32xf32>, vector<16x32xf32>, vector<16x32xf32>, vector<16x32xf32> -> vector<64x32xf32>
    %106 = arith.truncf %105 : vector<64x32xf32> to vector<64x32xbf16>
    %c2_46 = arith.constant 2 : index
    %c0_47 = arith.constant 0 : index
    %c0_48 = arith.constant 0 : index
    %107 = vector.load %arg5[%c2_46, %c0_47, %c0_48] : memref<5x32x384xbf16, #tpu.memory_space<vmem>>, vector<1x32x384xbf16>
    %108 = vector.shape_cast %107 : vector<1x32x384xbf16> to vector<32x384xbf16>
    %cst_49 = arith.constant dense<0.000000e+00> : vector<64x384xf32>
    %109 = tpu.matmul %106, %108, %cst_49 {dimension_numbers = #tpu.dot_dimension_numbers<[1], [0], [0], [1], [0, 0, 1, 1], [], []>} : vector<64x32xbf16>, vector<32x384xbf16>, vector<64x384xf32> -> vector<64x384xf32>
    %110 = arith.addf %95, %109 : vector<64x384xf32>
    %c1_50 = arith.constant 1 : index
    %c0_51 = arith.constant 0 : index
    %c0_52 = arith.constant 0 : index
    %111 = vector.load %arg3[%c1_50, %c0_51, %c0_52] : memref<2x16x16xbf16, #tpu.memory_space<vmem>>, vector<1x16x16xbf16>
    %112 = vector.shape_cast %111 : vector<1x16x16xbf16> to vector<16x16xbf16>
    %113 = arith.truncf %7 : vector<16x128xf32> to vector<16x128xbf16>
    %cst_53 = arith.constant dense<0.000000e+00> : vector<16x128xf32>
    %114 = tpu.matmul %112, %113, %cst_53 {dimension_numbers = #tpu.dot_dimension_numbers<[1], [0], [0], [1], [0, 0, 1, 1], [], []>} : vector<16x16xbf16>, vector<16x128xbf16>, vector<16x128xf32> -> vector<16x128xf32>
    %115 = vector.extract_strided_slice %114 {offsets = [0, 0], sizes = [16, 32], strides = [1, 1]} : vector<16x128xf32> to vector<16x32xf32>
    %116 = vector.extract_strided_slice %114 {offsets = [0, 32], sizes = [16, 32], strides = [1, 1]} : vector<16x128xf32> to vector<16x32xf32>
    %117 = vector.extract_strided_slice %114 {offsets = [0, 64], sizes = [16, 32], strides = [1, 1]} : vector<16x128xf32> to vector<16x32xf32>
    %118 = vector.extract_strided_slice %114 {offsets = [0, 96], sizes = [16, 32], strides = [1, 1]} : vector<16x128xf32> to vector<16x32xf32>
    %119 = tpu.concatenate %115, %116, %117, %118 in 0 : vector<16x32xf32>, vector<16x32xf32>, vector<16x32xf32>, vector<16x32xf32> -> vector<64x32xf32>
    %120 = arith.truncf %119 : vector<64x32xf32> to vector<64x32xbf16>
    %c3_54 = arith.constant 3 : index
    %c0_55 = arith.constant 0 : index
    %c0_56 = arith.constant 0 : index
    %121 = vector.load %arg5[%c3_54, %c0_55, %c0_56] : memref<5x32x384xbf16, #tpu.memory_space<vmem>>, vector<1x32x384xbf16>
    %122 = vector.shape_cast %121 : vector<1x32x384xbf16> to vector<32x384xbf16>
    %cst_57 = arith.constant dense<0.000000e+00> : vector<64x384xf32>
    %123 = tpu.matmul %120, %122, %cst_57 {dimension_numbers = #tpu.dot_dimension_numbers<[1], [0], [0], [1], [0, 0, 1, 1], [], []>} : vector<64x32xbf16>, vector<32x384xbf16>, vector<64x384xf32> -> vector<64x384xf32>
    %124 = arith.addf %110, %123 : vector<64x384xf32>
    %125 = arith.truncf %114 : vector<16x128xf32> to vector<16x128xbf16>
    %cst_58 = arith.constant dense<0.000000e+00> : vector<16x128xf32>
    %126 = tpu.matmul %112, %125, %cst_58 {dimension_numbers = #tpu.dot_dimension_numbers<[1], [0], [0], [1], [0, 0, 1, 1], [], []>} : vector<16x16xbf16>, vector<16x128xbf16>, vector<16x128xf32> -> vector<16x128xf32>
    %cst_59 = arith.constant 2.000000e+00 : f32
    %127 = vector.broadcast %cst_59 : f32 to vector<16x128xf32>
    %128 = arith.mulf %127, %126 : vector<16x128xf32>
    %129 = arith.subf %128, %7 : vector<16x128xf32>
    %130 = vector.extract_strided_slice %129 {offsets = [0, 0], sizes = [16, 32], strides = [1, 1]} : vector<16x128xf32> to vector<16x32xf32>
    %131 = vector.extract_strided_slice %129 {offsets = [0, 32], sizes = [16, 32], strides = [1, 1]} : vector<16x128xf32> to vector<16x32xf32>
    %132 = vector.extract_strided_slice %129 {offsets = [0, 64], sizes = [16, 32], strides = [1, 1]} : vector<16x128xf32> to vector<16x32xf32>
    %133 = vector.extract_strided_slice %129 {offsets = [0, 96], sizes = [16, 32], strides = [1, 1]} : vector<16x128xf32> to vector<16x32xf32>
    %134 = tpu.concatenate %130, %131, %132, %133 in 0 : vector<16x32xf32>, vector<16x32xf32>, vector<16x32xf32>, vector<16x32xf32> -> vector<64x32xf32>
    %135 = arith.truncf %134 : vector<64x32xf32> to vector<64x32xbf16>
    %c4_60 = arith.constant 4 : index
    %c0_61 = arith.constant 0 : index
    %c0_62 = arith.constant 0 : index
    %136 = vector.load %arg5[%c4_60, %c0_61, %c0_62] : memref<5x32x384xbf16, #tpu.memory_space<vmem>>, vector<1x32x384xbf16>
    %137 = vector.shape_cast %136 : vector<1x32x384xbf16> to vector<32x384xbf16>
    %cst_63 = arith.constant dense<0.000000e+00> : vector<64x384xf32>
    %138 = tpu.matmul %135, %137, %cst_63 {dimension_numbers = #tpu.dot_dimension_numbers<[1], [0], [0], [1], [0, 0, 1, 1], [], []>} : vector<64x32xbf16>, vector<32x384xbf16>, vector<64x384xf32> -> vector<64x384xf32>
    %139 = arith.addf %124, %138 : vector<64x384xf32>
    %c0_64 = arith.constant 0 : index
    %c0_65 = arith.constant 0 : index
    %140 = vector.load %arg7[%c0_64, %c0_65] : memref<1x384xf32, #tpu.memory_space<vmem>>, vector<1x384xf32>
    %141 = vector.broadcast %140 : vector<1x384xf32> to vector<64x384xf32>
    %142 = arith.addf %139, %141 : vector<64x384xf32>
    %143 = vector.extract_strided_slice %142 {offsets = [0, 0], sizes = [64, 32], strides = [1, 1]} : vector<64x384xf32> to vector<64x32xf32>
    %144 = arith.negf %143 : vector<64x32xf32>
    %145 = math.exp %144 : vector<64x32xf32>
    %cst_66 = arith.constant 1.000000e+00 : f32
    %146 = vector.broadcast %cst_66 : f32 to vector<64x32xf32>
    %147 = arith.addf %146, %145 : vector<64x32xf32>
    %148 = arith.divf %146, %147 : vector<64x32xf32>
    %149 = vector.extract_strided_slice %142 {offsets = [0, 128], sizes = [64, 32], strides = [1, 1]} : vector<64x384xf32> to vector<64x32xf32>
    %150 = arith.negf %149 : vector<64x32xf32>
    %151 = math.exp %150 : vector<64x32xf32>
    %cst_67 = arith.constant 1.000000e+00 : f32
    %152 = vector.broadcast %cst_67 : f32 to vector<64x32xf32>
    %153 = arith.addf %152, %151 : vector<64x32xf32>
    %154 = arith.divf %152, %153 : vector<64x32xf32>
    %155 = arith.mulf %148, %12 : vector<64x32xf32>
    %156 = vector.extract_strided_slice %155 {offsets = [0, 0], sizes = [16, 32], strides = [1, 1]} : vector<64x32xf32> to vector<16x32xf32>
    %157 = vector.extract_strided_slice %155 {offsets = [16, 0], sizes = [16, 32], strides = [1, 1]} : vector<64x32xf32> to vector<16x32xf32>
    %158 = vector.extract_strided_slice %155 {offsets = [32, 0], sizes = [16, 32], strides = [1, 1]} : vector<64x32xf32> to vector<16x32xf32>
    %159 = vector.extract_strided_slice %155 {offsets = [48, 0], sizes = [16, 32], strides = [1, 1]} : vector<64x32xf32> to vector<16x32xf32>
    %160 = tpu.concatenate %156, %157, %158, %159 in 1 : vector<16x32xf32>, vector<16x32xf32>, vector<16x32xf32>, vector<16x32xf32> -> vector<16x128xf32>
    %cst_68 = arith.constant 0.000000e+00 : f32
    %161 = vector.broadcast %cst_68 : f32 to vector<64x128xf32>
    %162 = arith.truncf %155 : vector<64x32xf32> to vector<64x32xbf16>
    %c0_69 = arith.constant 0 : index
    %c0_70 = arith.constant 0 : index
    %c0_71 = arith.constant 0 : index
    %163 = vector.load %arg6[%c0_69, %c0_70, %c0_71] : memref<5x32x128xbf16, #tpu.memory_space<vmem>>, vector<1x32x128xbf16>
    %164 = vector.shape_cast %163 : vector<1x32x128xbf16> to vector<32x128xbf16>
    %cst_72 = arith.constant dense<0.000000e+00> : vector<64x128xf32>
    %165 = tpu.matmul %162, %164, %cst_72 {dimension_numbers = #tpu.dot_dimension_numbers<[1], [0], [0], [1], [0, 0, 1, 1], [], []>} : vector<64x32xbf16>, vector<32x128xbf16>, vector<64x128xf32> -> vector<64x128xf32>
    %166 = arith.addf %161, %165 : vector<64x128xf32>
    %c0_73 = arith.constant 0 : index
    %c0_74 = arith.constant 0 : index
    %c0_75 = arith.constant 0 : index
    %167 = vector.load %arg3[%c0_73, %c0_74, %c0_75] : memref<2x16x16xbf16, #tpu.memory_space<vmem>>, vector<1x16x16xbf16>
    %168 = vector.shape_cast %167 : vector<1x16x16xbf16> to vector<16x16xbf16>
    %169 = arith.truncf %160 : vector<16x128xf32> to vector<16x128xbf16>
    %cst_76 = arith.constant dense<0.000000e+00> : vector<16x128xf32>
    %170 = tpu.matmul %168, %169, %cst_76 {dimension_numbers = #tpu.dot_dimension_numbers<[1], [0], [0], [1], [0, 0, 1, 1], [], []>} : vector<16x16xbf16>, vector<16x128xbf16>, vector<16x128xf32> -> vector<16x128xf32>
    %171 = vector.extract_strided_slice %170 {offsets = [0, 0], sizes = [16, 32], strides = [1, 1]} : vector<16x128xf32> to vector<16x32xf32>
    %172 = vector.extract_strided_slice %170 {offsets = [0, 32], sizes = [16, 32], strides = [1, 1]} : vector<16x128xf32> to vector<16x32xf32>
    %173 = vector.extract_strided_slice %170 {offsets = [0, 64], sizes = [16, 32], strides = [1, 1]} : vector<16x128xf32> to vector<16x32xf32>
    %174 = vector.extract_strided_slice %170 {offsets = [0, 96], sizes = [16, 32], strides = [1, 1]} : vector<16x128xf32> to vector<16x32xf32>
    %175 = tpu.concatenate %171, %172, %173, %174 in 0 : vector<16x32xf32>, vector<16x32xf32>, vector<16x32xf32>, vector<16x32xf32> -> vector<64x32xf32>
    %176 = arith.truncf %175 : vector<64x32xf32> to vector<64x32xbf16>
    %c1_77 = arith.constant 1 : index
    %c0_78 = arith.constant 0 : index
    %c0_79 = arith.constant 0 : index
    %177 = vector.load %arg6[%c1_77, %c0_78, %c0_79] : memref<5x32x128xbf16, #tpu.memory_space<vmem>>, vector<1x32x128xbf16>
    %178 = vector.shape_cast %177 : vector<1x32x128xbf16> to vector<32x128xbf16>
    %cst_80 = arith.constant dense<0.000000e+00> : vector<64x128xf32>
    %179 = tpu.matmul %176, %178, %cst_80 {dimension_numbers = #tpu.dot_dimension_numbers<[1], [0], [0], [1], [0, 0, 1, 1], [], []>} : vector<64x32xbf16>, vector<32x128xbf16>, vector<64x128xf32> -> vector<64x128xf32>
    %180 = arith.addf %166, %179 : vector<64x128xf32>
    %181 = arith.truncf %170 : vector<16x128xf32> to vector<16x128xbf16>
    %cst_81 = arith.constant dense<0.000000e+00> : vector<16x128xf32>
    %182 = tpu.matmul %168, %181, %cst_81 {dimension_numbers = #tpu.dot_dimension_numbers<[1], [0], [0], [1], [0, 0, 1, 1], [], []>} : vector<16x16xbf16>, vector<16x128xbf16>, vector<16x128xf32> -> vector<16x128xf32>
    %cst_82 = arith.constant 2.000000e+00 : f32
    %183 = vector.broadcast %cst_82 : f32 to vector<16x128xf32>
    %184 = arith.mulf %183, %182 : vector<16x128xf32>
    %185 = arith.subf %184, %160 : vector<16x128xf32>
    %186 = vector.extract_strided_slice %185 {offsets = [0, 0], sizes = [16, 32], strides = [1, 1]} : vector<16x128xf32> to vector<16x32xf32>
    %187 = vector.extract_strided_slice %185 {offsets = [0, 32], sizes = [16, 32], strides = [1, 1]} : vector<16x128xf32> to vector<16x32xf32>
    %188 = vector.extract_strided_slice %185 {offsets = [0, 64], sizes = [16, 32], strides = [1, 1]} : vector<16x128xf32> to vector<16x32xf32>
    %189 = vector.extract_strided_slice %185 {offsets = [0, 96], sizes = [16, 32], strides = [1, 1]} : vector<16x128xf32> to vector<16x32xf32>
    %190 = tpu.concatenate %186, %187, %188, %189 in 0 : vector<16x32xf32>, vector<16x32xf32>, vector<16x32xf32>, vector<16x32xf32> -> vector<64x32xf32>
    %191 = arith.truncf %190 : vector<64x32xf32> to vector<64x32xbf16>
    %c2_83 = arith.constant 2 : index
    %c0_84 = arith.constant 0 : index
    %c0_85 = arith.constant 0 : index
    %192 = vector.load %arg6[%c2_83, %c0_84, %c0_85] : memref<5x32x128xbf16, #tpu.memory_space<vmem>>, vector<1x32x128xbf16>
    %193 = vector.shape_cast %192 : vector<1x32x128xbf16> to vector<32x128xbf16>
    %cst_86 = arith.constant dense<0.000000e+00> : vector<64x128xf32>
    %194 = tpu.matmul %191, %193, %cst_86 {dimension_numbers = #tpu.dot_dimension_numbers<[1], [0], [0], [1], [0, 0, 1, 1], [], []>} : vector<64x32xbf16>, vector<32x128xbf16>, vector<64x128xf32> -> vector<64x128xf32>
    %195 = arith.addf %180, %194 : vector<64x128xf32>
    %c1_87 = arith.constant 1 : index
    %c0_88 = arith.constant 0 : index
    %c0_89 = arith.constant 0 : index
    %196 = vector.load %arg3[%c1_87, %c0_88, %c0_89] : memref<2x16x16xbf16, #tpu.memory_space<vmem>>, vector<1x16x16xbf16>
    %197 = vector.shape_cast %196 : vector<1x16x16xbf16> to vector<16x16xbf16>
    %198 = arith.truncf %160 : vector<16x128xf32> to vector<16x128xbf16>
    %cst_90 = arith.constant dense<0.000000e+00> : vector<16x128xf32>
    %199 = tpu.matmul %197, %198, %cst_90 {dimension_numbers = #tpu.dot_dimension_numbers<[1], [0], [0], [1], [0, 0, 1, 1], [], []>} : vector<16x16xbf16>, vector<16x128xbf16>, vector<16x128xf32> -> vector<16x128xf32>
    %200 = vector.extract_strided_slice %199 {offsets = [0, 0], sizes = [16, 32], strides = [1, 1]} : vector<16x128xf32> to vector<16x32xf32>
    %201 = vector.extract_strided_slice %199 {offsets = [0, 32], sizes = [16, 32], strides = [1, 1]} : vector<16x128xf32> to vector<16x32xf32>
    %202 = vector.extract_strided_slice %199 {offsets = [0, 64], sizes = [16, 32], strides = [1, 1]} : vector<16x128xf32> to vector<16x32xf32>
    %203 = vector.extract_strided_slice %199 {offsets = [0, 96], sizes = [16, 32], strides = [1, 1]} : vector<16x128xf32> to vector<16x32xf32>
    %204 = tpu.concatenate %200, %201, %202, %203 in 0 : vector<16x32xf32>, vector<16x32xf32>, vector<16x32xf32>, vector<16x32xf32> -> vector<64x32xf32>
    %205 = arith.truncf %204 : vector<64x32xf32> to vector<64x32xbf16>
    %c3_91 = arith.constant 3 : index
    %c0_92 = arith.constant 0 : index
    %c0_93 = arith.constant 0 : index
    %206 = vector.load %arg6[%c3_91, %c0_92, %c0_93] : memref<5x32x128xbf16, #tpu.memory_space<vmem>>, vector<1x32x128xbf16>
    %207 = vector.shape_cast %206 : vector<1x32x128xbf16> to vector<32x128xbf16>
    %cst_94 = arith.constant dense<0.000000e+00> : vector<64x128xf32>
    %208 = tpu.matmul %205, %207, %cst_94 {dimension_numbers = #tpu.dot_dimension_numbers<[1], [0], [0], [1], [0, 0, 1, 1], [], []>} : vector<64x32xbf16>, vector<32x128xbf16>, vector<64x128xf32> -> vector<64x128xf32>
    %209 = arith.addf %195, %208 : vector<64x128xf32>
    %210 = arith.truncf %199 : vector<16x128xf32> to vector<16x128xbf16>
    %cst_95 = arith.constant dense<0.000000e+00> : vector<16x128xf32>
    %211 = tpu.matmul %197, %210, %cst_95 {dimension_numbers = #tpu.dot_dimension_numbers<[1], [0], [0], [1], [0, 0, 1, 1], [], []>} : vector<16x16xbf16>, vector<16x128xbf16>, vector<16x128xf32> -> vector<16x128xf32>
    %cst_96 = arith.constant 2.000000e+00 : f32
    %212 = vector.broadcast %cst_96 : f32 to vector<16x128xf32>
    %213 = arith.mulf %212, %211 : vector<16x128xf32>
    %214 = arith.subf %213, %160 : vector<16x128xf32>
    %215 = vector.extract_strided_slice %214 {offsets = [0, 0], sizes = [16, 32], strides = [1, 1]} : vector<16x128xf32> to vector<16x32xf32>
    %216 = vector.extract_strided_slice %214 {offsets = [0, 32], sizes = [16, 32], strides = [1, 1]} : vector<16x128xf32> to vector<16x32xf32>
    %217 = vector.extract_strided_slice %214 {offsets = [0, 64], sizes = [16, 32], strides = [1, 1]} : vector<16x128xf32> to vector<16x32xf32>
    %218 = vector.extract_strided_slice %214 {offsets = [0, 96], sizes = [16, 32], strides = [1, 1]} : vector<16x128xf32> to vector<16x32xf32>
    %219 = tpu.concatenate %215, %216, %217, %218 in 0 : vector<16x32xf32>, vector<16x32xf32>, vector<16x32xf32>, vector<16x32xf32> -> vector<64x32xf32>
    %220 = arith.truncf %219 : vector<64x32xf32> to vector<64x32xbf16>
    %c4_97 = arith.constant 4 : index
    %c0_98 = arith.constant 0 : index
    %c0_99 = arith.constant 0 : index
    %221 = vector.load %arg6[%c4_97, %c0_98, %c0_99] : memref<5x32x128xbf16, #tpu.memory_space<vmem>>, vector<1x32x128xbf16>
    %222 = vector.shape_cast %221 : vector<1x32x128xbf16> to vector<32x128xbf16>
    %cst_100 = arith.constant dense<0.000000e+00> : vector<64x128xf32>
    %223 = tpu.matmul %220, %222, %cst_100 {dimension_numbers = #tpu.dot_dimension_numbers<[1], [0], [0], [1], [0, 0, 1, 1], [], []>} : vector<64x32xbf16>, vector<32x128xbf16>, vector<64x128xf32> -> vector<64x128xf32>
    %224 = arith.addf %209, %223 : vector<64x128xf32>
    %225 = vector.extract_strided_slice %142 {offsets = [0, 256], sizes = [64, 32], strides = [1, 1]} : vector<64x384xf32> to vector<64x32xf32>
    %226 = vector.extract_strided_slice %224 {offsets = [0, 0], sizes = [64, 32], strides = [1, 1]} : vector<64x128xf32> to vector<64x32xf32>
    %227 = arith.addf %225, %226 : vector<64x32xf32>
    %228 = math.tanh %227 : vector<64x32xf32>
    %229 = arith.mulf %154, %12 : vector<64x32xf32>
    %cst_101 = arith.constant 1.000000e+00 : f32
    %230 = vector.broadcast %cst_101 : f32 to vector<64x32xf32>
    %231 = arith.subf %230, %154 : vector<64x32xf32>
    %232 = arith.mulf %231, %228 : vector<64x32xf32>
    %233 = arith.addf %229, %232 : vector<64x32xf32>
    %234 = vector.extract_strided_slice %233 {offsets = [0, 0], sizes = [16, 32], strides = [1, 1]} : vector<64x32xf32> to vector<16x32xf32>
    %235 = vector.extract_strided_slice %233 {offsets = [16, 0], sizes = [16, 32], strides = [1, 1]} : vector<64x32xf32> to vector<16x32xf32>
    %236 = vector.extract_strided_slice %233 {offsets = [32, 0], sizes = [16, 32], strides = [1, 1]} : vector<64x32xf32> to vector<16x32xf32>
    %237 = vector.extract_strided_slice %233 {offsets = [48, 0], sizes = [16, 32], strides = [1, 1]} : vector<64x32xf32> to vector<16x32xf32>
    %238 = tpu.concatenate %234, %235, %236, %237 in 1 : vector<16x32xf32>, vector<16x32xf32>, vector<16x32xf32>, vector<16x32xf32> -> vector<16x128xf32>
    %c0_102 = arith.constant 0 : index
    %c0_103 = arith.constant 0 : index
    %c0_104 = arith.constant 0 : index
    %239 = vector.load %arg12[%c0_102, %c0_103, %c0_104] : memref<2x16x128xf32, #tpu.memory_space<vmem>>, vector<1x16x128xf32>
    %240 = vector.shape_cast %239 : vector<1x16x128xf32> to vector<16x128xf32>
    %241 = vector.shape_cast %238 : vector<16x128xf32> to vector<1x16x128xf32>
    tpu.vector_store %arg12[%c0_102, %c0_103, %c0_104], %241 {strides = array<i32>} : memref<2x16x128xf32, #tpu.memory_space<vmem>>, vector<1x16x128xf32>,
    %c1_105 = arith.constant 1 : index
    %c0_106 = arith.constant 0 : index
    %c0_107 = arith.constant 0 : index
    %242 = vector.load %arg2[%c1_105, %c0_106, %c0_107] : memref<2x16x128xf32, #tpu.memory_space<vmem>>, vector<1x16x128xf32>
    %243 = vector.shape_cast %242 : vector<1x16x128xf32> to vector<16x128xf32>
    %244 = vector.extract_strided_slice %243 {offsets = [0, 0], sizes = [16, 32], strides = [1, 1]} : vector<16x128xf32> to vector<16x32xf32>
    %245 = vector.extract_strided_slice %243 {offsets = [0, 32], sizes = [16, 32], strides = [1, 1]} : vector<16x128xf32> to vector<16x32xf32>
    %246 = vector.extract_strided_slice %243 {offsets = [0, 64], sizes = [16, 32], strides = [1, 1]} : vector<16x128xf32> to vector<16x32xf32>
    %247 = vector.extract_strided_slice %243 {offsets = [0, 96], sizes = [16, 32], strides = [1, 1]} : vector<16x128xf32> to vector<16x32xf32>
    %248 = tpu.concatenate %244, %245, %246, %247 in 0 : vector<16x32xf32>, vector<16x32xf32>, vector<16x32xf32>, vector<16x32xf32> -> vector<64x32xf32>
    %cst_108 = arith.constant 0.000000e+00 : f32
    %249 = vector.broadcast %cst_108 : f32 to vector<64x384xf32>
    %250 = arith.truncf %233 : vector<64x32xf32> to vector<64x32xbf16>
    %c0_109 = arith.constant 0 : index
    %c0_110 = arith.constant 0 : index
    %c0_111 = arith.constant 0 : index
    %251 = vector.load %arg8[%c0_109, %c0_110, %c0_111] : memref<5x32x384xbf16, #tpu.memory_space<vmem>>, vector<1x32x384xbf16>
    %252 = vector.shape_cast %251 : vector<1x32x384xbf16> to vector<32x384xbf16>
    %cst_112 = arith.constant dense<0.000000e+00> : vector<64x384xf32>
    %253 = tpu.matmul %250, %252, %cst_112 {dimension_numbers = #tpu.dot_dimension_numbers<[1], [0], [0], [1], [0, 0, 1, 1], [], []>} : vector<64x32xbf16>, vector<32x384xbf16>, vector<64x384xf32> -> vector<64x384xf32>
    %254 = arith.addf %249, %253 : vector<64x384xf32>
    %c0_113 = arith.constant 0 : index
    %c0_114 = arith.constant 0 : index
    %c0_115 = arith.constant 0 : index
    %255 = vector.load %arg3[%c0_113, %c0_114, %c0_115] : memref<2x16x16xbf16, #tpu.memory_space<vmem>>, vector<1x16x16xbf16>
    %256 = vector.shape_cast %255 : vector<1x16x16xbf16> to vector<16x16xbf16>
    %257 = arith.truncf %238 : vector<16x128xf32> to vector<16x128xbf16>
    %cst_116 = arith.constant dense<0.000000e+00> : vector<16x128xf32>
    %258 = tpu.matmul %256, %257, %cst_116 {dimension_numbers = #tpu.dot_dimension_numbers<[1], [0], [0], [1], [0, 0, 1, 1], [], []>} : vector<16x16xbf16>, vector<16x128xbf16>, vector<16x128xf32> -> vector<16x128xf32>
    %259 = vector.extract_strided_slice %258 {offsets = [0, 0], sizes = [16, 32], strides = [1, 1]} : vector<16x128xf32> to vector<16x32xf32>
    %260 = vector.extract_strided_slice %258 {offsets = [0, 32], sizes = [16, 32], strides = [1, 1]} : vector<16x128xf32> to vector<16x32xf32>
    %261 = vector.extract_strided_slice %258 {offsets = [0, 64], sizes = [16, 32], strides = [1, 1]} : vector<16x128xf32> to vector<16x32xf32>
    %262 = vector.extract_strided_slice %258 {offsets = [0, 96], sizes = [16, 32], strides = [1, 1]} : vector<16x128xf32> to vector<16x32xf32>
    %263 = tpu.concatenate %259, %260, %261, %262 in 0 : vector<16x32xf32>, vector<16x32xf32>, vector<16x32xf32>, vector<16x32xf32> -> vector<64x32xf32>
    %264 = arith.truncf %263 : vector<64x32xf32> to vector<64x32xbf16>
    %c1_117 = arith.constant 1 : index
    %c0_118 = arith.constant 0 : index
    %c0_119 = arith.constant 0 : index
    %265 = vector.load %arg8[%c1_117, %c0_118, %c0_119] : memref<5x32x384xbf16, #tpu.memory_space<vmem>>, vector<1x32x384xbf16>
    %266 = vector.shape_cast %265 : vector<1x32x384xbf16> to vector<32x384xbf16>
    %cst_120 = arith.constant dense<0.000000e+00> : vector<64x384xf32>
    %267 = tpu.matmul %264, %266, %cst_120 {dimension_numbers = #tpu.dot_dimension_numbers<[1], [0], [0], [1], [0, 0, 1, 1], [], []>} : vector<64x32xbf16>, vector<32x384xbf16>, vector<64x384xf32> -> vector<64x384xf32>
    %268 = arith.addf %254, %267 : vector<64x384xf32>
    %269 = arith.truncf %258 : vector<16x128xf32> to vector<16x128xbf16>
    %cst_121 = arith.constant dense<0.000000e+00> : vector<16x128xf32>
    %270 = tpu.matmul %256, %269, %cst_121 {dimension_numbers = #tpu.dot_dimension_numbers<[1], [0], [0], [1], [0, 0, 1, 1], [], []>} : vector<16x16xbf16>, vector<16x128xbf16>, vector<16x128xf32> -> vector<16x128xf32>
    %cst_122 = arith.constant 2.000000e+00 : f32
    %271 = vector.broadcast %cst_122 : f32 to vector<16x128xf32>
    %272 = arith.mulf %271, %270 : vector<16x128xf32>
    %273 = arith.subf %272, %238 : vector<16x128xf32>
    %274 = vector.extract_strided_slice %273 {offsets = [0, 0], sizes = [16, 32], strides = [1, 1]} : vector<16x128xf32> to vector<16x32xf32>
    %275 = vector.extract_strided_slice %273 {offsets = [0, 32], sizes = [16, 32], strides = [1, 1]} : vector<16x128xf32> to vector<16x32xf32>
    %276 = vector.extract_strided_slice %273 {offsets = [0, 64], sizes = [16, 32], strides = [1, 1]} : vector<16x128xf32> to vector<16x32xf32>
    %277 = vector.extract_strided_slice %273 {offsets = [0, 96], sizes = [16, 32], strides = [1, 1]} : vector<16x128xf32> to vector<16x32xf32>
    %278 = tpu.concatenate %274, %275, %276, %277 in 0 : vector<16x32xf32>, vector<16x32xf32>, vector<16x32xf32>, vector<16x32xf32> -> vector<64x32xf32>
    %279 = arith.truncf %278 : vector<64x32xf32> to vector<64x32xbf16>
    %c2_123 = arith.constant 2 : index
    %c0_124 = arith.constant 0 : index
    %c0_125 = arith.constant 0 : index
    %280 = vector.load %arg8[%c2_123, %c0_124, %c0_125] : memref<5x32x384xbf16, #tpu.memory_space<vmem>>, vector<1x32x384xbf16>
    %281 = vector.shape_cast %280 : vector<1x32x384xbf16> to vector<32x384xbf16>
    %cst_126 = arith.constant dense<0.000000e+00> : vector<64x384xf32>
    %282 = tpu.matmul %279, %281, %cst_126 {dimension_numbers = #tpu.dot_dimension_numbers<[1], [0], [0], [1], [0, 0, 1, 1], [], []>} : vector<64x32xbf16>, vector<32x384xbf16>, vector<64x384xf32> -> vector<64x384xf32>
    %283 = arith.addf %268, %282 : vector<64x384xf32>
    %c1_127 = arith.constant 1 : index
    %c0_128 = arith.constant 0 : index
    %c0_129 = arith.constant 0 : index
    %284 = vector.load %arg3[%c1_127, %c0_128, %c0_129] : memref<2x16x16xbf16, #tpu.memory_space<vmem>>, vector<1x16x16xbf16>
    %285 = vector.shape_cast %284 : vector<1x16x16xbf16> to vector<16x16xbf16>
    %286 = arith.truncf %238 : vector<16x128xf32> to vector<16x128xbf16>
    %cst_130 = arith.constant dense<0.000000e+00> : vector<16x128xf32>
    %287 = tpu.matmul %285, %286, %cst_130 {dimension_numbers = #tpu.dot_dimension_numbers<[1], [0], [0], [1], [0, 0, 1, 1], [], []>} : vector<16x16xbf16>, vector<16x128xbf16>, vector<16x128xf32> -> vector<16x128xf32>
    %288 = vector.extract_strided_slice %287 {offsets = [0, 0], sizes = [16, 32], strides = [1, 1]} : vector<16x128xf32> to vector<16x32xf32>
    %289 = vector.extract_strided_slice %287 {offsets = [0, 32], sizes = [16, 32], strides = [1, 1]} : vector<16x128xf32> to vector<16x32xf32>
    %290 = vector.extract_strided_slice %287 {offsets = [0, 64], sizes = [16, 32], strides = [1, 1]} : vector<16x128xf32> to vector<16x32xf32>
    %291 = vector.extract_strided_slice %287 {offsets = [0, 96], sizes = [16, 32], strides = [1, 1]} : vector<16x128xf32> to vector<16x32xf32>
    %292 = tpu.concatenate %288, %289, %290, %291 in 0 : vector<16x32xf32>, vector<16x32xf32>, vector<16x32xf32>, vector<16x32xf32> -> vector<64x32xf32>
    %293 = arith.truncf %292 : vector<64x32xf32> to vector<64x32xbf16>
    %c3_131 = arith.constant 3 : index
    %c0_132 = arith.constant 0 : index
    %c0_133 = arith.constant 0 : index
    %294 = vector.load %arg8[%c3_131, %c0_132, %c0_133] : memref<5x32x384xbf16, #tpu.memory_space<vmem>>, vector<1x32x384xbf16>
    %295 = vector.shape_cast %294 : vector<1x32x384xbf16> to vector<32x384xbf16>
    %cst_134 = arith.constant dense<0.000000e+00> : vector<64x384xf32>
    %296 = tpu.matmul %293, %295, %cst_134 {dimension_numbers = #tpu.dot_dimension_numbers<[1], [0], [0], [1], [0, 0, 1, 1], [], []>} : vector<64x32xbf16>, vector<32x384xbf16>, vector<64x384xf32> -> vector<64x384xf32>
    %297 = arith.addf %283, %296 : vector<64x384xf32>
    %298 = arith.truncf %287 : vector<16x128xf32> to vector<16x128xbf16>
    %cst_135 = arith.constant dense<0.000000e+00> : vector<16x128xf32>
    %299 = tpu.matmul %285, %298, %cst_135 {dimension_numbers = #tpu.dot_dimension_numbers<[1], [0], [0], [1], [0, 0, 1, 1], [], []>} : vector<16x16xbf16>, vector<16x128xbf16>, vector<16x128xf32> -> vector<16x128xf32>
    %cst_136 = arith.constant 2.000000e+00 : f32
    %300 = vector.broadcast %cst_136 : f32 to vector<16x128xf32>
    %301 = arith.mulf %300, %299 : vector<16x128xf32>
    %302 = arith.subf %301, %238 : vector<16x128xf32>
    %303 = vector.extract_strided_slice %302 {offsets = [0, 0], sizes = [16, 32], strides = [1, 1]} : vector<16x128xf32> to vector<16x32xf32>
    %304 = vector.extract_strided_slice %302 {offsets = [0, 32], sizes = [16, 32], strides = [1, 1]} : vector<16x128xf32> to vector<16x32xf32>
    %305 = vector.extract_strided_slice %302 {offsets = [0, 64], sizes = [16, 32], strides = [1, 1]} : vector<16x128xf32> to vector<16x32xf32>
    %306 = vector.extract_strided_slice %302 {offsets = [0, 96], sizes = [16, 32], strides = [1, 1]} : vector<16x128xf32> to vector<16x32xf32>
    %307 = tpu.concatenate %303, %304, %305, %306 in 0 : vector<16x32xf32>, vector<16x32xf32>, vector<16x32xf32>, vector<16x32xf32> -> vector<64x32xf32>
    %308 = arith.truncf %307 : vector<64x32xf32> to vector<64x32xbf16>
    %c4_137 = arith.constant 4 : index
    %c0_138 = arith.constant 0 : index
    %c0_139 = arith.constant 0 : index
    %309 = vector.load %arg8[%c4_137, %c0_138, %c0_139] : memref<5x32x384xbf16, #tpu.memory_space<vmem>>, vector<1x32x384xbf16>
    %310 = vector.shape_cast %309 : vector<1x32x384xbf16> to vector<32x384xbf16>
    %cst_140 = arith.constant dense<0.000000e+00> : vector<64x384xf32>
    %311 = tpu.matmul %308, %310, %cst_140 {dimension_numbers = #tpu.dot_dimension_numbers<[1], [0], [0], [1], [0, 0, 1, 1], [], []>} : vector<64x32xbf16>, vector<32x384xbf16>, vector<64x384xf32> -> vector<64x384xf32>
    %312 = arith.addf %297, %311 : vector<64x384xf32>
    %313 = arith.truncf %248 : vector<64x32xf32> to vector<64x32xbf16>
    %c0_141 = arith.constant 0 : index
    %c0_142 = arith.constant 0 : index
    %c0_143 = arith.constant 0 : index
    %314 = vector.load %arg9[%c0_141, %c0_142, %c0_143] : memref<5x32x384xbf16, #tpu.memory_space<vmem>>, vector<1x32x384xbf16>
    %315 = vector.shape_cast %314 : vector<1x32x384xbf16> to vector<32x384xbf16>
    %cst_144 = arith.constant dense<0.000000e+00> : vector<64x384xf32>
    %316 = tpu.matmul %313, %315, %cst_144 {dimension_numbers = #tpu.dot_dimension_numbers<[1], [0], [0], [1], [0, 0, 1, 1], [], []>} : vector<64x32xbf16>, vector<32x384xbf16>, vector<64x384xf32> -> vector<64x384xf32>
    %317 = arith.addf %312, %316 : vector<64x384xf32>
    %c0_145 = arith.constant 0 : index
    %c0_146 = arith.constant 0 : index
    %c0_147 = arith.constant 0 : index
    %318 = vector.load %arg3[%c0_145, %c0_146, %c0_147] : memref<2x16x16xbf16, #tpu.memory_space<vmem>>, vector<1x16x16xbf16>
    %319 = vector.shape_cast %318 : vector<1x16x16xbf16> to vector<16x16xbf16>
    %320 = arith.truncf %243 : vector<16x128xf32> to vector<16x128xbf16>
    %cst_148 = arith.constant dense<0.000000e+00> : vector<16x128xf32>
    %321 = tpu.matmul %319, %320, %cst_148 {dimension_numbers = #tpu.dot_dimension_numbers<[1], [0], [0], [1], [0, 0, 1, 1], [], []>} : vector<16x16xbf16>, vector<16x128xbf16>, vector<16x128xf32> -> vector<16x128xf32>
    %322 = vector.extract_strided_slice %321 {offsets = [0, 0], sizes = [16, 32], strides = [1, 1]} : vector<16x128xf32> to vector<16x32xf32>
    %323 = vector.extract_strided_slice %321 {offsets = [0, 32], sizes = [16, 32], strides = [1, 1]} : vector<16x128xf32> to vector<16x32xf32>
    %324 = vector.extract_strided_slice %321 {offsets = [0, 64], sizes = [16, 32], strides = [1, 1]} : vector<16x128xf32> to vector<16x32xf32>
    %325 = vector.extract_strided_slice %321 {offsets = [0, 96], sizes = [16, 32], strides = [1, 1]} : vector<16x128xf32> to vector<16x32xf32>
    %326 = tpu.concatenate %322, %323, %324, %325 in 0 : vector<16x32xf32>, vector<16x32xf32>, vector<16x32xf32>, vector<16x32xf32> -> vector<64x32xf32>
    %327 = arith.truncf %326 : vector<64x32xf32> to vector<64x32xbf16>
    %c1_149 = arith.constant 1 : index
    %c0_150 = arith.constant 0 : index
    %c0_151 = arith.constant 0 : index
    %328 = vector.load %arg9[%c1_149, %c0_150, %c0_151] : memref<5x32x384xbf16, #tpu.memory_space<vmem>>, vector<1x32x384xbf16>
    %329 = vector.shape_cast %328 : vector<1x32x384xbf16> to vector<32x384xbf16>
    %cst_152 = arith.constant dense<0.000000e+00> : vector<64x384xf32>
    %330 = tpu.matmul %327, %329, %cst_152 {dimension_numbers = #tpu.dot_dimension_numbers<[1], [0], [0], [1], [0, 0, 1, 1], [], []>} : vector<64x32xbf16>, vector<32x384xbf16>, vector<64x384xf32> -> vector<64x384xf32>
    %331 = arith.addf %317, %330 : vector<64x384xf32>
    %332 = arith.truncf %321 : vector<16x128xf32> to vector<16x128xbf16>
    %cst_153 = arith.constant dense<0.000000e+00> : vector<16x128xf32>
    %333 = tpu.matmul %319, %332, %cst_153 {dimension_numbers = #tpu.dot_dimension_numbers<[1], [0], [0], [1], [0, 0, 1, 1], [], []>} : vector<16x16xbf16>, vector<16x128xbf16>, vector<16x128xf32> -> vector<16x128xf32>
    %cst_154 = arith.constant 2.000000e+00 : f32
    %334 = vector.broadcast %cst_154 : f32 to vector<16x128xf32>
    %335 = arith.mulf %334, %333 : vector<16x128xf32>
    %336 = arith.subf %335, %243 : vector<16x128xf32>
    %337 = vector.extract_strided_slice %336 {offsets = [0, 0], sizes = [16, 32], strides = [1, 1]} : vector<16x128xf32> to vector<16x32xf32>
    %338 = vector.extract_strided_slice %336 {offsets = [0, 32], sizes = [16, 32], strides = [1, 1]} : vector<16x128xf32> to vector<16x32xf32>
    %339 = vector.extract_strided_slice %336 {offsets = [0, 64], sizes = [16, 32], strides = [1, 1]} : vector<16x128xf32> to vector<16x32xf32>
    %340 = vector.extract_strided_slice %336 {offsets = [0, 96], sizes = [16, 32], strides = [1, 1]} : vector<16x128xf32> to vector<16x32xf32>
    %341 = tpu.concatenate %337, %338, %339, %340 in 0 : vector<16x32xf32>, vector<16x32xf32>, vector<16x32xf32>, vector<16x32xf32> -> vector<64x32xf32>
    %342 = arith.truncf %341 : vector<64x32xf32> to vector<64x32xbf16>
    %c2_155 = arith.constant 2 : index
    %c0_156 = arith.constant 0 : index
    %c0_157 = arith.constant 0 : index
    %343 = vector.load %arg9[%c2_155, %c0_156, %c0_157] : memref<5x32x384xbf16, #tpu.memory_space<vmem>>, vector<1x32x384xbf16>
    %344 = vector.shape_cast %343 : vector<1x32x384xbf16> to vector<32x384xbf16>
    %cst_158 = arith.constant dense<0.000000e+00> : vector<64x384xf32>
    %345 = tpu.matmul %342, %344, %cst_158 {dimension_numbers = #tpu.dot_dimension_numbers<[1], [0], [0], [1], [0, 0, 1, 1], [], []>} : vector<64x32xbf16>, vector<32x384xbf16>, vector<64x384xf32> -> vector<64x384xf32>
    %346 = arith.addf %331, %345 : vector<64x384xf32>
    %c1_159 = arith.constant 1 : index
    %c0_160 = arith.constant 0 : index
    %c0_161 = arith.constant 0 : index
    %347 = vector.load %arg3[%c1_159, %c0_160, %c0_161] : memref<2x16x16xbf16, #tpu.memory_space<vmem>>, vector<1x16x16xbf16>
    %348 = vector.shape_cast %347 : vector<1x16x16xbf16> to vector<16x16xbf16>
    %349 = arith.truncf %243 : vector<16x128xf32> to vector<16x128xbf16>
    %cst_162 = arith.constant dense<0.000000e+00> : vector<16x128xf32>
    %350 = tpu.matmul %348, %349, %cst_162 {dimension_numbers = #tpu.dot_dimension_numbers<[1], [0], [0], [1], [0, 0, 1, 1], [], []>} : vector<16x16xbf16>, vector<16x128xbf16>, vector<16x128xf32> -> vector<16x128xf32>
    %351 = vector.extract_strided_slice %350 {offsets = [0, 0], sizes = [16, 32], strides = [1, 1]} : vector<16x128xf32> to vector<16x32xf32>
    %352 = vector.extract_strided_slice %350 {offsets = [0, 32], sizes = [16, 32], strides = [1, 1]} : vector<16x128xf32> to vector<16x32xf32>
    %353 = vector.extract_strided_slice %350 {offsets = [0, 64], sizes = [16, 32], strides = [1, 1]} : vector<16x128xf32> to vector<16x32xf32>
    %354 = vector.extract_strided_slice %350 {offsets = [0, 96], sizes = [16, 32], strides = [1, 1]} : vector<16x128xf32> to vector<16x32xf32>
    %355 = tpu.concatenate %351, %352, %353, %354 in 0 : vector<16x32xf32>, vector<16x32xf32>, vector<16x32xf32>, vector<16x32xf32> -> vector<64x32xf32>
    %356 = arith.truncf %355 : vector<64x32xf32> to vector<64x32xbf16>
    %c3_163 = arith.constant 3 : index
    %c0_164 = arith.constant 0 : index
    %c0_165 = arith.constant 0 : index
    %357 = vector.load %arg9[%c3_163, %c0_164, %c0_165] : memref<5x32x384xbf16, #tpu.memory_space<vmem>>, vector<1x32x384xbf16>
    %358 = vector.shape_cast %357 : vector<1x32x384xbf16> to vector<32x384xbf16>
    %cst_166 = arith.constant dense<0.000000e+00> : vector<64x384xf32>
    %359 = tpu.matmul %356, %358, %cst_166 {dimension_numbers = #tpu.dot_dimension_numbers<[1], [0], [0], [1], [0, 0, 1, 1], [], []>} : vector<64x32xbf16>, vector<32x384xbf16>, vector<64x384xf32> -> vector<64x384xf32>
    %360 = arith.addf %346, %359 : vector<64x384xf32>
    %361 = arith.truncf %350 : vector<16x128xf32> to vector<16x128xbf16>
    %cst_167 = arith.constant dense<0.000000e+00> : vector<16x128xf32>
    %362 = tpu.matmul %348, %361, %cst_167 {dimension_numbers = #tpu.dot_dimension_numbers<[1], [0], [0], [1], [0, 0, 1, 1], [], []>} : vector<16x16xbf16>, vector<16x128xbf16>, vector<16x128xf32> -> vector<16x128xf32>
    %cst_168 = arith.constant 2.000000e+00 : f32
    %363 = vector.broadcast %cst_168 : f32 to vector<16x128xf32>
    %364 = arith.mulf %363, %362 : vector<16x128xf32>
    %365 = arith.subf %364, %243 : vector<16x128xf32>
    %366 = vector.extract_strided_slice %365 {offsets = [0, 0], sizes = [16, 32], strides = [1, 1]} : vector<16x128xf32> to vector<16x32xf32>
    %367 = vector.extract_strided_slice %365 {offsets = [0, 32], sizes = [16, 32], strides = [1, 1]} : vector<16x128xf32> to vector<16x32xf32>
    %368 = vector.extract_strided_slice %365 {offsets = [0, 64], sizes = [16, 32], strides = [1, 1]} : vector<16x128xf32> to vector<16x32xf32>
    %369 = vector.extract_strided_slice %365 {offsets = [0, 96], sizes = [16, 32], strides = [1, 1]} : vector<16x128xf32> to vector<16x32xf32>
    %370 = tpu.concatenate %366, %367, %368, %369 in 0 : vector<16x32xf32>, vector<16x32xf32>, vector<16x32xf32>, vector<16x32xf32> -> vector<64x32xf32>
    %371 = arith.truncf %370 : vector<64x32xf32> to vector<64x32xbf16>
    %c4_169 = arith.constant 4 : index
    %c0_170 = arith.constant 0 : index
    %c0_171 = arith.constant 0 : index
    %372 = vector.load %arg9[%c4_169, %c0_170, %c0_171] : memref<5x32x384xbf16, #tpu.memory_space<vmem>>, vector<1x32x384xbf16>
    %373 = vector.shape_cast %372 : vector<1x32x384xbf16> to vector<32x384xbf16>
    %cst_172 = arith.constant dense<0.000000e+00> : vector<64x384xf32>
    %374 = tpu.matmul %371, %373, %cst_172 {dimension_numbers = #tpu.dot_dimension_numbers<[1], [0], [0], [1], [0, 0, 1, 1], [], []>} : vector<64x32xbf16>, vector<32x384xbf16>, vector<64x384xf32> -> vector<64x384xf32>
    %375 = arith.addf %360, %374 : vector<64x384xf32>
    %c0_173 = arith.constant 0 : index
    %c0_174 = arith.constant 0 : index
    %376 = vector.load %arg11[%c0_173, %c0_174] : memref<1x384xf32, #tpu.memory_space<vmem>>, vector<1x384xf32>
    %377 = vector.broadcast %376 : vector<1x384xf32> to vector<64x384xf32>
    %378 = arith.addf %375, %377 : vector<64x384xf32>
    %379 = vector.extract_strided_slice %378 {offsets = [0, 0], sizes = [64, 32], strides = [1, 1]} : vector<64x384xf32> to vector<64x32xf32>
    %380 = arith.negf %379 : vector<64x32xf32>
    %381 = math.exp %380 : vector<64x32xf32>
    %cst_175 = arith.constant 1.000000e+00 : f32
    %382 = vector.broadcast %cst_175 : f32 to vector<64x32xf32>
    %383 = arith.addf %382, %381 : vector<64x32xf32>
    %384 = arith.divf %382, %383 : vector<64x32xf32>
    %385 = vector.extract_strided_slice %378 {offsets = [0, 128], sizes = [64, 32], strides = [1, 1]} : vector<64x384xf32> to vector<64x32xf32>
    %386 = arith.negf %385 : vector<64x32xf32>
    %387 = math.exp %386 : vector<64x32xf32>
    %cst_176 = arith.constant 1.000000e+00 : f32
    %388 = vector.broadcast %cst_176 : f32 to vector<64x32xf32>
    %389 = arith.addf %388, %387 : vector<64x32xf32>
    %390 = arith.divf %388, %389 : vector<64x32xf32>
    %391 = arith.mulf %384, %248 : vector<64x32xf32>
    %392 = vector.extract_strided_slice %391 {offsets = [0, 0], sizes = [16, 32], strides = [1, 1]} : vector<64x32xf32> to vector<16x32xf32>
    %393 = vector.extract_strided_slice %391 {offsets = [16, 0], sizes = [16, 32], strides = [1, 1]} : vector<64x32xf32> to vector<16x32xf32>
    %394 = vector.extract_strided_slice %391 {offsets = [32, 0], sizes = [16, 32], strides = [1, 1]} : vector<64x32xf32> to vector<16x32xf32>
    %395 = vector.extract_strided_slice %391 {offsets = [48, 0], sizes = [16, 32], strides = [1, 1]} : vector<64x32xf32> to vector<16x32xf32>
    %396 = tpu.concatenate %392, %393, %394, %395 in 1 : vector<16x32xf32>, vector<16x32xf32>, vector<16x32xf32>, vector<16x32xf32> -> vector<16x128xf32>
    %cst_177 = arith.constant 0.000000e+00 : f32
    %397 = vector.broadcast %cst_177 : f32 to vector<64x128xf32>
    %398 = arith.truncf %391 : vector<64x32xf32> to vector<64x32xbf16>
    %c0_178 = arith.constant 0 : index
    %c0_179 = arith.constant 0 : index
    %c0_180 = arith.constant 0 : index
    %399 = vector.load %arg10[%c0_178, %c0_179, %c0_180] : memref<5x32x128xbf16, #tpu.memory_space<vmem>>, vector<1x32x128xbf16>
    %400 = vector.shape_cast %399 : vector<1x32x128xbf16> to vector<32x128xbf16>
    %cst_181 = arith.constant dense<0.000000e+00> : vector<64x128xf32>
    %401 = tpu.matmul %398, %400, %cst_181 {dimension_numbers = #tpu.dot_dimension_numbers<[1], [0], [0], [1], [0, 0, 1, 1], [], []>} : vector<64x32xbf16>, vector<32x128xbf16>, vector<64x128xf32> -> vector<64x128xf32>
    %402 = arith.addf %397, %401 : vector<64x128xf32>
    %c0_182 = arith.constant 0 : index
    %c0_183 = arith.constant 0 : index
    %c0_184 = arith.constant 0 : index
    %403 = vector.load %arg3[%c0_182, %c0_183, %c0_184] : memref<2x16x16xbf16, #tpu.memory_space<vmem>>, vector<1x16x16xbf16>
    %404 = vector.shape_cast %403 : vector<1x16x16xbf16> to vector<16x16xbf16>
    %405 = arith.truncf %396 : vector<16x128xf32> to vector<16x128xbf16>
    %cst_185 = arith.constant dense<0.000000e+00> : vector<16x128xf32>
    %406 = tpu.matmul %404, %405, %cst_185 {dimension_numbers = #tpu.dot_dimension_numbers<[1], [0], [0], [1], [0, 0, 1, 1], [], []>} : vector<16x16xbf16>, vector<16x128xbf16>, vector<16x128xf32> -> vector<16x128xf32>
    %407 = vector.extract_strided_slice %406 {offsets = [0, 0], sizes = [16, 32], strides = [1, 1]} : vector<16x128xf32> to vector<16x32xf32>
    %408 = vector.extract_strided_slice %406 {offsets = [0, 32], sizes = [16, 32], strides = [1, 1]} : vector<16x128xf32> to vector<16x32xf32>
    %409 = vector.extract_strided_slice %406 {offsets = [0, 64], sizes = [16, 32], strides = [1, 1]} : vector<16x128xf32> to vector<16x32xf32>
    %410 = vector.extract_strided_slice %406 {offsets = [0, 96], sizes = [16, 32], strides = [1, 1]} : vector<16x128xf32> to vector<16x32xf32>
    %411 = tpu.concatenate %407, %408, %409, %410 in 0 : vector<16x32xf32>, vector<16x32xf32>, vector<16x32xf32>, vector<16x32xf32> -> vector<64x32xf32>
    %412 = arith.truncf %411 : vector<64x32xf32> to vector<64x32xbf16>
    %c1_186 = arith.constant 1 : index
    %c0_187 = arith.constant 0 : index
    %c0_188 = arith.constant 0 : index
    %413 = vector.load %arg10[%c1_186, %c0_187, %c0_188] : memref<5x32x128xbf16, #tpu.memory_space<vmem>>, vector<1x32x128xbf16>
    %414 = vector.shape_cast %413 : vector<1x32x128xbf16> to vector<32x128xbf16>
    %cst_189 = arith.constant dense<0.000000e+00> : vector<64x128xf32>
    %415 = tpu.matmul %412, %414, %cst_189 {dimension_numbers = #tpu.dot_dimension_numbers<[1], [0], [0], [1], [0, 0, 1, 1], [], []>} : vector<64x32xbf16>, vector<32x128xbf16>, vector<64x128xf32> -> vector<64x128xf32>
    %416 = arith.addf %402, %415 : vector<64x128xf32>
    %417 = arith.truncf %406 : vector<16x128xf32> to vector<16x128xbf16>
    %cst_190 = arith.constant dense<0.000000e+00> : vector<16x128xf32>
    %418 = tpu.matmul %404, %417, %cst_190 {dimension_numbers = #tpu.dot_dimension_numbers<[1], [0], [0], [1], [0, 0, 1, 1], [], []>} : vector<16x16xbf16>, vector<16x128xbf16>, vector<16x128xf32> -> vector<16x128xf32>
    %cst_191 = arith.constant 2.000000e+00 : f32
    %419 = vector.broadcast %cst_191 : f32 to vector<16x128xf32>
    %420 = arith.mulf %419, %418 : vector<16x128xf32>
    %421 = arith.subf %420, %396 : vector<16x128xf32>
    %422 = vector.extract_strided_slice %421 {offsets = [0, 0], sizes = [16, 32], strides = [1, 1]} : vector<16x128xf32> to vector<16x32xf32>
    %423 = vector.extract_strided_slice %421 {offsets = [0, 32], sizes = [16, 32], strides = [1, 1]} : vector<16x128xf32> to vector<16x32xf32>
    %424 = vector.extract_strided_slice %421 {offsets = [0, 64], sizes = [16, 32], strides = [1, 1]} : vector<16x128xf32> to vector<16x32xf32>
    %425 = vector.extract_strided_slice %421 {offsets = [0, 96], sizes = [16, 32], strides = [1, 1]} : vector<16x128xf32> to vector<16x32xf32>
    %426 = tpu.concatenate %422, %423, %424, %425 in 0 : vector<16x32xf32>, vector<16x32xf32>, vector<16x32xf32>, vector<16x32xf32> -> vector<64x32xf32>
    %427 = arith.truncf %426 : vector<64x32xf32> to vector<64x32xbf16>
    %c2_192 = arith.constant 2 : index
    %c0_193 = arith.constant 0 : index
    %c0_194 = arith.constant 0 : index
    %428 = vector.load %arg10[%c2_192, %c0_193, %c0_194] : memref<5x32x128xbf16, #tpu.memory_space<vmem>>, vector<1x32x128xbf16>
    %429 = vector.shape_cast %428 : vector<1x32x128xbf16> to vector<32x128xbf16>
    %cst_195 = arith.constant dense<0.000000e+00> : vector<64x128xf32>
    %430 = tpu.matmul %427, %429, %cst_195 {dimension_numbers = #tpu.dot_dimension_numbers<[1], [0], [0], [1], [0, 0, 1, 1], [], []>} : vector<64x32xbf16>, vector<32x128xbf16>, vector<64x128xf32> -> vector<64x128xf32>
    %431 = arith.addf %416, %430 : vector<64x128xf32>
    %c1_196 = arith.constant 1 : index
    %c0_197 = arith.constant 0 : index
    %c0_198 = arith.constant 0 : index
    %432 = vector.load %arg3[%c1_196, %c0_197, %c0_198] : memref<2x16x16xbf16, #tpu.memory_space<vmem>>, vector<1x16x16xbf16>
    %433 = vector.shape_cast %432 : vector<1x16x16xbf16> to vector<16x16xbf16>
    %434 = arith.truncf %396 : vector<16x128xf32> to vector<16x128xbf16>
    %cst_199 = arith.constant dense<0.000000e+00> : vector<16x128xf32>
    %435 = tpu.matmul %433, %434, %cst_199 {dimension_numbers = #tpu.dot_dimension_numbers<[1], [0], [0], [1], [0, 0, 1, 1], [], []>} : vector<16x16xbf16>, vector<16x128xbf16>, vector<16x128xf32> -> vector<16x128xf32>
    %436 = vector.extract_strided_slice %435 {offsets = [0, 0], sizes = [16, 32], strides = [1, 1]} : vector<16x128xf32> to vector<16x32xf32>
    %437 = vector.extract_strided_slice %435 {offsets = [0, 32], sizes = [16, 32], strides = [1, 1]} : vector<16x128xf32> to vector<16x32xf32>
    %438 = vector.extract_strided_slice %435 {offsets = [0, 64], sizes = [16, 32], strides = [1, 1]} : vector<16x128xf32> to vector<16x32xf32>
    %439 = vector.extract_strided_slice %435 {offsets = [0, 96], sizes = [16, 32], strides = [1, 1]} : vector<16x128xf32> to vector<16x32xf32>
    %440 = tpu.concatenate %436, %437, %438, %439 in 0 : vector<16x32xf32>, vector<16x32xf32>, vector<16x32xf32>, vector<16x32xf32> -> vector<64x32xf32>
    %441 = arith.truncf %440 : vector<64x32xf32> to vector<64x32xbf16>
    %c3_200 = arith.constant 3 : index
    %c0_201 = arith.constant 0 : index
    %c0_202 = arith.constant 0 : index
    %442 = vector.load %arg10[%c3_200, %c0_201, %c0_202] : memref<5x32x128xbf16, #tpu.memory_space<vmem>>, vector<1x32x128xbf16>
    %443 = vector.shape_cast %442 : vector<1x32x128xbf16> to vector<32x128xbf16>
    %cst_203 = arith.constant dense<0.000000e+00> : vector<64x128xf32>
    %444 = tpu.matmul %441, %443, %cst_203 {dimension_numbers = #tpu.dot_dimension_numbers<[1], [0], [0], [1], [0, 0, 1, 1], [], []>} : vector<64x32xbf16>, vector<32x128xbf16>, vector<64x128xf32> -> vector<64x128xf32>
    %445 = arith.addf %431, %444 : vector<64x128xf32>
    %446 = arith.truncf %435 : vector<16x128xf32> to vector<16x128xbf16>
    %cst_204 = arith.constant dense<0.000000e+00> : vector<16x128xf32>
    %447 = tpu.matmul %433, %446, %cst_204 {dimension_numbers = #tpu.dot_dimension_numbers<[1], [0], [0], [1], [0, 0, 1, 1], [], []>} : vector<16x16xbf16>, vector<16x128xbf16>, vector<16x128xf32> -> vector<16x128xf32>
    %cst_205 = arith.constant 2.000000e+00 : f32
    %448 = vector.broadcast %cst_205 : f32 to vector<16x128xf32>
    %449 = arith.mulf %448, %447 : vector<16x128xf32>
    %450 = arith.subf %449, %396 : vector<16x128xf32>
    %451 = vector.extract_strided_slice %450 {offsets = [0, 0], sizes = [16, 32], strides = [1, 1]} : vector<16x128xf32> to vector<16x32xf32>
    %452 = vector.extract_strided_slice %450 {offsets = [0, 32], sizes = [16, 32], strides = [1, 1]} : vector<16x128xf32> to vector<16x32xf32>
    %453 = vector.extract_strided_slice %450 {offsets = [0, 64], sizes = [16, 32], strides = [1, 1]} : vector<16x128xf32> to vector<16x32xf32>
    %454 = vector.extract_strided_slice %450 {offsets = [0, 96], sizes = [16, 32], strides = [1, 1]} : vector<16x128xf32> to vector<16x32xf32>
    %455 = tpu.concatenate %451, %452, %453, %454 in 0 : vector<16x32xf32>, vector<16x32xf32>, vector<16x32xf32>, vector<16x32xf32> -> vector<64x32xf32>
    %456 = arith.truncf %455 : vector<64x32xf32> to vector<64x32xbf16>
    %c4_206 = arith.constant 4 : index
    %c0_207 = arith.constant 0 : index
    %c0_208 = arith.constant 0 : index
    %457 = vector.load %arg10[%c4_206, %c0_207, %c0_208] : memref<5x32x128xbf16, #tpu.memory_space<vmem>>, vector<1x32x128xbf16>
    %458 = vector.shape_cast %457 : vector<1x32x128xbf16> to vector<32x128xbf16>
    %cst_209 = arith.constant dense<0.000000e+00> : vector<64x128xf32>
    %459 = tpu.matmul %456, %458, %cst_209 {dimension_numbers = #tpu.dot_dimension_numbers<[1], [0], [0], [1], [0, 0, 1, 1], [], []>} : vector<64x32xbf16>, vector<32x128xbf16>, vector<64x128xf32> -> vector<64x128xf32>
    %460 = arith.addf %445, %459 : vector<64x128xf32>
    %461 = vector.extract_strided_slice %378 {offsets = [0, 256], sizes = [64, 32], strides = [1, 1]} : vector<64x384xf32> to vector<64x32xf32>
    %462 = vector.extract_strided_slice %460 {offsets = [0, 0], sizes = [64, 32], strides = [1, 1]} : vector<64x128xf32> to vector<64x32xf32>
    %463 = arith.addf %461, %462 : vector<64x32xf32>
    %464 = math.tanh %463 : vector<64x32xf32>
    %465 = arith.mulf %390, %248 : vector<64x32xf32>
    %cst_210 = arith.constant 1.000000e+00 : f32
    %466 = vector.broadcast %cst_210 : f32 to vector<64x32xf32>
    %467 = arith.subf %466, %390 : vector<64x32xf32>
    %468 = arith.mulf %467, %464 : vector<64x32xf32>
    %469 = arith.addf %465, %468 : vector<64x32xf32>
    %470 = vector.extract_strided_slice %469 {offsets = [0, 0], sizes = [16, 32], strides = [1, 1]} : vector<64x32xf32> to vector<16x32xf32>
    %471 = vector.extract_strided_slice %469 {offsets = [16, 0], sizes = [16, 32], strides = [1, 1]} : vector<64x32xf32> to vector<16x32xf32>
    %472 = vector.extract_strided_slice %469 {offsets = [32, 0], sizes = [16, 32], strides = [1, 1]} : vector<64x32xf32> to vector<16x32xf32>
    %473 = vector.extract_strided_slice %469 {offsets = [48, 0], sizes = [16, 32], strides = [1, 1]} : vector<64x32xf32> to vector<16x32xf32>
    %474 = tpu.concatenate %470, %471, %472, %473 in 1 : vector<16x32xf32>, vector<16x32xf32>, vector<16x32xf32>, vector<16x32xf32> -> vector<16x128xf32>
    %c1_211 = arith.constant 1 : index
    %c0_212 = arith.constant 0 : index
    %c0_213 = arith.constant 0 : index
    %475 = vector.load %arg12[%c1_211, %c0_212, %c0_213] : memref<2x16x128xf32, #tpu.memory_space<vmem>>, vector<1x16x128xf32>
    %476 = vector.shape_cast %475 : vector<1x16x128xf32> to vector<16x128xf32>
    %477 = vector.shape_cast %474 : vector<16x128xf32> to vector<1x16x128xf32>
    tpu.vector_store %arg12[%c1_211, %c0_212, %c0_213], %477 {strides = array<i32>} : memref<2x16x128xf32, #tpu.memory_space<vmem>>, vector<1x16x128xf32>,
    return
  }
  func.func @transform_0(%arg0: i32) -> (i32, i32) {
    %c0_i32 = arith.constant 0 : i32
    %c0_i32_0 = arith.constant 0 : i32
    return %c0_i32, %arg0 : i32, i32
  }
  func.func @transform_1(%arg0: i32) -> (i32, i32, i32) {
    %c0_i32 = arith.constant 0 : i32
    %c0_i32_0 = arith.constant 0 : i32
    %c0_i32_1 = arith.constant 0 : i32
    return %c0_i32, %c0_i32_0, %arg0 : i32, i32, i32
  }
  func.func @transform_2(%arg0: i32) -> (i32, i32, i32) {
    %c0_i32 = arith.constant 0 : i32
    %c0_i32_0 = arith.constant 0 : i32
    %c0_i32_1 = arith.constant 0 : i32
    %c0_i32_2 = arith.constant 0 : i32
    return %c0_i32, %c0_i32_0, %c0_i32_1 : i32, i32, i32
  }
  func.func @transform_3(%arg0: i32) -> (i32, i32, i32) {
    %c0_i32 = arith.constant 0 : i32
    %c0_i32_0 = arith.constant 0 : i32
    %c0_i32_1 = arith.constant 0 : i32
    %c0_i32_2 = arith.constant 0 : i32
    return %c0_i32, %c0_i32_0, %c0_i32_1 : i32, i32, i32
  }
  func.func @transform_4(%arg0: i32) -> (i32, i32, i32) {
    %c0_i32 = arith.constant 0 : i32
    %c0_i32_0 = arith.constant 0 : i32
    %c0_i32_1 = arith.constant 0 : i32
    %c0_i32_2 = arith.constant 0 : i32
    return %c0_i32, %c0_i32_0, %c0_i32_1 : i32, i32, i32
  }
  func.func @transform_5(%arg0: i32) -> (i32, i32, i32) {
    %c0_i32 = arith.constant 0 : i32
    %c0_i32_0 = arith.constant 0 : i32
    %c0_i32_1 = arith.constant 0 : i32
    %c0_i32_2 = arith.constant 0 : i32
    return %c0_i32, %c0_i32_0, %c0_i32_1 : i32, i32, i32
  }
  func.func @transform_6(%arg0: i32) -> (i32, i32) {
    %c0_i32 = arith.constant 0 : i32
    %c0_i32_0 = arith.constant 0 : i32
    %c0_i32_1 = arith.constant 0 : i32
    return %c0_i32, %c0_i32_0 : i32, i32
  }
  func.func @transform_7(%arg0: i32) -> (i32, i32, i32) {
    %c0_i32 = arith.constant 0 : i32
    %c0_i32_0 = arith.constant 0 : i32
    %c0_i32_1 = arith.constant 0 : i32
    %c0_i32_2 = arith.constant 0 : i32
    return %c0_i32, %c0_i32_0, %c0_i32_1 : i32, i32, i32
  }
  func.func @transform_8(%arg0: i32) -> (i32, i32, i32) {
    %c0_i32 = arith.constant 0 : i32
    %c0_i32_0 = arith.constant 0 : i32
    %c0_i32_1 = arith.constant 0 : i32
    %c0_i32_2 = arith.constant 0 : i32
    return %c0_i32, %c0_i32_0, %c0_i32_1 : i32, i32, i32
  }
  func.func @transform_9(%arg0: i32) -> (i32, i32, i32) {
    %c0_i32 = arith.constant 0 : i32
    %c0_i32_0 = arith.constant 0 : i32
    %c0_i32_1 = arith.constant 0 : i32
    %c0_i32_2 = arith.constant 0 : i32
    return %c0_i32, %c0_i32_0, %c0_i32_1 : i32, i32, i32
  }
  func.func @transform_10(%arg0: i32) -> (i32, i32) {
    %c0_i32 = arith.constant 0 : i32
    %c0_i32_0 = arith.constant 0 : i32
    %c0_i32_1 = arith.constant 0 : i32
    return %c0_i32, %c0_i32_0 : i32, i32
  }
  func.func @transform_11(%arg0: i32) -> (i32, i32, i32) {
    %c0_i32 = arith.constant 0 : i32
    %c0_i32_0 = arith.constant 0 : i32
    %c0_i32_1 = arith.constant 0 : i32
    return %c0_i32, %c0_i32_0, %arg0 : i32, i32, i32
  }
}

</mosaic_0001>

<bundles_post_ra>
// kernel: tpu_custom_call.1
= control target key start
LH: loop header
LB: loop body
LE: loop exit
PB: predicated region body
PF: predicated region fallthrough
CT: control target
= control target key end

     0   :  { %s12294_s0 = inlined_call_operand.vmem [shape: f32[16,256], index: 0, kind: input, shape index: {}]   ;;  %s12295_s1 = inlined_call_operand.hbm [shape: f32[2,16,256], index: 1, kind: input, shape index: {}, may-alias: {1,11}]   ;;  %s12296_s2 = inlined_call_operand.vmem [shape: bf16[2,16,16], index: 2, kind: input, shape index: {}]   ;;  %s12297_s3 = inlined_call_operand.hbm [shape: bf16[5,32,384], index: 3, kind: input, shape index: {}]   ;;  %s12298_s4 = inlined_call_operand.hbm [shape: bf16[5,32,384], index: 4, kind: input, shape index: {}]   ;;  %s12299_s5 = inlined_call_operand.vmem [shape: bf16[5,32,128], index: 5, kind: input, shape index: {}]   ;;  %s12300_s6 = inlined_call_operand.vmem [shape: f32[1,384], index: 6, kind: input, shape index: {}]   ;;  %s12301_s7 = inlined_call_operand.hbm [shape: bf16[5,32,384], index: 7, kind: input, shape index: {}]   ;;  %s12302_s8 = inlined_call_operand.hbm [shape: bf16[5,32,384], index: 8, kind: input, shape index: {}]   ;;  %s12303_s9 = inlined_call_operand.hbm [shape: bf16[5,32,128], index: 9, kind: input, shape index: {}]   ;;  %s12304_s10 = inlined_call_operand.vmem [shape: f32[1,384], index: 10, kind: input, shape index: {}]   ;;  %s12305_s11 = inlined_call_operand.hbm [shape: f32[2,16,256], index: 11, kind: output, shape index: {}, may-alias: {1,11}]  }
   0x1   :  { %12319 = sst [smem:[#allocation25_spill]] %s12297_s3 }
   0x2   :  { %12320 = sst [smem:[#allocation26_spill]] %s12299_s5 }
   0x3   :  { %12321 = sst [smem:[#allocation27_spill]] %s12300_s6 }
   0x4   :  { %12322 = sst [smem:[#allocation28_spill]] %s12304_s10 }
   0x5   :  { %12323 = sst [smem:[#allocation29_spill]] %s12305_s11 }
   0x6   :  { %16 = vsyncpa [#allocation4], 0 }
   0x7   :  { %18 = vsyncpa [#allocation4 + $0x1], 0 }
   0x8   :  { %19 = vsyncpa [#allocation7], 0 }
   0x9   :  { %20 = vsyncpa [#allocation10], 0 }
   0xa   :  { %21 = vsyncpa [#allocation13], 0 }
   0xb   :  { %22 = vsyncpa [#allocation5], 0 }
   0xc   :  { %24 = vsyncpa [#allocation5 + $0x1], 0  ;;  %s11007_s17 = smov 0   ;;  %s11009_s18 = smov 0  }
   0xd   :  { %s11011_s19 = smov 0   ;;  %s11013_s20 = smov 0  }
   0xe LB: > { %12324 = sst [smem:[#allocation20_spill]] %s10910_s17  ;;  %s11028_s21 = sadd.s32 4294967295, %s10922_s20   ;;  %s10922_s20 = sphi %s11013_s20, %s12356_s20   ;;  %s10918_s19 = sphi %s11011_s19, %s12360_s19   ;;  %s10914_s18 = sphi %s11009_s18, %s12359_s18   ;;  %s10910_s17 = sphi %s11007_s17, %s12358_s17  }
   0xf   : > { %s8132_s22 = sadd.s32 4294967294, %s10922_s20   ;;  %s11032_s23 = sadd.s32 1, %s10922_s20  }
  0x10   : > { %12325 = sst [smem:[#allocation21_spill]] %s11032_s23  ;;  %s37_s24 = sadd.s32 1, %s10918_s19 }
  0x11   : > { %s34_s25 = ssub.s32 %s10922_s20, %s11032_s23  ;;  %p44_p0 = scmp.ne.s32.totalorder %s10918_s19, %s10914_s18 }
  0x12   : > { %p35_p1 = scmp.eq.s32.totalorder %s34_s25, 0  ;;  %p45_p2 = scmp.eq.s32.totalorder %s10922_s20, 0 }
  0x13   : > { %p76_p3 = scmp.ne.s32.totalorder %s10914_s18, %s10910_s17  ;;  %p12310_p4 = scmp.eq.s32.totalorder %s11028_s21, 0 }
  0x14   : > { %s11044_s26 = scalar_select %p35_p1, %s10918_s19, %s37_s24  }
  0x15   : > { %p11046_p5 = por %p45_p2, %p44_p0  ;;  %p11052_p6 = por %p12310_p4, %p76_p3 }
  0x16   : > { %12326 = sst [smem:[#allocation22_spill]] %s11044_s26  ;;  %p289_p7 = scmp.eq.s32.totalorder %s11028_s21, 1 }
  0x17   : > { %s12327_s27 = scalar_select %p11046_p5, 1, 0 }
  0x18   : > { %s12328_s28 = scalar_select %p11052_p6, 1, 0 }
  0x19   : > { %p295_p8 = scmp.eq.s32.totalorder %s8132_s22, 1  ;;  %p8133_p9 = scmp.ge.s32.totalorder %s10922_s20, 1 }
  0x1a   : > { %p302_p10 = scmp.lt.s32.totalorder %s10922_s20, 3  ;;  %p11059_p11 = por %p289_p7, %p44_p0 }
  0x1b   : > { %p11063_p12 = por %p295_p8, %p76_p3  ;;  %s10924_s13 = smov [#allocation6]  }
  0x1c   : > { %s12329_s29 = scalar_select %p11059_p11, 1, 0 }
  0x1d   : > { %s12331_s30 = scalar_select %p11063_p12, 1, 0 }
  0x1e   : > { %12330 = sst [smem:[#allocation23_spill]] %s12329_s29  ;;  %p11067_p13 = pnand %p8133_p9, %p302_p10 }
  0x1f   : > { %12332 = sst [smem:[#allocation24_spill]] %s12331_s30  ;;  %s317_s14 = sshll.u32 %s10924_s13, 4  ;;  %s318_s14 = int_to_ptr.vmem [resolvable:$true] %s317_s14 }
  0x20   : > { %s12333_s12 = scalar_select %p11067_p13, 1, 0 }
  0x21   : > { %p9865_p1 = pneg %p11067_p13  ;;  %s10925_s16 = smov [#allocation9]  }
  0x22   : > { %s349_s22 = sshll.u32 %s10925_s16, 4  ;;  %s12335_s3 = sld [smem:[#allocation25_spill]]  ;;  %s11079_s22 = int_to_ptr.vmem [resolvable:$true] %s349_s22 }
  0x23   : > { %p11075_p2 = pnand %p9865_p1, %p12310_p4 }
  0x25   : > { %p11089_p3 = pneg %p11075_p2 }
  0x28   : > { %s10676_s26 = scalar_lea.hbm %s12335_s3, 3840 }
  0x29   : > { %p10677_p0 = scmp.ne.s32.totalorder %s12335_s3, %s10676_s26  ;;  %p10683_p9 = scmp.lt.u32.totalorder %s10676_s26, %s12335_s3 }
  0x2b   : > { %p10679_p7 = pnand %p11089_p3, %p10677_p0 }
  0x2d   : > { %p10680_p8 = pneg %p10679_p7 }
  0x2f   : > { %p10685_p10 = pnand %p10683_p9, %p10680_p8 }
  0x31   : > { %10688 = shalt.err (!%p10685_p10)
}
  0x32   : > { %s10689_s24 = scalar_lea.vmem %s318_s14, 3840  ;;  %p10697_p11 = scmp.lt.s32.totalorder %s318_s14, %s318_s14 }
  0x33   : > { %p10690_p1 = scmp.ne.s32.totalorder %s318_s14, %s10689_s24  ;;  %p10698_p6 = scmp.lt.s32.totalorder %s10689_s24, %s10689_s24 }
  0x35   : > { %p10692_p4 = pnand %p10690_p1, %p11089_p3  ;;  %p10699_p13 = por %p10698_p6, %p10697_p11 }
  0x37   : > { %p10693_p12 = pneg %p10692_p4 }
  0x39   : > { %p10700_p5 = pnand %p10699_p13, %p10693_p12 }
  0x3b   : > { %10703 = shalt.err (!%p10700_p5)
}
  0x3c   : > { %s10926_s23 = smov 192   ;;  %s10927_s30 = smov 12  }
  0x3d   : > { %9868 = dma.hbm_to_vmem [thread:$0]  (!%p11075_p2), %s12335_s3, 3840, %s318_s14, [#allocation7], %s10926_s23, %s10926_s23, %s10927_s30  }
  0x3e   : > { %s10704_s11 = scalar_lea.hbm %s12301_s7, 3840 }
  0x3f   : > { %p10705_p4 = scmp.ne.s32.totalorder %s12301_s7, %s10704_s11  ;;  %p10711_p11 = scmp.lt.u32.totalorder %s10704_s11, %s12301_s7 }
  0x41   : > { %p10707_p5 = pnand %p10705_p4, %p11089_p3 }
  0x43   : > { %p10708_p6 = pneg %p10707_p5 }
  0x45   : > { %p10713_p12 = pnand %p10711_p11, %p10708_p6 }
  0x47   : > { %10716 = shalt.err (!%p10713_p12)
}
  0x48   : > { %s10717_s14 = scalar_lea.vmem %s11079_s22, 3840  ;;  %p10725_p8 = scmp.lt.s32.totalorder %s11079_s22, %s11079_s22 }
  0x49   : > { %p10718_p13 = scmp.ne.s32.totalorder %s11079_s22, %s10717_s14  ;;  %p10726_p9 = scmp.lt.s32.totalorder %s10717_s14, %s10717_s14 }
  0x4b   : > { %p10720_p0 = pnand %p10718_p13, %p11089_p3  ;;  %p10727_p10 = por %p10726_p9, %p10725_p8 }
  0x4d   : > { %p10721_p7 = pneg %p10720_p0 }
  0x4f   : > { %p10728_p1 = pnand %p10727_p10, %p10721_p7 }
  0x51   : > { %10731 = shalt.err (!%p10728_p1)
}
  0x52   : > { %9874 = dma.hbm_to_vmem [thread:$0]  (!%p11075_p2), %s12301_s7, 3840, %s11079_s22, [#allocation10], %s10926_s23, %s10926_s23, %s10927_s30  }
  0x53   : > { %s10928_s11 = smov [#allocation8]   ;;  %s10929_s17 = smov [#allocation11]  }
  0x54   : > { %s330_s29 = sshll.u32 %s10928_s11, 4  ;;  %s362_s26 = sshll.u32 %s10929_s17, 4  ;;  %s331_s29 = int_to_ptr.vmem [resolvable:$true] %s330_s29  ;;  %s363_s26 = int_to_ptr.vmem [resolvable:$true] %s362_s26 }
  0x55   : > { %s10732_s24 = scalar_lea.hbm %s12298_s4, 3840 }
  0x56   : > { %p10733_p4 = scmp.ne.s32.totalorder %s12298_s4, %s10732_s24  ;;  %p10739_p11 = scmp.lt.u32.totalorder %s10732_s24, %s12298_s4 }
  0x58   : > { %p10735_p5 = pnand %p10733_p4, %p11089_p3 }
  0x5a   : > { %p10736_p6 = pneg %p10735_p5 }
  0x5c   : > { %p10741_p12 = pnand %p10739_p11, %p10736_p6 }
  0x5e   : > { %10744 = shalt.err (!%p10741_p12)
}
  0x5f   : > { %s10745_s22 = scalar_lea.vmem %s331_s29, 3840  ;;  %p10753_p8 = scmp.lt.s32.totalorder %s331_s29, %s331_s29 }
  0x60   : > { %p10746_p13 = scmp.ne.s32.totalorder %s331_s29, %s10745_s22  ;;  %p10754_p9 = scmp.lt.s32.totalorder %s10745_s22, %s10745_s22 }
  0x62   : > { %p10748_p0 = pnand %p10746_p13, %p11089_p3  ;;  %p10755_p10 = por %p10754_p9, %p10753_p8 }
  0x64   : > { %p10749_p7 = pneg %p10748_p0 }
  0x66   : > { %p10756_p1 = pnand %p10755_p10, %p10749_p7 }
  0x68   : > { %10759 = shalt.err (!%p10756_p1)
}
  0x69   : > { %9871 = dma.hbm_to_vmem [thread:$0]  (!%p11075_p2), %s12298_s4, 3840, %s331_s29, [#allocation7], %s10926_s23, %s10926_s23, %s10927_s30  }
  0x6a   : > { %s10760_s17 = scalar_lea.hbm %s12302_s8, 3840 }
  0x6b   : > { %p10761_p4 = scmp.ne.s32.totalorder %s12302_s8, %s10760_s17  ;;  %p10767_p11 = scmp.lt.u32.totalorder %s10760_s17, %s12302_s8 }
  0x6d   : > { %p10763_p5 = pnand %p10761_p4, %p11089_p3 }
  0x6f   : > { %p10764_p6 = pneg %p10763_p5 }
  0x71   : > { %p10769_p12 = pnand %p10767_p11, %p10764_p6 }
  0x73   : > { %10772 = shalt.err (!%p10769_p12)
}
  0x74   : > { %s10773_s5 = scalar_lea.vmem %s363_s26, 3840  ;;  %p10781_p8 = scmp.lt.s32.totalorder %s363_s26, %s363_s26 }
  0x75   : > { %p10774_p13 = scmp.ne.s32.totalorder %s363_s26, %s10773_s5  ;;  %p10782_p9 = scmp.lt.s32.totalorder %s10773_s5, %s10773_s5 }
  0x77   : > { %p10776_p0 = pnand %p10774_p13, %p11089_p3  ;;  %p10783_p10 = por %p10782_p9, %p10781_p8 }
  0x79   : > { %p10777_p7 = pneg %p10776_p0 }
  0x7b   : > { %p10784_p1 = pnand %p10783_p10, %p10777_p7 }
  0x7d   : > { %10787 = shalt.err (!%p10784_p1)
}
  0x7e   : > { %9877 = dma.hbm_to_vmem [thread:$0]  (!%p11075_p2), %s12302_s8, 3840, %s363_s26, [#allocation10], %s10926_s23, %s10926_s23, %s10927_s30  }
  0x7f   : > { %s10930_s3 = smov [#allocation12]   ;;  %s10788_s17 = scalar_lea.hbm %s12303_s9, 1280 }
  0x80   : > { %s375_s6 = sshll.u32 %s10930_s3, 4  ;;  %p10789_p4 = scmp.ne.s32.totalorder %s12303_s9, %s10788_s17  ;;  %s376_s6 = int_to_ptr.vmem [resolvable:$true] %s375_s6 }
  0x81   : > { %p10795_p11 = scmp.lt.u32.totalorder %s10788_s17, %s12303_s9 }
  0x82   : > { %p10791_p5 = pnand %p10789_p4, %p11089_p3 }
  0x84   : > { %p10792_p6 = pneg %p10791_p5 }
  0x86   : > { %p10797_p12 = pnand %p10795_p11, %p10792_p6 }
  0x88   : > { %10800 = shalt.err (!%p10797_p12)
}
  0x89   : > { %s10801_s23 = scalar_lea.vmem %s376_s6, 1280  ;;  %p10809_p8 = scmp.lt.s32.totalorder %s376_s6, %s376_s6 }
  0x8a   : > { %p10802_p13 = scmp.ne.s32.totalorder %s376_s6, %s10801_s23  ;;  %p10810_p9 = scmp.lt.s32.totalorder %s10801_s23, %s10801_s23 }
  0x8c   : > { %p10804_p0 = pnand %p10802_p13, %p11089_p3  ;;  %p10811_p10 = por %p10810_p9, %p10809_p8 }
  0x8e   : > { %p10805_p7 = pneg %p10804_p0 }
  0x90   : > { %p10812_p1 = pnand %p10811_p10, %p10805_p7 }
  0x92   : > { %10815 = shalt.err (!%p10812_p1)
}
  0x93   : > { %s10931_s30 = smov 64   ;;  %s10932_s26 = smov 4  }
  0x94   : > { %9880 = dma.hbm_to_vmem [thread:$0]  (!%p11075_p2), %s12303_s9, 1280, %s376_s6, [#allocation13], %s10931_s30, %s10931_s30, %s10932_s26  }
  0x95   : > { %p8139_p4 = scmp.ge.s32.totalorder %s10922_s20, 2 }
  0x96   : > { %p12337_p3 = scmp.ne.s32.totalorder (!%p8139_p4), %s12327_s27, 0 }
  0x97   : > { %388 = sbr.rel (%p8139_p4) target bundleno = 193 (0xc1), region = 52 }
  0x9e   : > { %391 = sbr.rel (!%p12337_p3) target bundleno = 165 (0xa5), region = 56  ;;  %s393_s13 = sand.u32 (%p12337_p3), 1, %s10918_s19  }
  0x9f   : > { %s8141_s22 = sshll.u32 (%p12337_p3), %s10922_s20, 3  ;;  %s8140_s3 = sshll.u32 (%p12337_p3), %s393_s13, 4 }
  0xa0   : > { %s397_s15 = scalar_lea.vmem (%p12337_p3), %s12294_s0, %s8141_s22  ;;  %s395_s6 = scalar_lea.vmem (%p12337_p3), [#allocation2], %s8140_s3 }
  0xa1   : > { %v427_v0 = vld [vmem:[%s397_s15] sm:$0xff] (%p12337_p3)  ;;  %v429_v1 = vld [vmem:[%s397_s15 + $0x10] sm:$0xff] (%p12337_p3) }
  0xa2   : > { %428 = vst [vmem:[%s395_s6] sm:$0xff] (%p12337_p3), %v427_v0  ;;  %430 = vst [vmem:[%s395_s6 + $0x8] sm:$0xff] (%p12337_p3), %v429_v1 }
  0xa5 PF: > { %s437_s17 = sand.u32 1, %s10918_s19   ;;  %s8143_s25 = sshll.u32 %s10922_s20, 7 }
  0xa6   : > { %s8142_s16 = sshll.u32 %s437_s17, 5  ;;  %s11209_s23 = scalar_lea.hbm %s12295_s1, %s8143_s25 }
  0xa7   : > { %s441_s30 = scalar_lea.vmem [#allocation3], %s8142_s16  ;;  %s11213_s5 = scalar_lea.sflag [#allocation4], %s437_s17 }
  0xa8   : > { %s447_s26 = sshll.u32 %s441_s30, 4  ;;  %s10816_s29 = scalar_lea.hbm %s11209_s23, 512  ;;  %s11211_s26 = int_to_ptr.vmem [resolvable:$true] %s447_s26 }
  0xa9   : > { %p10817_p2 = scmp.ne.s32.totalorder %s11209_s23, %s10816_s29  ;;  %p12338_p5 = scmp.ne.s32.totalorder %s12327_s27, 0 }
  0xaa   : > { %s10820_s3 = scalar_lea.hbm %s12295_s1, 1024  ;;  %p10821_p12 = scmp.lt.u32.totalorder %s11209_s23, %s12295_s1 }
  0xab   : > { %p10818_p6 = pnand %p10817_p2, %p12338_p5  ;;  %p10822_p13 = scmp.lt.u32.totalorder %s10820_s3, %s10816_s29 }
  0xac   : > { %p10824_p7 = scmp.lt.u32.totalorder %s10816_s29, %s11209_s23 }
  0xad   : > { %p10819_p11 = pneg %p10818_p6  ;;  %p10823_p0 = por %p10822_p13, %p10821_p12 }
  0xaf   : > { %p10825_p8 = por %p10824_p7, %p10823_p0 }
  0xb1   : > { %p10826_p9 = pnand %p10825_p8, %p10819_p11 }
  0xb3   : > { %10829 = shalt.err (!%p10826_p9)
}
  0xb4   : > { %s10830_s15 = scalar_lea.vmem %s11211_s26, 512  ;;  %s10933_s6 = smov [#allocation3]  }
  0xb5   : > { %p10831_p10 = scmp.ne.s32.totalorder %s11211_s26, %s10830_s15  ;;  %s10834_s17 = sshll.u32 %s10933_s6, 4  ;;  %s10835_s17 = int_to_ptr.vmem [resolvable:$false] %s10834_s17 }
  0xb6   : > { %s10836_s25 = scalar_lea.vmem %s10835_s17, 1024  ;;  %p10837_p2 = scmp.lt.s32.totalorder %s11211_s26, %s10835_s17 }
  0xb7   : > { %p10832_p1 = pnand %p10831_p10, %p12338_p5  ;;  %p10838_p6 = scmp.lt.s32.totalorder %s10836_s25, %s10830_s15 }
  0xb9   : > { %p10833_p3 = pneg %p10832_p1  ;;  %p10839_p12 = por %p10838_p6, %p10837_p2 }
  0xbb   : > { %p10840_p13 = pnand %p10839_p12, %p10833_p3 }
  0xbd   : > { %10843 = shalt.err (!%p10840_p13)
}
  0xbe   : > { %s10934_s16 = smov 256   ;;  %s10935_s24 = smov 128  }
  0xbf   : > { %s10936_s14 = smov 8  }
  0xc0   : > { %9851 = dma.hbm_to_vmem [thread:$0]  (%p12338_p5), %s11209_s23, 512, %s11211_s26, %s11213_s5, %s10934_s16, %s10935_s24, %s10936_s14  }
  0xc1 PF: > { %p12339_p11 = scmp.ne.s32.totalorder %s12333_s12, 0 }
  0xc2   : > { %s11240_s30 = sand.u32 (!%p12339_p11), 1, %s10914_s18   ;;  %p12340_p5 = scmp.ne.s32.totalorder (!%p12339_p11), %s12328_s28, 0 }
  0xc3   : > { %459 = sbr.rel (%p12339_p11) target bundleno = 10225 (0x27f1), region = 98  ;;  %s8145_s29 = sshll.u32 (!%p12339_p11), %s11240_s30, 4 }
  0xc4   : > { %s8146_s13 = sshll.u32 (!%p12339_p11), %s11240_s30, 5  ;;  %s464_s22 = scalar_lea.vmem (!%p12339_p11), [#allocation2], %s8145_s29 }
  0xc5   : > { %s469_s3 = scalar_lea.sflag (!%p12339_p11), [#allocation4], %s11240_s30  ;;  %s11247_s10 = scalar_lea.vmem (!%p12339_p11), [#allocation3], %s8146_s13 }
  0xca   : > { %10889 = dma.done.wait (%p12340_p5), %s469_s3, 512  }
  0xcb   : > { %10891 = vsyncadd (%p12340_p5), %s469_s3, 4294966784  ;;  %p12341_p0 = scmp.eq.s32.totalorder %s11028_s21, 0 }
  0xcd   : > { %10893 = dma.done.wait (%p12341_p0), [#allocation7], 7680   ;;  %p12342_p7 = pmov %p12341_p0 }
  0xce   : > { %p12343_p8 = pmov %p12341_p0 }
  0xcf   : > { %10895 = vsyncadd (%p12342_p7), [#allocation7], 4294959616 }
  0xd0   : > { %10897 = dma.done.wait (%p12343_p8), [#allocation10], 7680   ;;  %p12344_p9 = pmov %p12341_p0 }
  0xd1   : > { %p12345_p10 = pmov %p12341_p0 }
  0xd2   : > { %10899 = vsyncadd (%p12344_p9), [#allocation10], 4294959616 }
  0xd3   : > { %10901 = dma.done.wait (%p12345_p10), [#allocation13], 1280   ;;  %p12346_p1 = pmov %p12341_p0 }
  0xd4   : > { %v10937_v2 = vmov 0.0   ;;  %vm10938_vm0 = vmmov 0   ;;  %v11268_v3 = vld [vmem:[%s464_s22] sm:$0xff]  ;;  %v11270_v4 = vld [vmem:[%s464_s22 + $0x8] sm:$0xff]  ;;  %vm599_vm1 = vcmask 130048   ;;  %v10939_v11 = vmov 0  }
  0xd5   : > { %10903 = vsyncadd (%p12346_p1), [#allocation13], 4294966016  ;;  %8809 = vmatprep.subr.bf16.mxu1 %v10937_v2  ;;  %8811 = vmatprep.mubr.msk.bf16.mxu1 %vm10938_vm0, %v10937_v2  ;;  %v11274_v5 = vpack.c.bf16 %v11270_v4, %v11268_v3  ;;  %v11279_v6 = vld [vmem:[%s12296_s2] sm:$0xff]   ;;  %v10325_v7 = vld [vmem:[#allocation6 + $0x30] ss:$12 sps:$4 sm:$0xff]   ;;  %vm709_vm2 = vcmask 261120   ;;  %v9964_v21 = vpack.i.bf16 %v11270_v4, %v11268_v3 }
  0xd6   : > { %v10327_v8 = vld [vmem:[#allocation6 + $0x34] ss:$12 sps:$4 sm:$0xff]   ;;  %v10330_v9 = vld [vmem:[#allocation6 + $0x4c] ss:$12 sps:$4 sm:$0xff]   ;;  %v10332_v13 = vld [vmem:[#allocation6 + $0x50] ss:$12 sps:$4 sm:$0xff]  }
  0xd7   : > { %8810 = vmatpush3.bf16.msra.mxu1 %v11274_v5  ;;  %v10328_v10 = vld [vmem:[#allocation6 + $0x48] ss:$12 sps:$4 sm:$0xff]   ;;  %v10331_v12 = vld [vmem:[#allocation6 + $0x38] ss:$12 sps:$4 sm:$0xff]   ;;  %s10940_s12 = smov 32   ;;  %s10941_s23 = smov 96  }
  0xd8   : > { %722 = vmatprep.subr.bf16.mxu1 %v10327_v8  ;;  %8815 = vmatprep.subr.bf16.mxu0 %v10331_v12  ;;  %v10333_v15 = vld [vmem:[#allocation6 + $0x8] ss:$12 sps:$4 sm:$0xff]   ;;  %s10942_s26 = smov 64   ;;  %v10337_v22 = vld [vmem:[#allocation6 + $0x4] ss:$12 sps:$4 sm:$0xff]   ;;  %s12347_s16 = sld [smem:[#allocation27_spill]] }
  0xd9   : > { %8816 = vmatpush3.bf16.msra.mxu0 %v10331_v12  ;;  %v10335_v23 = vld [vmem:[#allocation6] ss:$12 sps:$4 sm:$0xff]   ;;  %v10340_v24 = vld [vmem:[#allocation6 + $0x1c] ss:$12 sps:$4 sm:$0xff]   ;;  %v10338_v25 = vld [vmem:[#allocation6 + $0x18] ss:$12 sps:$4 sm:$0xff]  }
  0xda   : > { %8812 = vmatmul.mubr.msk.bf16.vlgmr.msra.gmra.mrb[0].mxu1 %vm599_vm1, %v11279_v6  ;;  %8817 = vmatprep.subr.bf16.mxu0 %v10332_v13  ;;  %v10334_v30 = vld [vmem:[#allocation6 + $0x20] ss:$12 sps:$4 sm:$0xff]   ;;  %v10343_v51 = vld [vmem:[#allocation6 + $0x64] ss:$12 sps:$4 sm:$0xff]   ;;  %v10346_v53 = vld [vmem:[#allocation6 + $0x7c] ss:$12 sps:$4 sm:$0xff]  }
  0xdb   : > { %723 = vmatpush1.bf16.msra.mxu1 %v10325_v7  ;;  %754 = vmatprep.mubr.bf16.mxu1 %v10939_v11  ;;  %v10341_v52 = vld [vmem:[#allocation6 + $0x60] ss:$12 sps:$4 sm:$0xff]   ;;  %v10344_v54 = vld [vmem:[#allocation6 + $0x78] ss:$12 sps:$4 sm:$0xff]   ;;  %v10347_v55 = vld [vmem:[#allocation6 + $0x68] ss:$12 sps:$4 sm:$0xff]  }
  0xdc   : > { %724 = vmatprep.subr.bf16.mxu1 %v10330_v9  ;;  %v10348_v56 = vld [vmem:[#allocation6 + $0x80] ss:$12 sps:$4 sm:$0xff]   ;;  %v10350_v7 = vld [vmem:[#allocation6 + $0x90] ss:$12 sps:$4 sm:$0xff]   ;;  %vm3418_vm3 = vcmask 523264   ;;  %vm3421_vm4 = vcmask 785408  }
  0xdd   : > { %8818 = vmatpush3.bf16.msra.mxu0 %v10332_v13  ;;  %v10352_v8 = vld [vmem:[#allocation6 + $0x94] ss:$12 sps:$4 sm:$0xff]   ;;  %s12348_s29 = sld [smem:[#allocation26_spill]]  ;;  %s11780_s6 = scalar_lea.vmem [#allocation14], %s8146_s13 }
  0xde   : > { %8827 = vmatprep.subr.bf16.mxu0 %v10333_v15  ;;  %s12349_s22 = sld [smem:[#allocation28_spill]]  ;;  %s12350_s11 = sld [smem:[#allocation23_spill]] }
  0xdf   : > { %725 = vmatpush1.bf16.msra.mxu1 %v10328_v10  ;;  %s12351_s15 = sld [smem:[#allocation29_spill]]  ;;  %s10943_s13 = smov [#allocation14]  }
  0xe0   : > { %904 = vmatprep.subr.bf16.mxu1 %v10337_v22  ;;  %v11346_v22 = vld [vmem:[%s12296_s2 + $0x8] sm:$0xff]  }
  0xe4   : > { %p12352_p2 = scmp.ne.s32.totalorder %s12350_s11, 0 }
 0x1ad   : > { %v637_v14 = vpop.f32.mrb[0].mxu1 }
 0x1ae   : > { %v8813_v16 = vpop.f32.mrb[1].mxu1 }
 0x1af   : > { %v640_v17 = vpop.f32.mrb[2].mxu1 }
 0x1b0   : > { %v664_v18 = vpack.c.bf16 %v640_v17, %v637_v14  ;;  %v8814_v19 = vpop.f32.mrb[3].mxu1  ;;  %v9959_v20 = vpack.i.bf16 %v640_v17, %v637_v14 }
 0x1b2   : > { %9960 = vrot.lane.b32.xlu1 %v9959_v20, %s10940_s12  ;;  %9950 = vrot.lane.b32.xlu0 %v9959_v20, %s10941_s23 }
 0x1b3   : > { %8161 = vmatmul.mubr.msk.bf16.vlgmr.msra.gmra.mrb[4].mxu1 %vm709_vm2, %v664_v18  ;;  %8819 = vmatprep.mubr.msk.bf16.mxu0 %vm709_vm2, %v664_v18 }
 0x1b4   : > { %764 = vmatprep.mubr.bf16.mxu1 %v10939_v11  ;;  %905 = vmatpush1.bf16.msra.mxu1 %v10335_v23  ;;  %v10353_v23 = vld [vmem:[#allocation6 + $0xa8] ss:$12 sps:$4 sm:$0xff]  }
 0x1b5   : > { %906 = vmatprep.subr.bf16.mxu1 %v10340_v24  ;;  %v10356_v24 = vld [vmem:[#allocation6 + $0x98] ss:$12 sps:$4 sm:$0xff]  }
 0x1b6   : > { %9955 = vrot.lane.b32.xlu0 %v9959_v20, %s10942_s26  ;;  %9965 = vrot.lane.b32.xlu1 %v9964_v21, %s10941_s23 }
 0x1b8   : > { %907 = vmatpush1.bf16.msra.mxu1 %v10338_v25  ;;  %v10357_v25 = vld [vmem:[#allocation6 + $0xb0] ss:$12 sps:$4 sm:$0xff]  }
 0x1b9   : > { %1164 = vmatprep.subr.bf16.mxu1 %v10343_v51 }
 0x1ba   : > { %9970 = vrot.lane.b32.xlu0 %v9964_v21, %s10942_s26  ;;  %9975 = vrot.lane.b32.xlu1 %v9964_v21, %s10940_s12 }
 0x224   : > { %v9951_v26 = vpop.permute.xlu0 %9950  ;;  %v9961_v31 = vpop.permute.xlu1 %9960 }
 0x225   : > { %v9953_v27 = vunpack.i.h.bf16 %v9951_v26  ;;  %v9952_v28 = vunpack.i.l.bf16 %v9951_v26  ;;  %v9963_v35 = vunpack.i.h.bf16 %v9961_v31  ;;  %v9962_v36 = vunpack.i.l.bf16 %v9961_v31 }
 0x227   : > { %v665_v29 = vpack.c.bf16 %v9953_v27, %v9952_v28  ;;  %v667_v39 = vpack.c.bf16 %v9963_v35, %v9962_v36 }
 0x228   : > { %v9956_v32 = vpop.permute.xlu0 %9955  ;;  %v9966_v38 = vpop.permute.xlu1 %9965 }
 0x229   : > { %v9958_v33 = vunpack.i.h.bf16 %v9956_v32  ;;  %v9957_v34 = vunpack.i.l.bf16 %v9956_v32  ;;  %8162 = vmatmul.mubr.msk.bf16.gmra.mrb[8].mxu1 %vm709_vm2, %v665_v29  ;;  %8820 = vmatmul.mubr.msk.bf16.vlgmr.msra.gmra.mrb[0].mxu0 %vm709_vm2, %v665_v29  ;;  %v9968_v41 = vunpack.i.h.bf16 %v9966_v38  ;;  %v9967_v42 = vunpack.i.l.bf16 %v9966_v38 }
 0x22a   : > { %774 = vmatprep.mubr.bf16.mxu1 %v10939_v11  ;;  %8828 = vmatpush3.bf16.msra.mxu0 %v10333_v15 }
 0x22b   : > { %v666_v37 = vpack.c.bf16 %v9958_v33, %v9957_v34  ;;  %8829 = vmatprep.subr.bf16.mxu0 %v10334_v30  ;;  %v581_v45 = vpack.c.bf16 %v9968_v41, %v9967_v42 }
 0x22c   : > { %v9971_v40 = vpop.permute.xlu0 %9970  ;;  %v9976_v46 = vpop.permute.xlu1 %9975 }
 0x22d   : > { %8823 = vmatprep.mubr.msk.bf16.mxu0 %vm709_vm2, %v666_v37  ;;  %v9973_v43 = vunpack.i.h.bf16 %v9971_v40  ;;  %v9972_v44 = vunpack.i.l.bf16 %v9971_v40  ;;  %v9978_v48 = vunpack.i.h.bf16 %v9976_v46  ;;  %v9977_v49 = vunpack.i.l.bf16 %v9976_v46  ;;  %v10363_v46 = vld [vmem:[#allocation6 + $0xdc] ss:$12 sps:$4 sm:$0xff]  }
 0x22e   : > { %8830 = vmatpush3.bf16.msra.mxu0 %v10334_v30 }
 0x22f   : > { %8839 = vmatprep.subr.bf16.mxu0 %v10937_v2  ;;  %v582_v47 = vpack.c.bf16 %v9973_v43, %v9972_v44  ;;  %v583_v50 = vpack.c.bf16 %v9978_v48, %v9977_v49  ;;  %v10360_v44 = vld [vmem:[#allocation6 + $0xc4] ss:$12 sps:$4 sm:$0xff]   ;;  %v10364_v48 = vld [vmem:[#allocation6 + $0xc8] ss:$12 sps:$4 sm:$0xff]   ;;  %v10365_v49 = vld [vmem:[#allocation6 + $0xe0] ss:$12 sps:$4 sm:$0xff]  }
 0x231   : > { %8163 = vmatmul.mubr.msk.bf16.gmra.mrb[12].mxu1 %vm709_vm2, %v666_v37  ;;  %8824 = vmatmul.mubr.msk.bf16.gmra.mrb[4].mxu0 %vm709_vm2, %v667_v39 }
 0x232   : > { %784 = vmatprep.mubr.bf16.mxu1 %v10939_v11  ;;  %8831 = vmatprep.mubr.msk.bf16.mxu0 %vm709_vm2, %v11274_v5 }
 0x239   : > { %8164 = vmatmul.mubr.msk.bf16.gmra.mrb[16].mxu1 %vm709_vm2, %v667_v39  ;;  %8832 = vmatmul.mubr.msk.bf16.vlgmr.msra.gmra.mrb[0].mxu0 %vm709_vm2, %v581_v45 }
 0x23a   : > { %8840 = vmatpush3.bf16.msra.mxu0 %v664_v18  ;;  %936 = vmatprep.mubr.bf16.mxu1 %v10939_v11 }
 0x23b   : > { %8835 = vmatprep.mubr.msk.bf16.mxu0 %vm709_vm2, %v582_v47  ;;  %8845 = vmatprep.subr.bf16.mxu0 %v10347_v55 }
 0x241   : > { %8175 = vmatmul.mubr.msk.bf16.vlgmr.msra.gmra.mrb[4].mxu1 %vm709_vm2, %v11274_v5  ;;  %8836 = vmatmul.mubr.msk.bf16.gmra.mrb[4].mxu0 %vm709_vm2, %v583_v50 }
 0x242   : > { %946 = vmatprep.mubr.bf16.mxu1 %v10939_v11  ;;  %8841 = vmatprep.mubr.msk.bf16.mxu0 %vm10938_vm0, %v10937_v2 }
 0x243   : > { %1165 = vmatpush1.bf16.msra.mxu1 %v10341_v52 }
 0x244   : > { %1166 = vmatprep.subr.bf16.mxu1 %v10346_v53 }
 0x247   : > { %1167 = vmatpush1.bf16.msra.mxu1 %v10344_v54 }
 0x248   : > { %1455 = vmatprep.subr.bf16.mxu1 %v10352_v8 }
 0x249   : > { %8176 = vmatmul.mubr.msk.bf16.gmra.mrb[8].mxu1 %vm709_vm2, %v581_v45  ;;  %8842 = vmatmul.mubr.msk.bf16.vlgmr.msra.gmra.mrb[8].mxu0 %vm599_vm1, %v11279_v6  ;;  %v10358_v45 = vld [vmem:[#allocation6 + $0xc0] ss:$12 sps:$4 sm:$0xff]  }
 0x24a   : > { %956 = vmatprep.mubr.bf16.mxu1 %v10939_v11  ;;  %8846 = vmatpush3.bf16.msra.mxu0 %v10347_v55 }
 0x24b   : > { %8847 = vmatprep.subr.bf16.mxu0 %v10348_v56 }
 0x24e   : > { %8848 = vmatpush3.bf16.msra.mxu0 %v10348_v56 }
 0x24f   : > { %8857 = vmatprep.subr.bf16.mxu0 %v10937_v2 }
 0x251   : > { %8177 = vmatmul.mubr.msk.bf16.gmra.mrb[12].mxu1 %vm709_vm2, %v582_v47  ;;  %v10361_v47 = vld [vmem:[#allocation6 + $0xd8] ss:$12 sps:$4 sm:$0xff]  }
 0x252   : > { %966 = vmatprep.mubr.bf16.mxu1 %v10939_v11 }
 0x259   : > { %8178 = vmatmul.mubr.msk.bf16.gmra.mrb[16].mxu1 %vm709_vm2, %v583_v50 }
 0x25a   : > { %1196 = vmatprep.mubr.bf16.mxu1 %v10939_v11 }
 0x31c   : > { %v1076_v57 = vpop.f32.mrb[8].mxu0 }
 0x31d   : > { %v1083_v58 = vmul.f32 2.0, %v1076_v57  ;;  %v8843_v59 = vpop.f32.mrb[9].mxu0 }
 0x31e   : > { %v1079_v60 = vpop.f32.mrb[10].mxu0 }
 0x31f   : > { %v1084_v61 = vmul.f32 2.0, %v1079_v60  ;;  %v8844_v62 = vpop.f32.mrb[11].mxu0  ;;  %v1085_v63 = vsub.f32 %v1083_v58, %v11268_v3  ;;  %v10366_v60 = vld [vmem:[#allocation8 + $0x8] ss:$12 sps:$4 sm:$0xff]  }
 0x320   : > { %v10368_v62 = vld [vmem:[#allocation8] ss:$12 sps:$4 sm:$0xff]  }
 0x321   : > { %v1086_v0 = vsub.f32 %v1084_v61, %v11270_v4  ;;  %v11379_v61 = vld [vmem:[%s11247_s10] sm:$0xff] }
 0x323   : > { %v1107_v1 = vpack.c.bf16 %v1086_v0, %v1085_v63  ;;  %v9984_v6 = vpack.i.bf16 %v1086_v0, %v1085_v63  ;;  %v10373_v63 = vld [vmem:[#allocation8 + $0x1c] ss:$12 sps:$4 sm:$0xff]   ;;  %v10371_v0 = vld [vmem:[#allocation8 + $0x18] ss:$12 sps:$4 sm:$0xff]  }
 0x325   : > { %9985 = vrot.lane.b32.xlu1 %v9984_v6, %s10942_s26  ;;  %9980 = vrot.lane.b32.xlu0 %v9984_v6, %s10941_s23 }
 0x326   : > { %8190 = vmatmul.mubr.msk.bf16.vlgmr.msra.gmra.mrb[4].mxu1 %vm709_vm2, %v1107_v1  ;;  %8849 = vmatprep.mubr.msk.bf16.mxu0 %vm709_vm2, %v1107_v1  ;;  %v10376_v1 = vld [vmem:[#allocation8 + $0x34] ss:$12 sps:$4 sm:$0xff]  }
 0x327   : > { %1206 = vmatprep.mubr.bf16.mxu1 %v10939_v11  ;;  %1456 = vmatpush1.bf16.msra.mxu1 %v10350_v7 }
 0x329   : > { %9990 = vrot.lane.b32.xlu0 %v9984_v6, %s10940_s12 }
 0x397   : > { %v9986_v9 = vpop.permute.xlu1 %9985  ;;  %v9981_v10 = vpop.permute.xlu0 %9980 }
 0x398   : > { %v9988_v12 = vunpack.i.h.bf16 %v9986_v9  ;;  %v9987_v13 = vunpack.i.l.bf16 %v9986_v9  ;;  %v9983_v14 = vunpack.i.h.bf16 %v9981_v10  ;;  %v9982_v15 = vunpack.i.l.bf16 %v9981_v10 }
 0x39a   : > { %v1109_v16 = vpack.c.bf16 %v9988_v12, %v9987_v13  ;;  %v1108_v17 = vpack.c.bf16 %v9983_v14, %v9982_v15 }
 0x39b   : > { %v9991_v18 = vpop.permute.xlu0 %9990 }
 0x39c   : > { %8191 = vmatmul.mubr.msk.bf16.gmra.mrb[8].mxu1 %vm709_vm2, %v1108_v17  ;;  %8850 = vmatmul.mubr.msk.bf16.vlgmr.msra.gmra.mrb[0].mxu0 %vm709_vm2, %v1108_v17  ;;  %v9993_v19 = vunpack.i.h.bf16 %v9991_v18  ;;  %v9992_v20 = vunpack.i.l.bf16 %v9991_v18 }
 0x39d   : > { %8853 = vmatprep.mubr.msk.bf16.mxu0 %vm709_vm2, %v1109_v16  ;;  %1216 = vmatprep.mubr.bf16.mxu1 %v10939_v11 }
 0x39e   : > { %8858 = vmatpush3.bf16.msra.mxu0 %v11274_v5  ;;  %v1110_v21 = vpack.c.bf16 %v9993_v19, %v9992_v20  ;;  %v10355_v5 = vld [vmem:[#allocation6 + $0xac] ss:$12 sps:$4 sm:$0xff]  }
 0x39f   : > { %1457 = vmatprep.subr.bf16.mxu1 %v10355_v5  ;;  %8863 = vmatprep.subr.bf16.mxu0 %v10356_v24 }
 0x3a0   : > { %1458 = vmatpush1.bf16.msra.mxu1 %v10353_v23 }
 0x3a1   : > { %1739 = vmatprep.subr.bf16.mxu1 %v10360_v44 }
 0x3a4   : > { %8192 = vmatmul.mubr.msk.bf16.gmra.mrb[12].mxu1 %vm709_vm2, %v1109_v16  ;;  %8854 = vmatmul.mubr.msk.bf16.gmra.mrb[4].mxu0 %vm709_vm2, %v1110_v21  ;;  %v10367_v16 = vld [vmem:[#allocation8 + $0x20] ss:$12 sps:$4 sm:$0xff]  }
 0x3a5   : > { %1226 = vmatprep.mubr.bf16.mxu1 %v10939_v11  ;;  %8859 = vmatprep.mubr.msk.bf16.mxu0 %vm10938_vm0, %v10937_v2 }
 0x3ac   : > { %8193 = vmatmul.mubr.msk.bf16.gmra.mrb[16].mxu1 %vm709_vm2, %v1110_v21  ;;  %8860 = vmatmul.mubr.msk.bf16.vlgmr.msra.gmra.mrb[12].mxu0 %vm599_vm1, %v11346_v22 }
 0x3ad   : > { %1487 = vmatprep.mubr.bf16.mxu1 %v10939_v11  ;;  %8864 = vmatpush3.bf16.msra.mxu0 %v10356_v24 }
 0x3ae   : > { %8865 = vmatprep.subr.bf16.mxu0 %v10357_v25 }
 0x3b1   : > { %8866 = vmatpush3.bf16.msra.mxu0 %v10357_v25 }
 0x3b2   : > { %8875 = vmatprep.subr.bf16.mxu0 %v10937_v2 }
 0x47f   : > { %v1371_v26 = vpop.f32.mrb[12].mxu0 }
 0x480   : > { %v8861_v27 = vpop.f32.mrb[13].mxu0 }
 0x481   : > { %v1374_v28 = vpop.f32.mrb[14].mxu0 }
 0x482   : > { %v1398_v29 = vpack.c.bf16 %v1374_v28, %v1371_v26  ;;  %v8862_v30 = vpop.f32.mrb[15].mxu0  ;;  %v9999_v31 = vpack.i.bf16 %v1374_v28, %v1371_v26 }
 0x483   : > { %v10374_v30 = vld [vmem:[#allocation8 + $0x30] ss:$12 sps:$4 sm:$0xff]  }
 0x484   : > { %10000 = vrot.lane.b32.xlu0 %v9999_v31, %s10942_s26  ;;  %9995 = vrot.lane.b32.xlu1 %v9999_v31, %s10941_s23 }
 0x485   : > { %8208 = vmatmul.mubr.msk.bf16.vlgmr.msra.gmra.mrb[4].mxu1 %vm709_vm2, %v1398_v29  ;;  %8867 = vmatprep.mubr.msk.bf16.mxu0 %vm709_vm2, %v1398_v29 }
 0x486   : > { %1497 = vmatprep.mubr.bf16.mxu1 %v10939_v11  ;;  %1740 = vmatpush1.bf16.msra.mxu1 %v10358_v45 }
 0x487   : > { %1741 = vmatprep.subr.bf16.mxu1 %v10363_v46 }
 0x488   : > { %10005 = vrot.lane.b32.xlu1 %v9999_v31, %s10940_s12  ;;  %v11445_v31 = vld [vmem:[%s12296_s2] sm:$0xff]  }
 0x48a   : > { %1742 = vmatpush1.bf16.msra.mxu1 %v10361_v47 }
 0x4f6   : > { %v10001_v32 = vpop.permute.xlu0 %10000  ;;  %v9996_v33 = vpop.permute.xlu1 %9995 }
 0x4f7   : > { %v10003_v34 = vunpack.i.h.bf16 %v10001_v32  ;;  %v10002_v35 = vunpack.i.l.bf16 %v10001_v32  ;;  %v9998_v36 = vunpack.i.h.bf16 %v9996_v33  ;;  %v9997_v37 = vunpack.i.l.bf16 %v9996_v33  ;;  %v10379_v32 = vld [vmem:[#allocation8 + $0x4c] ss:$12 sps:$4 sm:$0xff]   ;;  %v10377_v33 = vld [vmem:[#allocation8 + $0x48] ss:$12 sps:$4 sm:$0xff]  }
 0x4f9   : > { %v1400_v38 = vpack.c.bf16 %v10003_v34, %v10002_v35  ;;  %v1399_v39 = vpack.c.bf16 %v9998_v36, %v9997_v37  ;;  %v10380_v34 = vld [vmem:[#allocation8 + $0x38] ss:$12 sps:$4 sm:$0xff]   ;;  %v10381_v35 = vld [vmem:[#allocation8 + $0x50] ss:$12 sps:$4 sm:$0xff]  }
 0x4fa   : > { %v10006_v40 = vpop.permute.xlu1 %10005 }
 0x4fb   : > { %8209 = vmatmul.mubr.msk.bf16.gmra.mrb[8].mxu1 %vm709_vm2, %v1399_v39  ;;  %8868 = vmatmul.mubr.msk.bf16.vlgmr.msra.gmra.mrb[0].mxu0 %vm709_vm2, %v1399_v39  ;;  %v10008_v41 = vunpack.i.h.bf16 %v10006_v40  ;;  %v10007_v42 = vunpack.i.l.bf16 %v10006_v40 }
 0x4fc   : > { %8876 = vmatpush3.bf16.msra.mxu0 %v1398_v29  ;;  %8871 = vmatprep.mubr.msk.bf16.mxu0 %vm709_vm2, %v1400_v38 }
 0x4fd   : > { %1507 = vmatprep.mubr.bf16.mxu1 %v10939_v11  ;;  %v1401_v43 = vpack.c.bf16 %v10008_v41, %v10007_v42  ;;  %8881 = vmatprep.subr.bf16.mxu0 %v10364_v48 }
 0x503   : > { %8210 = vmatmul.mubr.msk.bf16.gmra.mrb[12].mxu1 %vm709_vm2, %v1400_v38  ;;  %8872 = vmatmul.mubr.msk.bf16.gmra.mrb[4].mxu0 %vm709_vm2, %v1401_v43 }
 0x504   : > { %1517 = vmatprep.mubr.bf16.mxu1 %v10939_v11  ;;  %8877 = vmatprep.mubr.msk.bf16.mxu0 %vm10938_vm0, %v10937_v2 }
 0x50b   : > { %8211 = vmatmul.mubr.msk.bf16.gmra.mrb[16].mxu1 %vm709_vm2, %v1401_v43  ;;  %8878 = vmatmul.mubr.msk.bf16.vlgmr.msra.gmra.mrb[16].mxu0 %vm599_vm1, %v11346_v22 }
 0x50c   : > { %1771 = vmatprep.mubr.bf16.mxu1 %v10939_v11  ;;  %8882 = vmatpush3.bf16.msra.mxu0 %v10364_v48 }
 0x50d   : > { %8883 = vmatprep.subr.bf16.mxu0 %v10365_v49 }
 0x510   : > { %8884 = vmatpush3.bf16.msra.mxu0 %v10365_v49 }
 0x511   : > { %8893 = vmatprep.subr.bf16.mxu0 %v10366_v60 }
 0x5de   : > { %v1651_v50 = vpop.f32.mrb[16].mxu0 }
 0x5df   : > { %v1658_v51 = vmul.f32 2.0, %v1651_v50  ;;  %v8879_v52 = vpop.f32.mrb[17].mxu0 }
 0x5e0   : > { %v1654_v53 = vpop.f32.mrb[18].mxu0 }
 0x5e1   : > { %v1659_v54 = vmul.f32 2.0, %v1654_v53  ;;  %v8880_v55 = vpop.f32.mrb[19].mxu0  ;;  %v1660_v56 = vsub.f32 %v1658_v51, %v11268_v3  ;;  %v11386_v3 = vld [vmem:[%s11247_s10 + $0x8] sm:$0xff] }
 0x5e2   : > { %v11408_v21 = vpack.c.bf16 %v11386_v3, %v11379_v61  ;;  %v10382_v55 = vld [vmem:[#allocation8 + $0x60] ss:$12 sps:$4 sm:$0xff]  }
 0x5e3   : > { %v1661_v57 = vsub.f32 %v1659_v54, %v11270_v4  ;;  %v10370_v4 = vld [vmem:[#allocation8 + $0x4] ss:$12 sps:$4 sm:$0xff]  }
 0x5e4   : > { %1957 = vmatprep.subr.bf16.mxu1 %v10370_v4  ;;  %v10384_v54 = vld [vmem:[#allocation8 + $0x64] ss:$12 sps:$4 sm:$0xff]  }
 0x5e5   : > { %v1682_v58 = vpack.c.bf16 %v1661_v57, %v1660_v56  ;;  %v10014_v59 = vpack.i.bf16 %v1661_v57, %v1660_v56  ;;  %v10387_v56 = vld [vmem:[#allocation8 + $0x7c] ss:$12 sps:$4 sm:$0xff]   ;;  %v10385_v57 = vld [vmem:[#allocation8 + $0x78] ss:$12 sps:$4 sm:$0xff]  }
 0x5e7   : > { %10015 = vrot.lane.b32.xlu1 %v10014_v59, %s10942_s26  ;;  %10010 = vrot.lane.b32.xlu0 %v10014_v59, %s10941_s23 }
 0x5e8   : > { %8223 = vmatmul.mubr.msk.bf16.vlgmr.msra.gmra.mrb[4].mxu1 %vm709_vm2, %v1682_v58  ;;  %8885 = vmatprep.mubr.msk.bf16.mxu0 %vm709_vm2, %v1682_v58  ;;  %v10388_v58 = vld [vmem:[#allocation8 + $0x68] ss:$12 sps:$4 sm:$0xff]  }
 0x5e9   : > { %1781 = vmatprep.mubr.bf16.mxu1 %v10939_v11  ;;  %1958 = vmatpush1.bf16.msra.mxu1 %v10368_v62 }
 0x5ea   : > { %1959 = vmatprep.subr.bf16.mxu1 %v10373_v63 }
 0x5eb   : > { %10020 = vrot.lane.b32.xlu0 %v10014_v59, %s10940_s12  ;;  %562 = vrot.lane.b32.xlu1 %v11379_v61, %s10941_s23  ;;  %v10389_v59 = vld [vmem:[#allocation8 + $0x80] ss:$12 sps:$4 sm:$0xff]  }
 0x5ed   : > { %1960 = vmatpush1.bf16.msra.mxu1 %v10371_v0 }
 0x5ee   : > { %2237 = vmatprep.subr.bf16.mxu1 %v10376_v1 }
 0x5ef   : > { %564 = vrot.lane.b32.xlu0 %v11386_v3, %s10941_s23  ;;  %568 = vrot.lane.b32.xlu1 %v11379_v61, %s10942_s26 }
 0x5f3   : > { %570 = vrot.lane.b32.xlu0 %v11386_v3, %s10942_s26  ;;  %574 = vrot.lane.b32.xlu1 %v11379_v61, %s10940_s12 }
 0x5f7   : > { %576 = vrot.lane.b32.xlu0 %v11386_v3, %s10940_s12 }
 0x659   : > { %v10016_v6 = vpop.permute.xlu1 %10015  ;;  %v10011_v7 = vpop.permute.xlu0 %10010 }
 0x65a   : > { %v10018_v8 = vunpack.i.h.bf16 %v10016_v6  ;;  %v10017_v9 = vunpack.i.l.bf16 %v10016_v6  ;;  %v10013_v10 = vunpack.i.h.bf16 %v10011_v7  ;;  %v10012_v12 = vunpack.i.l.bf16 %v10011_v7 }
 0x65c   : > { %v1684_v13 = vpack.c.bf16 %v10018_v8, %v10017_v9  ;;  %v1683_v14 = vpack.c.bf16 %v10013_v10, %v10012_v12  ;;  %v10390_v10 = vld [vmem:[#allocation8 + $0x90] ss:$12 sps:$4 sm:$0xff]   ;;  %v10392_v12 = vld [vmem:[#allocation8 + $0x94] ss:$12 sps:$4 sm:$0xff]  }
 0x65d   : > { %v10021_v15 = vpop.permute.xlu0 %10020  ;;  %v11402_v19 = vpop.permute.xlu1 %562 }
 0x65e   : > { %8224 = vmatmul.mubr.msk.bf16.gmra.mrb[8].mxu1 %vm709_vm2, %v1683_v14  ;;  %8886 = vmatmul.mubr.msk.bf16.vlgmr.msra.gmra.mrb[0].mxu0 %vm709_vm2, %v1683_v14  ;;  %v10023_v17 = vunpack.i.h.bf16 %v10021_v15  ;;  %v10022_v18 = vunpack.i.l.bf16 %v10021_v15 }
 0x65f   : > { %8889 = vmatprep.mubr.msk.bf16.mxu0 %vm709_vm2, %v1684_v13  ;;  %1791 = vmatprep.mubr.bf16.mxu1 %v10939_v11 }
 0x660   : > { %8894 = vmatpush3.bf16.msra.mxu0 %v10366_v60  ;;  %v1685_v5 = vpack.c.bf16 %v10023_v17, %v10022_v18 }
 0x661   : > { %8895 = vmatprep.subr.bf16.mxu0 %v10367_v16  ;;  %v11404_v20 = vpop.permute.xlu0 %564  ;;  %v11416_v23 = vpop.permute.xlu1 %568 }
 0x662   : > { %v1902_v25 = vpack.c.bf16 %v11404_v20, %v11402_v19 }
 0x664   : > { %8896 = vmatpush3.bf16.msra.mxu0 %v10367_v16 }
 0x665   : > { %8905 = vmatprep.subr.bf16.mxu0 %v10937_v2  ;;  %v11418_v24 = vpop.permute.xlu0 %570  ;;  %v11427_v27 = vpop.permute.xlu1 %574 }
 0x666   : > { %8225 = vmatmul.mubr.msk.bf16.gmra.mrb[12].mxu1 %vm709_vm2, %v1684_v13  ;;  %8890 = vmatmul.mubr.msk.bf16.gmra.mrb[4].mxu0 %vm709_vm2, %v1685_v5  ;;  %v1903_v26 = vpack.c.bf16 %v11418_v24, %v11416_v23 }
 0x667   : > { %1801 = vmatprep.mubr.bf16.mxu1 %v10939_v11  ;;  %8897 = vmatprep.mubr.msk.bf16.mxu0 %vm709_vm2, %v11408_v21 }
 0x669   : > { %v11429_v28 = vpop.permute.xlu0 %576 }
 0x66a   : > { %v1904_v29 = vpack.c.bf16 %v11429_v28, %v11427_v27 }
 0x66e   : > { %8226 = vmatmul.mubr.msk.bf16.gmra.mrb[16].mxu1 %vm709_vm2, %v1685_v5  ;;  %8898 = vmatmul.mubr.msk.bf16.vlgmr.msra.gmra.mrb[0].mxu0 %vm709_vm2, %v1902_v25 }
 0x66f   : > { %8901 = vmatprep.mubr.msk.bf16.mxu0 %vm709_vm2, %v1903_v26  ;;  %1989 = vmatprep.mubr.bf16.mxu1 %v10939_v11 }
 0x670   : > { %8906 = vmatpush3.bf16.msra.mxu0 %v11408_v21 }
 0x671   : > { %8911 = vmatprep.subr.bf16.mxu0 %v10380_v34 }
 0x676   : > { %8237 = vmatmul.mubr.msk.bf16.vlgmr.msra.gmra.mrb[4].mxu1 %vm709_vm2, %v11408_v21  ;;  %8902 = vmatmul.mubr.msk.bf16.gmra.mrb[4].mxu0 %vm709_vm2, %v1904_v29 }
 0x677   : > { %1999 = vmatprep.mubr.bf16.mxu1 %v10939_v11  ;;  %8907 = vmatprep.mubr.msk.bf16.mxu0 %vm10938_vm0, %v10937_v2 }
 0x678   : > { %2238 = vmatpush1.bf16.msra.mxu1 %v10374_v30 }
 0x679   : > { %2239 = vmatprep.subr.bf16.mxu1 %v10379_v32 }
 0x67c   : > { %2240 = vmatpush1.bf16.msra.mxu1 %v10377_v33  ;;  %v10395_v33 = vld [vmem:[#allocation8 + $0xac] ss:$12 sps:$4 sm:$0xff]  }
 0x67d   : > { %2521 = vmatprep.subr.bf16.mxu1 %v10384_v54  ;;  %v10400_v54 = vld [vmem:[#allocation8 + $0xc4] ss:$12 sps:$4 sm:$0xff]  }
 0x67e   : > { %8238 = vmatmul.mubr.msk.bf16.gmra.mrb[8].mxu1 %vm709_vm2, %v1902_v25  ;;  %8908 = vmatmul.mubr.msk.bf16.vlgmr.msra.gmra.mrb[20].mxu0 %vm599_vm1, %v11445_v31 }
 0x67f   : > { %2009 = vmatprep.mubr.bf16.mxu1 %v10939_v11  ;;  %8912 = vmatpush3.bf16.msra.mxu0 %v10380_v34  ;;  %v10393_v34 = vld [vmem:[#allocation8 + $0xa8] ss:$12 sps:$4 sm:$0xff]  }
 0x680   : > { %8913 = vmatprep.subr.bf16.mxu0 %v10381_v35 }
 0x683   : > { %8914 = vmatpush3.bf16.msra.mxu0 %v10381_v35  ;;  %v10397_v35 = vld [vmem:[#allocation8 + $0xb0] ss:$12 sps:$4 sm:$0xff]  }
 0x684   : > { %8923 = vmatprep.subr.bf16.mxu0 %v10937_v2 }
 0x686   : > { %8239 = vmatmul.mubr.msk.bf16.gmra.mrb[12].mxu1 %vm709_vm2, %v1903_v26 }
 0x687   : > { %2019 = vmatprep.mubr.bf16.mxu1 %v10939_v11 }
 0x68e   : > { %8240 = vmatmul.mubr.msk.bf16.gmra.mrb[16].mxu1 %vm709_vm2, %v1904_v29 }
 0x68f   : > { %2269 = vmatprep.mubr.bf16.mxu1 %v10939_v11 }
 0x751   : > { %v2153_v36 = vpop.f32.mrb[20].mxu0 }
 0x752   : > { %v8909_v37 = vpop.f32.mrb[21].mxu0 }
 0x753   : > { %v2156_v38 = vpop.f32.mrb[22].mxu0 }
 0x754   : > { %v2180_v39 = vpack.c.bf16 %v2156_v38, %v2153_v36  ;;  %v8910_v40 = vpop.f32.mrb[23].mxu0  ;;  %v10029_v41 = vpack.i.bf16 %v2156_v38, %v2153_v36 }
 0x756   : > { %10030 = vrot.lane.b32.xlu0 %v10029_v41, %s10942_s26  ;;  %10025 = vrot.lane.b32.xlu1 %v10029_v41, %s10941_s23 }
 0x757   : > { %8252 = vmatmul.mubr.msk.bf16.vlgmr.msra.gmra.mrb[4].mxu1 %vm709_vm2, %v2180_v39  ;;  %8915 = vmatprep.mubr.msk.bf16.mxu0 %vm709_vm2, %v2180_v39 }
 0x758   : > { %2279 = vmatprep.mubr.bf16.mxu1 %v10939_v11  ;;  %2522 = vmatpush1.bf16.msra.mxu1 %v10382_v55  ;;  %v10398_v55 = vld [vmem:[#allocation8 + $0xc0] ss:$12 sps:$4 sm:$0xff]  }
 0x759   : > { %2523 = vmatprep.subr.bf16.mxu1 %v10387_v56  ;;  %v10403_v56 = vld [vmem:[#allocation8 + $0xdc] ss:$12 sps:$4 sm:$0xff]  }
 0x75a   : > { %10035 = vrot.lane.b32.xlu1 %v10029_v41, %s10940_s12 }
 0x75c   : > { %2524 = vmatpush1.bf16.msra.mxu1 %v10385_v57  ;;  %v10401_v57 = vld [vmem:[#allocation8 + $0xd8] ss:$12 sps:$4 sm:$0xff]  }
 0x75d   : > { %2801 = vmatprep.subr.bf16.mxu1 %v10392_v12 }
 0x7c8   : > { %v10031_v42 = vpop.permute.xlu0 %10030  ;;  %v10026_v43 = vpop.permute.xlu1 %10025 }
 0x7c9   : > { %v10033_v44 = vunpack.i.h.bf16 %v10031_v42  ;;  %v10032_v45 = vunpack.i.l.bf16 %v10031_v42  ;;  %v10028_v46 = vunpack.i.h.bf16 %v10026_v43  ;;  %v10027_v47 = vunpack.i.l.bf16 %v10026_v43 }
 0x7cb   : > { %v2182_v48 = vpack.c.bf16 %v10033_v44, %v10032_v45  ;;  %v2181_v49 = vpack.c.bf16 %v10028_v46, %v10027_v47 }
 0x7cc   : > { %v10036_v50 = vpop.permute.xlu1 %10035 }
 0x7cd   : > { %8253 = vmatmul.mubr.msk.bf16.gmra.mrb[8].mxu1 %vm709_vm2, %v2181_v49  ;;  %8916 = vmatmul.mubr.msk.bf16.vlgmr.msra.gmra.mrb[0].mxu0 %vm709_vm2, %v2181_v49  ;;  %v10038_v51 = vunpack.i.h.bf16 %v10036_v50  ;;  %v10037_v52 = vunpack.i.l.bf16 %v10036_v50 }
 0x7ce   : > { %8924 = vmatpush3.bf16.msra.mxu0 %v2180_v39  ;;  %8919 = vmatprep.mubr.msk.bf16.mxu0 %vm709_vm2, %v2182_v48 }
 0x7cf   : > { %2289 = vmatprep.mubr.bf16.mxu1 %v10939_v11  ;;  %v2183_v53 = vpack.c.bf16 %v10038_v51, %v10037_v52  ;;  %8929 = vmatprep.subr.bf16.mxu0 %v10388_v58 }
 0x7d5   : > { %8254 = vmatmul.mubr.msk.bf16.gmra.mrb[12].mxu1 %vm709_vm2, %v2182_v48  ;;  %8920 = vmatmul.mubr.msk.bf16.gmra.mrb[4].mxu0 %vm709_vm2, %v2183_v53 }
 0x7d6   : > { %2299 = vmatprep.mubr.bf16.mxu1 %v10939_v11  ;;  %8925 = vmatprep.mubr.msk.bf16.mxu0 %vm10938_vm0, %v10937_v2 }
 0x7dd   : > { %8255 = vmatmul.mubr.msk.bf16.gmra.mrb[16].mxu1 %vm709_vm2, %v2183_v53  ;;  %8926 = vmatmul.mubr.msk.bf16.vlgmr.msra.gmra.mrb[24].mxu0 %vm599_vm1, %v11445_v31 }
 0x7de   : > { %2553 = vmatprep.mubr.bf16.mxu1 %v10939_v11  ;;  %8930 = vmatpush3.bf16.msra.mxu0 %v10388_v58  ;;  %v10404_v58 = vld [vmem:[#allocation8 + $0xc8] ss:$12 sps:$4 sm:$0xff]  }
 0x7df   : > { %8931 = vmatprep.subr.bf16.mxu0 %v10389_v59 }
 0x7e2   : > { %8932 = vmatpush3.bf16.msra.mxu0 %v10389_v59  ;;  %v10405_v59 = vld [vmem:[#allocation8 + $0xe0] ss:$12 sps:$4 sm:$0xff]  }
 0x7e3   : > { %8941 = vmatprep.subr.bf16.mxu0 %v10937_v2 }
 0x8b0   : > { %v2433_v60 = vpop.f32.mrb[24].mxu0 }
 0x8b1   : > { %v2440_v4 = vmul.f32 2.0, %v2433_v60  ;;  %v8927_v62 = vpop.f32.mrb[25].mxu0 }
 0x8b2   : > { %v2436_v63 = vpop.f32.mrb[26].mxu0 }
 0x8b3   : > { %v2441_v0 = vmul.f32 2.0, %v2436_v63  ;;  %v8928_v1 = vpop.f32.mrb[27].mxu0  ;;  %v2442_v6 = vsub.f32 %v2440_v4, %v11379_v61 }
 0x8b5   : > { %v2443_v7 = vsub.f32 %v2441_v0, %v11386_v3 }
 0x8b7   : > { %v2464_v8 = vpack.c.bf16 %v2443_v7, %v2442_v6  ;;  %v10044_v9 = vpack.i.bf16 %v2443_v7, %v2442_v6 }
 0x8b9   : > { %10045 = vrot.lane.b32.xlu1 %v10044_v9, %s10942_s26  ;;  %10040 = vrot.lane.b32.xlu0 %v10044_v9, %s10941_s23 }
 0x8ba   : > { %8267 = vmatmul.mubr.msk.bf16.vlgmr.msra.gmra.mrb[4].mxu1 %vm709_vm2, %v2464_v8  ;;  %8933 = vmatprep.mubr.msk.bf16.mxu0 %vm709_vm2, %v2464_v8 }
 0x8bb   : > { %2563 = vmatprep.mubr.bf16.mxu1 %v10939_v11  ;;  %2802 = vmatpush1.bf16.msra.mxu1 %v10390_v10 }
 0x8bc   : > { %2803 = vmatprep.subr.bf16.mxu1 %v10395_v33 }
 0x8bd   : > { %10050 = vrot.lane.b32.xlu0 %v10044_v9, %s10940_s12 }
 0x8bf   : > { %2804 = vmatpush1.bf16.msra.mxu1 %v10393_v34  ;;  %v3249_v34 = vlaneseq }
 0x8c0   : > { %3085 = vmatprep.subr.bf16.mxu1 %v10400_v54 }
 0x92b   : > { %v10046_v13 = vpop.permute.xlu1 %10045  ;;  %v10041_v14 = vpop.permute.xlu0 %10040 }
 0x92c   : > { %v10048_v15 = vunpack.i.h.bf16 %v10046_v13  ;;  %v10047_v16 = vunpack.i.l.bf16 %v10046_v13  ;;  %v10043_v17 = vunpack.i.h.bf16 %v10041_v14  ;;  %v10042_v18 = vunpack.i.l.bf16 %v10041_v14 }
 0x92e   : > { %v2466_v5 = vpack.c.bf16 %v10048_v15, %v10047_v16  ;;  %v2465_v25 = vpack.c.bf16 %v10043_v17, %v10042_v18 }
 0x92f   : > { %v10051_v26 = vpop.permute.xlu0 %10050 }
 0x930   : > { %8268 = vmatmul.mubr.msk.bf16.gmra.mrb[8].mxu1 %vm709_vm2, %v2465_v25  ;;  %8934 = vmatmul.mubr.msk.bf16.vlgmr.msra.gmra.mrb[0].mxu0 %vm709_vm2, %v2465_v25  ;;  %v10053_v29 = vunpack.i.h.bf16 %v10051_v26  ;;  %v10052_v30 = vunpack.i.l.bf16 %v10051_v26 }
 0x931   : > { %8937 = vmatprep.mubr.msk.bf16.mxu0 %vm709_vm2, %v2466_v5  ;;  %2573 = vmatprep.mubr.bf16.mxu1 %v10939_v11 }
 0x932   : > { %8942 = vmatpush3.bf16.msra.mxu0 %v11408_v21  ;;  %v2467_v32 = vpack.c.bf16 %v10053_v29, %v10052_v30  ;;  %v10396_v21 = vld [vmem:[#allocation8 + $0x98] ss:$12 sps:$4 sm:$0xff]  }
 0x933   : > { %8947 = vmatprep.subr.bf16.mxu0 %v10396_v21 }
 0x938   : > { %8269 = vmatmul.mubr.msk.bf16.gmra.mrb[12].mxu1 %vm709_vm2, %v2466_v5  ;;  %8938 = vmatmul.mubr.msk.bf16.gmra.mrb[4].mxu0 %vm709_vm2, %v2467_v32 }
 0x939   : > { %2583 = vmatprep.mubr.bf16.mxu1 %v10939_v11  ;;  %8943 = vmatprep.mubr.msk.bf16.mxu0 %vm10938_vm0, %v10937_v2 }
 0x940   : > { %8270 = vmatmul.mubr.msk.bf16.gmra.mrb[16].mxu1 %vm709_vm2, %v2467_v32  ;;  %8944 = vmatmul.mubr.msk.bf16.vlgmr.msra.gmra.mrb[28].mxu0 %vm599_vm1, %v11346_v22 }
 0x941   : > { %2833 = vmatprep.mubr.bf16.mxu1 %v10939_v11  ;;  %8948 = vmatpush3.bf16.msra.mxu0 %v10396_v21  ;;  %v11547_v21 = vshrl.u32 %v3249_v34, 7 }
 0x942   : > { %8949 = vmatprep.subr.bf16.mxu0 %v10397_v35 }
 0x945   : > { %8950 = vmatpush3.bf16.msra.mxu0 %v10397_v35  ;;  %v3251_v35 = vsub.s32 0, %v11547_v21 }
 0x946   : > { %8959 = vmatprep.subr.bf16.mxu0 %v10937_v2 }
 0xa13   : > { %v2717_v36 = vpop.f32.mrb[28].mxu0 }
 0xa14   : > { %v8945_v37 = vpop.f32.mrb[29].mxu0 }
 0xa15   : > { %v2720_v38 = vpop.f32.mrb[30].mxu0 }
 0xa16   : > { %v2744_v39 = vpack.c.bf16 %v2720_v38, %v2717_v36  ;;  %v8946_v40 = vpop.f32.mrb[31].mxu0  ;;  %v10059_v41 = vpack.i.bf16 %v2720_v38, %v2717_v36  ;;  %v11553_v36 = vld [vmem:[%s12347_s16] sm:$0x7]  ;;  %s10848_s16 = sshll.u32 %s10943_s13, 4  ;;  %s10849_s16 = int_to_ptr.vmem [resolvable:$false] %s10848_s16 }
 0xa17   : > { %v11558_v37 = vrot.slane %v11553_v36, %v3251_v35  ;;  %s10850_s24 = scalar_lea.vmem %s10849_s16, 1024 }
 0xa18   : > { %10060 = vrot.lane.b32.xlu0 %v10059_v41, %s10942_s26  ;;  %10055 = vrot.lane.b32.xlu1 %v10059_v41, %s10941_s23 }
 0xa19   : > { %8282 = vmatmul.mubr.msk.bf16.vlgmr.msra.gmra.mrb[4].mxu1 %vm709_vm2, %v2744_v39  ;;  %8951 = vmatprep.mubr.msk.bf16.mxu0 %vm709_vm2, %v2744_v39 }
 0xa1a   : > { %2843 = vmatprep.mubr.bf16.mxu1 %v10939_v11  ;;  %3086 = vmatpush1.bf16.msra.mxu1 %v10398_v55 }
 0xa1b   : > { %3087 = vmatprep.subr.bf16.mxu1 %v10403_v56 }
 0xa1c   : > { %10065 = vrot.lane.b32.xlu1 %v10059_v41, %s10940_s12 }
 0xa1e   : > { %3088 = vmatpush1.bf16.msra.mxu1 %v10401_v57 }
 0xa1f   : > { %9061 = vmatprep.subr.bf16.mxu1 %v10937_v2 }
 0xa8a   : > { %v10061_v42 = vpop.permute.xlu0 %10060  ;;  %v10056_v43 = vpop.permute.xlu1 %10055 }
 0xa8b   : > { %v10063_v44 = vunpack.i.h.bf16 %v10061_v42  ;;  %v10062_v45 = vunpack.i.l.bf16 %v10061_v42  ;;  %v10058_v46 = vunpack.i.h.bf16 %v10056_v43  ;;  %v10057_v47 = vunpack.i.l.bf16 %v10056_v43 }
 0xa8d   : > { %v2746_v48 = vpack.c.bf16 %v10063_v44, %v10062_v45  ;;  %v2745_v49 = vpack.c.bf16 %v10058_v46, %v10057_v47 }
 0xa8e   : > { %v10066_v50 = vpop.permute.xlu1 %10065 }
 0xa8f   : > { %8283 = vmatmul.mubr.msk.bf16.gmra.mrb[8].mxu1 %vm709_vm2, %v2745_v49  ;;  %8952 = vmatmul.mubr.msk.bf16.vlgmr.msra.gmra.mrb[0].mxu0 %vm709_vm2, %v2745_v49  ;;  %v10068_v51 = vunpack.i.h.bf16 %v10066_v50  ;;  %v10067_v52 = vunpack.i.l.bf16 %v10066_v50 }
 0xa90   : > { %8960 = vmatpush3.bf16.msra.mxu0 %v2744_v39  ;;  %8955 = vmatprep.mubr.msk.bf16.mxu0 %vm709_vm2, %v2746_v48 }
 0xa91   : > { %2853 = vmatprep.mubr.bf16.mxu1 %v10939_v11  ;;  %v2747_v53 = vpack.c.bf16 %v10068_v51, %v10067_v52  ;;  %8965 = vmatprep.subr.bf16.mxu0 %v10404_v58 }
 0xa97   : > { %8284 = vmatmul.mubr.msk.bf16.gmra.mrb[12].mxu1 %vm709_vm2, %v2746_v48  ;;  %8956 = vmatmul.mubr.msk.bf16.gmra.mrb[4].mxu0 %vm709_vm2, %v2747_v53 }
 0xa98   : > { %2863 = vmatprep.mubr.bf16.mxu1 %v10939_v11  ;;  %8961 = vmatprep.mubr.msk.bf16.mxu0 %vm10938_vm0, %v10937_v2 }
 0xa9f   : > { %8285 = vmatmul.mubr.msk.bf16.gmra.mrb[16].mxu1 %vm709_vm2, %v2747_v53  ;;  %8962 = vmatmul.mubr.msk.bf16.vlgmr.msra.gmra.mrb[32].mxu0 %vm599_vm1, %v11346_v22 }
 0xaa0   : > { %3117 = vmatprep.mubr.bf16.mxu1 %v10939_v11  ;;  %8966 = vmatpush3.bf16.msra.mxu0 %v10404_v58 }
 0xaa1   : > { %8967 = vmatprep.subr.bf16.mxu0 %v10405_v59 }
 0xaa4   : > { %8968 = vmatpush3.bf16.msra.mxu0 %v10405_v59 }
 0xaa5   : > { %8977 = vmatprep.subr.bf16.mxu0 %v10937_v2 }
 0xb72   : > { %v2997_v22 = vpop.f32.mrb[32].mxu0 }
 0xb73   : > { %v3004_v60 = vmul.f32 2.0, %v2997_v22  ;;  %v8963_v4 = vpop.f32.mrb[33].mxu0 }
 0xb74   : > { %v3000_v62 = vpop.f32.mrb[34].mxu0 }
 0xb75   : > { %v3005_v63 = vmul.f32 2.0, %v3000_v62  ;;  %v8964_v0 = vpop.f32.mrb[35].mxu0  ;;  %v3006_v1 = vsub.f32 %v3004_v60, %v11379_v61 }
 0xb77   : > { %v3007_v6 = vsub.f32 %v3005_v63, %v11386_v3 }
 0xb79   : > { %v3028_v7 = vpack.c.bf16 %v3007_v6, %v3006_v1  ;;  %v10074_v8 = vpack.i.bf16 %v3007_v6, %v3006_v1 }
 0xb7b   : > { %10075 = vrot.lane.b32.xlu1 %v10074_v8, %s10942_s26  ;;  %10070 = vrot.lane.b32.xlu0 %v10074_v8, %s10941_s23 }
 0xb7c   : > { %8297 = vmatmul.mubr.msk.bf16.vlgmr.msra.gmra.mrb[4].mxu1 %vm709_vm2, %v3028_v7  ;;  %8969 = vmatprep.mubr.msk.bf16.mxu0 %vm709_vm2, %v3028_v7 }
 0xb7d   : > { %3127 = vmatprep.mubr.bf16.mxu1 %v10939_v11 }
 0xb7f   : > { %10080 = vrot.lane.b32.xlu0 %v10074_v8, %s10940_s12 }
 0xbed   : > { %v10076_v9 = vpop.permute.xlu1 %10075  ;;  %v10071_v10 = vpop.permute.xlu0 %10070 }
 0xbee   : > { %v10078_v12 = vunpack.i.h.bf16 %v10076_v9  ;;  %v10077_v13 = vunpack.i.l.bf16 %v10076_v9  ;;  %v10073_v14 = vunpack.i.h.bf16 %v10071_v10  ;;  %v10072_v15 = vunpack.i.l.bf16 %v10071_v10 }
 0xbf0   : > { %v3030_v16 = vpack.c.bf16 %v10078_v12, %v10077_v13  ;;  %v3029_v17 = vpack.c.bf16 %v10073_v14, %v10072_v15 }
 0xbf1   : > { %v10081_v18 = vpop.permute.xlu0 %10080 }
 0xbf2   : > { %8298 = vmatmul.mubr.msk.bf16.gmra.mrb[8].mxu1 %vm709_vm2, %v3029_v17  ;;  %8970 = vmatmul.mubr.msk.bf16.vlgmr.msra.gmra.mrb[0].mxu0 %vm709_vm2, %v3029_v17  ;;  %v10083_v5 = vunpack.i.h.bf16 %v10081_v18  ;;  %v10082_v25 = vunpack.i.l.bf16 %v10081_v18 }
 0xbf3   : > { %8973 = vmatprep.mubr.msk.bf16.mxu0 %vm709_vm2, %v3030_v16  ;;  %3137 = vmatprep.mubr.bf16.mxu1 %v10939_v11 }
 0xbf4   : > { %v3031_v26 = vpack.c.bf16 %v10083_v5, %v10082_v25 }
 0xbfa   : > { %8299 = vmatmul.mubr.msk.bf16.gmra.mrb[12].mxu1 %vm709_vm2, %v3030_v16  ;;  %8974 = vmatmul.mubr.msk.bf16.gmra.mrb[4].mxu0 %vm709_vm2, %v3031_v26 }
 0xbfb   : > { %3147 = vmatprep.mubr.bf16.mxu1 %v10939_v11  ;;  %8979 = vmatprep.mubr.msk.bf16.mxu0 %vm10938_vm0, %v10937_v2 }
 0xc02   : > { %8300 = vmatmul.mubr.msk.bf16.gmra.mrb[16].mxu1 %vm709_vm2, %v3031_v26 }
 0xc03   : > { %9063 = vmatprep.mubr.msk.bf16.mxu1 %vm10938_vm0, %v10937_v2 }
 0xc4f   : > { %v11539_v29 = vpop.f32.mrb[4].mxu1 }
 0xc50   : > { %v11541_v30 = vpop.f32.mrb[5].mxu1 }
 0xc51   : > { %v11543_v32 = vpop.f32.mrb[6].mxu1 }
 0xc52   : > { %v11545_v33 = vpop.f32.mrb[7].mxu1 }
 0xcc5   : > { %v3129_v38 = vpop.f32.mrb[8].mxu1 }
 0xcc6   : > { %v3270_v39 = vadd.f32 %v11558_v37, %v3129_v38  ;;  %v11561_v40 = vpop.f32.mrb[9].mxu1 }
 0xcc7   : > { %v3133_v41 = vpop.f32.mrb[10].mxu1 }
 0xcc8   : > { %v8307_v42 = vmul.f32 -1.442695, %v3270_v39  ;;  %v3273_v43 = vadd.f32 %v11558_v37, %v3133_v41  ;;  %v11564_v44 = vpop.f32.mrb[11].mxu1 }
 0xcca   : > { %10508 = vpow2.f32 %v8307_v42  ;;  %v8308_v45 = vmul.f32 -1.442695, %v3273_v43 }
 0xccc   : > { %10510 = vpow2.f32 %v8308_v45 }
 0xccd   : > { %v3139_v46 = vpop.f32.mrb[12].mxu1 }
 0xcce   : > { %v3276_v47 = vadd.f32 %v11558_v37, %v3139_v46  ;;  %v11567_v48 = vpop.f32.mrb[13].mxu1  ;;  %v3264_v46 = vadd.f32 %v11558_v37, %v11539_v29 }
 0xccf   : > { %v3143_v49 = vpop.f32.mrb[14].mxu1 }
 0xcd0   : > { %v8309_v50 = vmul.f32 -1.442695, %v3276_v47  ;;  %v3279_v51 = vadd.f32 %v11558_v37, %v3143_v49  ;;  %v11570_v52 = vpop.f32.mrb[15].mxu1  ;;  %v3267_v47 = vadd.f32 %v11558_v37, %v11543_v32  ;;  %v8305_v49 = vmul.f32 -1.442695, %v3264_v46 }
 0xcd2   : > { %10512 = vpow2.f32 %v8309_v50  ;;  %v8310_v53 = vmul.f32 -1.442695, %v3279_v51  ;;  %v8306_v50 = vmul.f32 -1.442695, %v3267_v47 }
 0xcd4   : > { %v10509_v54 = vpop.eup %10508  ;;  %10514 = vpow2.f32 %v8310_v53 }
 0xcd5   : > { %v3314_v55 = vadd.f32 1.0, %v10509_v54  ;;  %v3149_v56 = vpop.f32.mrb[16].mxu1 }
 0xcd6   : > { %v10511_v57 = vpop.eup %10510  ;;  %v3282_v58 = vadd.f32 %v11558_v37, %v3149_v56  ;;  %v11573_v59 = vpop.f32.mrb[17].mxu1 }
 0xcd7   : > { %10516 = vrcp.f32 %v3314_v55  ;;  %v3315_v22 = vadd.f32 1.0, %v10511_v57  ;;  %v3153_v60 = vpop.f32.mrb[18].mxu1 }
 0xcd8   : > { %v8311_v4 = vmul.f32 -1.442695, %v3282_v58  ;;  %v3285_v62 = vadd.f32 %v11558_v37, %v3153_v60  ;;  %v11576_v63 = vpop.f32.mrb[19].mxu1 }
 0xcd9   : > { %10518 = vrcp.f32 %v3315_v22 }
 0xcda   : > { %v8312_v0 = vmul.f32 -1.442695, %v3285_v62  ;;  %10520 = vpow2.f32 %v8311_v4 }
 0xcdc   : > { %v10513_v1 = vpop.eup %10512  ;;  %10522 = vpow2.f32 %v8312_v0 }
 0xcdd   : > { %v3316_v6 = vadd.f32 1.0, %v10513_v1 }
 0xcde   : > { %v10515_v7 = vpop.eup %10514 }
 0xcdf   : > { %10524 = vrcp.f32 %v3316_v6  ;;  %v3317_v8 = vadd.f32 1.0, %v10515_v7 }
 0xce1   : > { %v10517_v9 = vpop.eup %10516  ;;  %10526 = vrcp.f32 %v3317_v8 }
 0xce2   : > { %v11579_v10 = vmul.f32 %v10517_v9, %v11402_v19 }
 0xce3   : > { %v10519_v12 = vpop.eup %10518 }
 0xce4   : > { %3394 = vrot.lane.b32.xlu1 %v11579_v10, %s10940_s12  ;;  %v11584_v13 = vmul.f32 %v10519_v12, %v11404_v20  ;;  %v10521_v14 = vpop.eup %10520  ;;  %v10407_v12 = vld [vmem:[%s12348_s29 + $0x18] sm:$0xff]  }
 0xce5   : > { %v3318_v15 = vadd.f32 1.0, %v10521_v14  ;;  %v10408_v14 = vld [vmem:[%s12348_s29] sm:$0xff]  }
 0xce6   : > { %3396 = vrot.lane.b32.xlu0 %v11584_v13, %s10940_s12  ;;  %v3425_v16 = vpack.c.bf16 %v11584_v13, %v11579_v10  ;;  %v10523_v17 = vpop.eup %10522  ;;  %v10410_v10 = vld [vmem:[%s12348_s29 + $0x20] sm:$0xff]   ;;  %v10411_v13 = vld [vmem:[%s12348_s29 + $0x28] sm:$0xff]  }
 0xce7   : > { %10528 = vrcp.f32 %v3318_v15  ;;  %v3319_v18 = vadd.f32 1.0, %v10523_v17 }
 0xce9   : > { %v10525_v5 = vpop.eup %10524  ;;  %10530 = vrcp.f32 %v3319_v18 }
 0xcea   : > { %v11591_v25 = vmul.f32 %v10525_v5, %v11416_v23  ;;  %10532 = vpow2.f32 %v8305_v49 }
 0xceb   : > { %v10527_v26 = vpop.eup %10526  ;;  %10534 = vpow2.f32 %v8306_v50 }
 0xcec   : > { %3402 = vrot.lane.b32.xlu1 %v11591_v25, %s10942_s26  ;;  %v11596_v34 = vmul.f32 %v10527_v26, %v11418_v24 }
 0xcee   : > { %3404 = vrot.lane.b32.xlu0 %v11596_v34, %s10942_s26  ;;  %v3426_v38 = vpack.c.bf16 %v11596_v34, %v11591_v25 }
 0xcf1   : > { %v10529_v39 = vpop.eup %10528 }
 0xcf2   : > { %v11603_v41 = vmul.f32 %v10529_v39, %v11427_v27 }
 0xcf3   : > { %v10531_v42 = vpop.eup %10530 }
 0xcf4   : > { %3410 = vrot.lane.b32.xlu1 %v11603_v41, %s10941_s23  ;;  %v11608_v43 = vmul.f32 %v10531_v42, %v11429_v28  ;;  %v10533_v51 = vpop.eup %10532 }
 0xcf5   : > { %v10535_v53 = vpop.eup %10534  ;;  %v3312_v54 = vadd.f32 1.0, %v10533_v51 }
 0xcf6   : > { %3412 = vrot.lane.b32.xlu0 %v11608_v43, %s10941_s23  ;;  %v3427_v45 = vpack.c.bf16 %v11608_v43, %v11603_v41  ;;  %v3313_v55 = vadd.f32 1.0, %v10535_v53 }
 0xcf7   : > { %10536 = vrcp.f32 %v3312_v54 }
 0xcf8   : > { %10538 = vrcp.f32 %v3313_v55  ;;  %v10409_v55 = vld [vmem:[%s12348_s29 + $0x8] sm:$0xff]  }
 0xd01   : > { %v10537_v58 = vpop.eup %10536 }
 0xd02   : > { %v10539_v22 = vpop.eup %10538  ;;  %v3384_v29 = vmul.f32 %v10537_v58, %v11379_v61 }
 0xd03   : > { %v3385_v32 = vmul.f32 %v10539_v22, %v11386_v3  ;;  %v10406_v3 = vld [vmem:[%s12348_s29 + $0x10] sm:$0xff]  }
 0xd56   : > { %v3395_v56 = vpop.permute.xlu1 %3394 }
 0xd57   : > { %v3416_v62 = vsel %vm709_vm2, %v3384_v29, %v3395_v56 }
 0xd58   : > { %v3397_v57 = vpop.permute.xlu0 %3396 }
 0xd59   : > { %v3417_v0 = vsel %vm709_vm2, %v3385_v32, %v3397_v57 }
 0xd5e   : > { %v3403_v60 = vpop.permute.xlu1 %3402 }
 0xd5f   : > { %v3419_v1 = vsel %vm3418_vm3, %v3416_v62, %v3403_v60  ;;  %v3424_v60 = vpack.c.bf16 %v3385_v32, %v3384_v29 }
 0xd60   : > { %v3405_v4 = vpop.permute.xlu0 %3404 }
 0xd61   : > { %v3420_v6 = vsel %vm3418_vm3, %v3417_v0, %v3405_v4 }
 0xd66   : > { %v3411_v37 = vpop.permute.xlu1 %3410 }
 0xd67   : > { %v11625_v8 = vsel %vm3421_vm4, %v3419_v1, %v3411_v37 }
 0xd68   : > { %v3413_v7 = vpop.permute.xlu0 %3412 }
 0xd69   : > { %v11628_v9 = vsel %vm3421_vm4, %v3420_v6, %v3413_v7 }
 0xd6a   : > { %v11632_v61 = vpack.c.bf16 %v11628_v9, %v11625_v8 }
 0xd6c   : > { %8978 = vmatpush3.bf16.msra.mxu0 %v11632_v61 }
 0xd6d   : > { %8983 = vmatprep.subr.bf16.mxu0 %v10406_v3 }
 0xd6f   : > { %8980 = vmatmul.mubr.msk.bf16.vlgmr.msra.gmra.mrb[36].mxu0 %vm599_vm1, %v11445_v31 }
 0xd70   : > { %8984 = vmatpush3.bf16.msra.mxu0 %v10406_v3 }
 0xd71   : > { %8985 = vmatprep.subr.bf16.mxu0 %v10407_v12 }
 0xd74   : > { %8986 = vmatpush3.bf16.msra.mxu0 %v10407_v12 }
 0xd75   : > { %8995 = vmatprep.subr.bf16.mxu0 %v10408_v14 }
 0xe42   : > { %v3467_v15 = vpop.f32.mrb[36].mxu0 }
 0xe43   : > { %v8981_v17 = vpop.f32.mrb[37].mxu0 }
 0xe44   : > { %v3470_v18 = vpop.f32.mrb[38].mxu0 }
 0xe45   : > { %v3494_v5 = vpack.c.bf16 %v3470_v18, %v3467_v15  ;;  %v8982_v26 = vpop.f32.mrb[39].mxu0  ;;  %v10089_v39 = vpack.i.bf16 %v3470_v18, %v3467_v15  ;;  %v10669_v18 = vld [vmem:[%s12296_s2 + $0x8] sm:$0xff]  }
 0xe47   : > { %10090 = vrot.lane.b32.xlu0 %v10089_v39, %s10942_s26  ;;  %10085 = vrot.lane.b32.xlu1 %v10089_v39, %s10941_s23 }
 0xe48   : > { %8987 = vmatprep.mubr.msk.bf16.mxu0 %vm709_vm2, %v3494_v5 }
 0xe4b   : > { %10095 = vrot.lane.b32.xlu1 %v10089_v39, %s10940_s12 }
 0xeb9   : > { %v10091_v42 = vpop.permute.xlu0 %10090  ;;  %v10086_v46 = vpop.permute.xlu1 %10085 }
 0xeba   : > { %v10093_v47 = vunpack.i.h.bf16 %v10091_v42  ;;  %v10092_v49 = vunpack.i.l.bf16 %v10091_v42  ;;  %v10088_v50 = vunpack.i.h.bf16 %v10086_v46  ;;  %v10087_v51 = vunpack.i.l.bf16 %v10086_v46 }
 0xebc   : > { %v3496_v53 = vpack.c.bf16 %v10093_v47, %v10092_v49  ;;  %v3495_v54 = vpack.c.bf16 %v10088_v50, %v10087_v51 }
 0xebd   : > { %v10096_v56 = vpop.permute.xlu1 %10095 }
 0xebe   : > { %8988 = vmatmul.mubr.msk.bf16.vlgmr.msra.gmra.mrb[0].mxu0 %vm709_vm2, %v3495_v54  ;;  %v10098_v57 = vunpack.i.h.bf16 %v10096_v56  ;;  %v10097_v58 = vunpack.i.l.bf16 %v10096_v56 }
 0xebf   : > { %8991 = vmatprep.mubr.msk.bf16.mxu0 %vm709_vm2, %v3496_v53  ;;  %8996 = vmatpush3.bf16.msra.mxu0 %v10408_v14 }
 0xec0   : > { %8997 = vmatprep.subr.bf16.mxu0 %v10409_v55  ;;  %v3497_v22 = vpack.c.bf16 %v10098_v57, %v10097_v58 }
 0xec3   : > { %8998 = vmatpush3.bf16.msra.mxu0 %v10409_v55 }
 0xec4   : > { %9007 = vmatprep.subr.bf16.mxu0 %v10937_v2 }
 0xec6   : > { %8992 = vmatmul.mubr.msk.bf16.gmra.mrb[4].mxu0 %vm709_vm2, %v3497_v22 }
 0xec7   : > { %8999 = vmatprep.mubr.msk.bf16.mxu0 %vm709_vm2, %v3424_v60 }
 0xece   : > { %9000 = vmatmul.mubr.msk.bf16.vlgmr.msra.gmra.mrb[0].mxu0 %vm709_vm2, %v3425_v16 }
 0xecf   : > { %9008 = vmatpush3.bf16.msra.mxu0 %v3494_v5  ;;  %9003 = vmatprep.mubr.msk.bf16.mxu0 %vm709_vm2, %v3426_v38  ;;  %v10413_v5 = vld [vmem:[%s12348_s29 + $0x38] sm:$0xff]  }
 0xed0   : > { %9013 = vmatprep.subr.bf16.mxu0 %v10410_v10 }
 0xed6   : > { %9004 = vmatmul.mubr.msk.bf16.gmra.mrb[4].mxu0 %vm709_vm2, %v3427_v45 }
 0xed7   : > { %9009 = vmatprep.mubr.msk.bf16.mxu0 %vm10938_vm0, %v10937_v2 }
 0xede   : > { %9010 = vmatmul.mubr.msk.bf16.vlgmr.msra.gmra.mrb[40].mxu0 %vm599_vm1, %v11445_v31 }
 0xedf   : > { %9014 = vmatpush3.bf16.msra.mxu0 %v10410_v10 }
 0xee0   : > { %9015 = vmatprep.subr.bf16.mxu0 %v10411_v13 }
 0xee3   : > { %9016 = vmatpush3.bf16.msra.mxu0 %v10411_v13 }
 0xee4   : > { %9025 = vmatprep.subr.bf16.mxu0 %v10937_v2 }
 0xfb1   : > { %v3715_v16 = vpop.f32.mrb[40].mxu0 }
 0xfb2   : > { %v3722_v25 = vmul.f32 2.0, %v3715_v16  ;;  %v9011_v34 = vpop.f32.mrb[41].mxu0  ;;  %v10414_v16 = vld [vmem:[%s12348_s29 + $0x40] sm:$0xff]  }
 0xfb3   : > { %v3718_v38 = vpop.f32.mrb[42].mxu0 }
 0xfb4   : > { %v3723_v41 = vmul.f32 2.0, %v3718_v38  ;;  %v9012_v31 = vpop.f32.mrb[43].mxu0  ;;  %v3724_v43 = vsub.f32 %v3722_v25, %v11625_v8  ;;  %v10415_v25 = vld [vmem:[%s12348_s29 + $0x48] sm:$0xff]  }
 0xfb6   : > { %v3725_v45 = vsub.f32 %v3723_v41, %v11628_v9 }
 0xfb8   : > { %v10104_v4 = vpack.i.bf16 %v3725_v45, %v3724_v43  ;;  %v3746_v29 = vpack.c.bf16 %v3725_v45, %v3724_v43 }
 0xfba   : > { %10105 = vrot.lane.b32.xlu1 %v10104_v4, %s10942_s26  ;;  %10100 = vrot.lane.b32.xlu0 %v10104_v4, %s10941_s23 }
 0xfbb   : > { %9017 = vmatprep.mubr.msk.bf16.mxu0 %vm709_vm2, %v3746_v29 }
 0xfbe   : > { %10110 = vrot.lane.b32.xlu0 %v10104_v4, %s10940_s12 }
0x102c   : > { %v10106_v32 = vpop.permute.xlu1 %10105  ;;  %v10101_v37 = vpop.permute.xlu0 %10100 }
0x102d   : > { %v10108_v62 = vunpack.i.h.bf16 %v10106_v32  ;;  %v10107_v0 = vunpack.i.l.bf16 %v10106_v32  ;;  %v10103_v1 = vunpack.i.h.bf16 %v10101_v37  ;;  %v10102_v6 = vunpack.i.l.bf16 %v10101_v37 }
0x102f   : > { %v3748_v7 = vpack.c.bf16 %v10108_v62, %v10107_v0  ;;  %v3747_v3 = vpack.c.bf16 %v10103_v1, %v10102_v6 }
0x1030   : > { %v10111_v12 = vpop.permute.xlu0 %10110 }
0x1031   : > { %9018 = vmatmul.mubr.msk.bf16.vlgmr.msra.gmra.mrb[0].mxu0 %vm709_vm2, %v3747_v3  ;;  %v10113_v14 = vunpack.i.h.bf16 %v10111_v12  ;;  %v10112_v15 = vunpack.i.l.bf16 %v10111_v12 }
0x1032   : > { %9026 = vmatpush3.bf16.msra.mxu0 %v11632_v61  ;;  %9021 = vmatprep.mubr.msk.bf16.mxu0 %vm709_vm2, %v3748_v7  ;;  %v10412_v61 = vld [vmem:[%s12348_s29 + $0x30] sm:$0xff]  }
0x1033   : > { %v3749_v17 = vpack.c.bf16 %v10113_v14, %v10112_v15  ;;  %9031 = vmatprep.subr.bf16.mxu0 %v10412_v61 }
0x1039   : > { %9022 = vmatmul.mubr.msk.bf16.gmra.mrb[4].mxu0 %vm709_vm2, %v3749_v17 }
0x103a   : > { %9027 = vmatprep.mubr.msk.bf16.mxu0 %vm10938_vm0, %v10937_v2 }
0x1041   : > { %9028 = vmatmul.mubr.msk.bf16.vlgmr.msra.gmra.mrb[44].mxu0 %vm599_vm1, %v10669_v18 }
0x1042   : > { %9032 = vmatpush3.bf16.msra.mxu0 %v10412_v61 }
0x1043   : > { %9033 = vmatprep.subr.bf16.mxu0 %v10413_v5 }
0x1046   : > { %9034 = vmatpush3.bf16.msra.mxu0 %v10413_v5 }
0x1047   : > { %9043 = vmatprep.subr.bf16.mxu0 %v10937_v2 }
0x1114   : > { %v3886_v26 = vpop.f32.mrb[44].mxu0 }
0x1115   : > { %v9029_v39 = vpop.f32.mrb[45].mxu0 }
0x1116   : > { %v3889_v42 = vpop.f32.mrb[46].mxu0 }
0x1117   : > { %v3913_v46 = vpack.c.bf16 %v3889_v42, %v3886_v26  ;;  %v9030_v47 = vpop.f32.mrb[47].mxu0  ;;  %v10119_v49 = vpack.i.bf16 %v3889_v42, %v3886_v26 }
0x1119   : > { %10120 = vrot.lane.b32.xlu0 %v10119_v49, %s10942_s26  ;;  %10115 = vrot.lane.b32.xlu1 %v10119_v49, %s10941_s23 }
0x111a   : > { %9035 = vmatprep.mubr.msk.bf16.mxu0 %vm709_vm2, %v3913_v46 }
0x111d   : > { %10125 = vrot.lane.b32.xlu1 %v10119_v49, %s10940_s12 }
0x118b   : > { %v10121_v50 = vpop.permute.xlu0 %10120  ;;  %v10116_v51 = vpop.permute.xlu1 %10115 }
0x118c   : > { %v10123_v53 = vunpack.i.h.bf16 %v10121_v50  ;;  %v10122_v54 = vunpack.i.l.bf16 %v10121_v50  ;;  %v10118_v55 = vunpack.i.h.bf16 %v10116_v51  ;;  %v10117_v56 = vunpack.i.l.bf16 %v10116_v51 }
0x118e   : > { %v3915_v57 = vpack.c.bf16 %v10123_v53, %v10122_v54  ;;  %v3914_v58 = vpack.c.bf16 %v10118_v55, %v10117_v56 }
0x118f   : > { %v10126_v22 = vpop.permute.xlu1 %10125 }
0x1190   : > { %9036 = vmatmul.mubr.msk.bf16.vlgmr.msra.gmra.mrb[0].mxu0 %vm709_vm2, %v3914_v58  ;;  %v10128_v60 = vunpack.i.h.bf16 %v10126_v22  ;;  %v10127_v10 = vunpack.i.l.bf16 %v10126_v22 }
0x1191   : > { %9044 = vmatpush3.bf16.msra.mxu0 %v3913_v46  ;;  %9039 = vmatprep.mubr.msk.bf16.mxu0 %vm709_vm2, %v3915_v57 }
0x1192   : > { %v3916_v13 = vpack.c.bf16 %v10128_v60, %v10127_v10  ;;  %9049 = vmatprep.subr.bf16.mxu0 %v10414_v16 }
0x1198   : > { %9040 = vmatmul.mubr.msk.bf16.gmra.mrb[4].mxu0 %vm709_vm2, %v3916_v13 }
0x1199   : > { %9045 = vmatprep.mubr.msk.bf16.mxu0 %vm10938_vm0, %v10937_v2 }
0x11a0   : > { %9046 = vmatmul.mubr.msk.bf16.vlgmr.msra.gmra.mrb[48].mxu0 %vm599_vm1, %v10669_v18  ;;  %v3255_v18 = vsub.s32 1, %v11547_v21 }
0x11a1   : > { %9050 = vmatpush3.bf16.msra.mxu0 %v10414_v16 }
0x11a2   : > { %9051 = vmatprep.subr.bf16.mxu0 %v10415_v25  ;;  %v3256_v61 = vrot.slane %v11553_v36, %v3255_v18 }
0x11a4   : > { %v3271_v5 = vadd.f32 %v3256_v61, %v11561_v40  ;;  %v3265_v26 = vadd.f32 %v3256_v61, %v11541_v30  ;;  %v3274_v39 = vadd.f32 %v3256_v61, %v11564_v44  ;;  %v3268_v42 = vadd.f32 %v3256_v61, %v11545_v33 }
0x11a5   : > { %9052 = vmatpush3.bf16.msra.mxu0 %v10415_v25  ;;  %v3283_v51 = vadd.f32 %v3256_v61, %v11573_v59  ;;  %v3277_v53 = vadd.f32 %v3256_v61, %v11567_v48  ;;  %v3286_v54 = vadd.f32 %v3256_v61, %v11576_v63  ;;  %v3280_v30 = vadd.f32 %v3256_v61, %v11570_v52 }
0x11a6   : > { %v8315_v46 = vmul.f32 -1.442695, %v3271_v5  ;;  %v8313_v47 = vmul.f32 -1.442695, %v3265_v26  ;;  %v8316_v49 = vmul.f32 -1.442695, %v3274_v39 }
0x11a7   : > { %v8314_v50 = vmul.f32 -1.442695, %v3268_v42  ;;  %v8319_v40 = vmul.f32 -1.442695, %v3283_v51  ;;  %v8317_v44 = vmul.f32 -1.442695, %v3277_v53 }
0x11a8   : > { %10540 = vpow2.f32 %v8315_v46  ;;  %v8320_v55 = vmul.f32 -1.442695, %v3286_v54  ;;  %v8318_v33 = vmul.f32 -1.442695, %v3280_v30  ;;  %v3259_v59 = vsub.s32 2, %v11547_v21  ;;  %v10670_v53 = vld [vmem:[%s11247_s10] sm:$0xff] }
0x11a9   : > { %10542 = vpow2.f32 %v8313_v47 }
0x11aa   : > { %10544 = vpow2.f32 %v8316_v49  ;;  %v3260_v52 = vrot.slane %v11553_v36, %v3259_v59 }
0x11ab   : > { %10546 = vpow2.f32 %v8314_v50 }
0x11ac   : > { %10548 = vpow2.f32 %v8319_v40 }
0x11ad   : > { %10550 = vpow2.f32 %v8317_v44 }
0x11ae   : > { %10552 = vpow2.f32 %v8320_v55 }
0x11af   : > { %10554 = vpow2.f32 %v8318_v33 }
0x11b2   : > { %v10541_v56 = vpop.eup %10540 }
0x11b3   : > { %v10543_v57 = vpop.eup %10542  ;;  %v3362_v22 = vadd.f32 1.0, %v10541_v56 }
0x11b4   : > { %v10545_v58 = vpop.eup %10544  ;;  %v3360_v60 = vadd.f32 1.0, %v10543_v57 }
0x11b5   : > { %v10547_v48 = vpop.eup %10546  ;;  %v3363_v63 = vadd.f32 1.0, %v10545_v58  ;;  %10556 = vrcp.f32 %v3362_v22 }
0x11b6   : > { %v3361_v10 = vadd.f32 1.0, %v10547_v48  ;;  %v10549_v13 = vpop.eup %10548  ;;  %10558 = vrcp.f32 %v3360_v60  ;;  %v10671_v48 = vld [vmem:[%s11247_s10 + $0x8] sm:$0xff] }
0x11b7   : > { %v10551_v25 = vpop.eup %10550  ;;  %10560 = vrcp.f32 %v3363_v63 }
0x11b8   : > { %10562 = vrcp.f32 %v3361_v10 }
0x1273   : > { %v4053_v34 = vpop.f32.mrb[48].mxu0 }
0x1274   : > { %v4060_v38 = vmul.f32 2.0, %v4053_v34  ;;  %v9047_v41 = vpop.f32.mrb[49].mxu0 }
0x1275   : > { %v4056_v31 = vpop.f32.mrb[50].mxu0  ;;  %v10553_v41 = vpop.eup %10552 }
0x1276   : > { %v4061_v43 = vmul.f32 2.0, %v4056_v31  ;;  %v9048_v45 = vpop.f32.mrb[51].mxu0  ;;  %v4062_v4 = vsub.f32 %v4060_v38, %v11625_v8 }
0x1277   : > { %v10555_v45 = vpop.eup %10554 }
0x1278   : > { %v4063_v29 = vsub.f32 %v4061_v43, %v11628_v9 }
0x127a   : > { %v10134_v32 = vpack.i.bf16 %v4063_v29, %v4062_v4  ;;  %v4084_v37 = vpack.c.bf16 %v4063_v29, %v4062_v4  ;;  %v3366_v4 = vadd.f32 1.0, %v10549_v13 }
0x127c   : > { %10135 = vrot.lane.b32.xlu1 %v10134_v32, %s10942_s26  ;;  %10130 = vrot.lane.b32.xlu0 %v10134_v32, %s10941_s23 }
0x127d   : > { %9053 = vmatprep.mubr.msk.bf16.mxu0 %vm709_vm2, %v4084_v37  ;;  %v3364_v37 = vadd.f32 1.0, %v10551_v25 }
0x1280   : > { %10140 = vrot.lane.b32.xlu0 %v10134_v32, %s10940_s12 }
0x12ee   : > { %v10136_v62 = vpop.permute.xlu1 %10135  ;;  %v10131_v0 = vpop.permute.xlu0 %10130 }
0x12ef   : > { %v10138_v1 = vunpack.i.h.bf16 %v10136_v62  ;;  %v10137_v6 = vunpack.i.l.bf16 %v10136_v62  ;;  %v10133_v7 = vunpack.i.h.bf16 %v10131_v0  ;;  %v10132_v3 = vunpack.i.l.bf16 %v10131_v0 }
0x12f0   : > { %v3367_v62 = vadd.f32 1.0, %v10553_v41  ;;  %v3365_v0 = vadd.f32 1.0, %v10555_v45 }
0x12f1   : > { %v4086_v12 = vpack.c.bf16 %v10138_v1, %v10137_v6  ;;  %v4085_v8 = vpack.c.bf16 %v10133_v7, %v10132_v3  ;;  %v10557_v6 = vpop.eup %10556 }
0x12f2   : > { %v10141_v14 = vpop.permute.xlu0 %10140  ;;  %v4216_v26 = vsub.f32 1.0, %v10557_v6  ;;  %v4208_v47 = vmul.f32 %v10557_v6, %v11402_v19 }
0x12f3   : > { %9054 = vmatmul.mubr.msk.bf16.vlgmr.msra.gmra.mrb[0].mxu0 %vm709_vm2, %v4085_v8  ;;  %v10143_v9 = vunpack.i.h.bf16 %v10141_v14  ;;  %v10142_v15 = vunpack.i.l.bf16 %v10141_v14 }
0x12f4   : > { %9057 = vmatprep.mubr.msk.bf16.mxu0 %vm709_vm2, %v4086_v12  ;;  %v10559_v12 = vpop.eup %10558 }
0x12f5   : > { %v4087_v17 = vpack.c.bf16 %v10143_v9, %v10142_v15  ;;  %v10561_v9 = vpop.eup %10560  ;;  %v4214_v42 = vsub.f32 1.0, %v10559_v12  ;;  %v4206_v54 = vmul.f32 %v10670_v53, %v10559_v12  ;;  %v10420_v53 = vld [vmem:[#allocation9 + $0x48] ss:$12 sps:$4 sm:$0xff]  }
0x12f6   : > { %v10563_v61 = vpop.eup %10562  ;;  %v4217_v50 = vsub.f32 1.0, %v10561_v9  ;;  %v4209_v33 = vmul.f32 %v10561_v9, %v11404_v20 }
0x12f7   : > { %v4215_v40 = vsub.f32 1.0, %v10563_v61  ;;  %v4207_v22 = vmul.f32 %v10671_v48, %v10563_v61 }
0x12fb   : > { %9058 = vmatmul.mubr.msk.bf16.gmra.mrb[4].mxu0 %vm709_vm2, %v4087_v17 }
0x13c6   : > { %v9055_v16 = vpop.f32.mrb[0].mxu0 }
0x13c7   : > { %v9313_v34 = vadd.f32 %v9055_v16, %v3260_v52  ;;  %v4151_v38 = vpop.f32.mrb[1].mxu0 }
0x13c8   : > { %v9314_v31 = vadd.f32 %v4151_v38, %v3260_v52  ;;  %v9056_v43 = vpop.f32.mrb[2].mxu0 }
0x13c9   : > { %10564 = vtanh.f32 %v9313_v34  ;;  %v9315_v29 = vadd.f32 %v9056_v43, %v3260_v52  ;;  %v4154_v32 = vpop.f32.mrb[3].mxu0 }
0x13ca   : > { %10566 = vtanh.f32 %v9314_v31  ;;  %v9316_v36 = vadd.f32 %v4154_v32, %v3260_v52 }
0x13cb   : > { %10568 = vtanh.f32 %v9315_v29 }
0x13cc   : > { %10570 = vtanh.f32 %v9316_v36 }
0x13cd   : > { %10572 = vrcp.f32 %v3366_v4 }
0x13ce   : > { %10574 = vrcp.f32 %v3364_v37  ;;  %v9059_v1 = vpop.f32.mrb[4].mxu0 }
0x13cf   : > { %10576 = vrcp.f32 %v3367_v62  ;;  %v9317_v7 = vadd.f32 %v9059_v1, %v3260_v52  ;;  %v4167_v3 = vpop.f32.mrb[5].mxu0 }
0x13d0   : > { %10578 = vrcp.f32 %v3365_v0  ;;  %v9318_v8 = vadd.f32 %v4167_v3, %v3260_v52  ;;  %v9060_v14 = vpop.f32.mrb[6].mxu0 }
0x13d1   : > { %10580 = vtanh.f32 %v9317_v7  ;;  %v9319_v15 = vadd.f32 %v9060_v14, %v3260_v52  ;;  %v4170_v17 = vpop.f32.mrb[7].mxu0 }
0x13d2   : > { %10582 = vtanh.f32 %v9318_v8  ;;  %v9320_v5 = vadd.f32 %v4170_v17, %v3260_v52 }
0x13d3   : > { %v10565_v39 = vpop.eup %10564  ;;  %10584 = vtanh.f32 %v9319_v15 }
0x13d4   : > { %v10567_v46 = vpop.eup %10566  ;;  %10586 = vtanh.f32 %v9320_v5  ;;  %v4224_v49 = vmul.f32 %v10565_v39, %v4216_v26 }
0x13d5   : > { %v10569_v51 = vpop.eup %10568  ;;  %v4222_v30 = vmul.f32 %v10567_v46, %v4214_v42 }
0x13d6   : > { %v10571_v44 = vpop.eup %10570  ;;  %v4232_v55 = vadd.f32 %v4224_v49, %v4208_v47  ;;  %v4225_v56 = vmul.f32 %v10569_v51, %v4217_v50  ;;  %v11796_v47 = vld [vmem:[%s12296_s2] sm:$0xff]   ;;  %v10417_v50 = vld [vmem:[#allocation9 + $0x30] ss:$12 sps:$4 sm:$0xff]   ;;  %v10422_v51 = vld [vmem:[#allocation9 + $0x4c] ss:$12 sps:$4 sm:$0xff]  }
0x13d7   : > { %v10573_v57 = vpop.eup %10572  ;;  %v11748_v58 = vadd.f32 %v4222_v30, %v4206_v54  ;;  %v4223_v60 = vmul.f32 %v10571_v44, %v4215_v40  ;;  %v10419_v49 = vld [vmem:[#allocation9 + $0x34] ss:$12 sps:$4 sm:$0xff]   ;;  %v10423_v54 = vld [vmem:[#allocation9 + $0x38] ss:$12 sps:$4 sm:$0xff]   ;;  %v10424_v30 = vld [vmem:[#allocation9 + $0x50] ss:$12 sps:$4 sm:$0xff]  }
0x13d8   : > { %v10575_v63 = vpop.eup %10574  ;;  %4240 = vrot.lane.b32.xlu1 %v4232_v55, %s10940_s12  ;;  %v4233_v19 = vadd.f32 %v4225_v56, %v4209_v33  ;;  %v4220_v20 = vsub.f32 1.0, %v10573_v57  ;;  %v4212_v41 = vmul.f32 %v10573_v57, %v11427_v27  ;;  %9067 = vmatprep.subr.bf16.mxu0 %v10423_v54  ;;  %v10425_v40 = vld [vmem:[#allocation9 + $0x8] ss:$12 sps:$4 sm:$0xff]  }
0x13d9   : > { %v10577_v52 = vpop.eup %10576  ;;  %v11752_v10 = vadd.f32 %v4223_v60, %v4207_v22  ;;  %v4218_v34 = vsub.f32 1.0, %v10575_v63  ;;  %v4210_v4 = vmul.f32 %v10575_v63, %v11416_v23  ;;  %9068 = vmatpush3.bf16.msra.mxu0 %v10423_v54  ;;  %v10429_v22 = vld [vmem:[#allocation9 + $0x4] ss:$12 sps:$4 sm:$0xff]   ;;  %v10427_v60 = vld [vmem:[#allocation9] ss:$12 sps:$4 sm:$0xff]  }
0x13da   : > { %v10579_v13 = vpop.eup %10578  ;;  %4242 = vrot.lane.b32.xlu0 %v4233_v19, %s10940_s12  ;;  %v11755_v16 = vpack.c.bf16 %v4233_v19, %v4232_v55  ;;  %v4221_v43 = vsub.f32 1.0, %v10577_v52  ;;  %v4213_v62 = vmul.f32 %v10577_v52, %v11429_v28  ;;  %9069 = vmatprep.subr.bf16.mxu0 %v10424_v30  ;;  %v10432_v63 = vld [vmem:[#allocation9 + $0x1c] ss:$12 sps:$4 sm:$0xff]   ;;  %v10430_v19 = vld [vmem:[#allocation9 + $0x18] ss:$12 sps:$4 sm:$0xff]  }
0x13db   : > { %v10581_v25 = vpop.eup %10580  ;;  %v4219_v32 = vsub.f32 1.0, %v10579_v13  ;;  %v4211_v6 = vmul.f32 %v10579_v13, %v11418_v24 }
0x13dc   : > { %v10583_v38 = vpop.eup %10582  ;;  %v4228_v31 = vmul.f32 %v10581_v25, %v4220_v20 }
0x13dd   : > { %v10585_v45 = vpop.eup %10584  ;;  %v4226_v29 = vmul.f32 %v10583_v38, %v4218_v34  ;;  %9070 = vmatpush3.bf16.msra.mxu0 %v10424_v30  ;;  %v10444_v30 = vld [vmem:[#allocation9 + $0x94] ss:$12 sps:$4 sm:$0xff]  }
0x13de   : > { %v10587_v37 = vpop.eup %10586  ;;  %v4236_v36 = vadd.f32 %v4228_v31, %v4212_v41  ;;  %v4229_v0 = vmul.f32 %v10585_v45, %v4221_v43  ;;  %9079 = vmatprep.subr.bf16.mxu0 %v10425_v40  ;;  %v10426_v45 = vld [vmem:[#allocation9 + $0x20] ss:$12 sps:$4 sm:$0xff]  }
0x13df   : > { %v4234_v1 = vadd.f32 %v4226_v29, %v4210_v4  ;;  %v4227_v7 = vmul.f32 %v10587_v37, %v4219_v32  ;;  %v4293_v37 = vpack.c.bf16 %v11752_v10, %v11748_v58 }
0x13e0   : > { %v4237_v3 = vadd.f32 %v4229_v0, %v4213_v62  ;;  %v10439_v62 = vld [vmem:[#allocation9 + $0x68] ss:$12 sps:$4 sm:$0xff]   ;;  %v10440_v0 = vld [vmem:[#allocation9 + $0x80] ss:$12 sps:$4 sm:$0xff]  }
0x13e1   : > { %4248 = vrot.lane.b32.xlu1 %v4234_v1, %s10942_s26  ;;  %v4235_v27 = vadd.f32 %v4227_v7, %v4211_v6 }
0x13e2   : > { %v11762_v12 = vpack.c.bf16 %v4237_v3, %v4236_v36 }
0x13e3   : > { %4250 = vrot.lane.b32.xlu0 %v4235_v27, %s10942_s26  ;;  %v11765_v23 = vpack.c.bf16 %v4235_v27, %v4234_v1 }
0x13e5   : > { %4256 = vrot.lane.b32.xlu1 %v4236_v36, %s10941_s23  ;;  %v10436_v36 = vld [vmem:[#allocation9 + $0x78] ss:$12 sps:$4 sm:$0xff]  }
0x13e7   : > { %4258 = vrot.lane.b32.xlu0 %v4237_v3, %s10941_s23 }
0x144a   : > { %v4241_v28 = vpop.permute.xlu1 %4240 }
0x144b   : > { %v4262_v9 = vsel %vm709_vm2, %v11748_v58, %v4241_v28  ;;  %v10435_v58 = vld [vmem:[#allocation9 + $0x64] ss:$12 sps:$4 sm:$0xff]  }
0x144c   : > { %v4243_v8 = vpop.permute.xlu0 %4242 }
0x144d   : > { %v4263_v61 = vsel %vm709_vm2, %v11752_v10, %v4243_v8  ;;  %v10433_v10 = vld [vmem:[#allocation9 + $0x60] ss:$12 sps:$4 sm:$0xff]  }
0x1453   : > { %v4249_v14 = vpop.permute.xlu1 %4248 }
0x1454   : > { %v4264_v15 = vsel %vm3418_vm3, %v4262_v9, %v4249_v14 }
0x1455   : > { %v4251_v24 = vpop.permute.xlu0 %4250 }
0x1456   : > { %v4265_v26 = vsel %vm3418_vm3, %v4263_v61, %v4251_v24 }
0x1457   : > { %v4257_v17 = vpop.permute.xlu1 %4256 }
0x1458   : > { %v11775_v5 = vsel %vm3421_vm4, %v4264_v15, %v4257_v17 }
0x1459   : > { %4268 = vst [vmem:[%s11780_s6] sm:$0xff] %v11775_v5  ;;  %v4259_v39 = vpop.permute.xlu0 %4258 }
0x145a   : > { %v11785_v42 = vsel %vm3421_vm4, %v4265_v26, %v4259_v39 }
0x145b   : > { %4269 = vst [vmem:[%s11780_s6 + $0x8] sm:$0xff] %v11785_v42  ;;  %v11791_v46 = vpack.c.bf16 %v11785_v42, %v11775_v5 }
0x145d   : > { %9062 = vmatpush3.bf16.msra.mxu1 %v11791_v46 }
0x145e   : > { %4434 = vmatprep.subr.bf16.mxu1 %v10419_v49 }
0x1460   : > { %9064 = vmatmul.mubr.msk.bf16.vlgmr.msra.gmra.mrb[20].mxu1 %vm599_vm1, %v11796_v47 }
0x1461   : > { %4466 = vmatprep.mubr.bf16.mxu1 %v10939_v11  ;;  %4435 = vmatpush1.bf16.msra.mxu1 %v10417_v50 }
0x1462   : > { %4436 = vmatprep.subr.bf16.mxu1 %v10422_v51 }
0x1465   : > { %4437 = vmatpush1.bf16.msra.mxu1 %v10420_v53 }
0x1466   : > { %4616 = vmatprep.subr.bf16.mxu1 %v10429_v22 }
0x1533   : > { %v4350_v44 = vpop.f32.mrb[20].mxu1 }
0x1534   : > { %v9065_v55 = vpop.f32.mrb[21].mxu1 }
0x1535   : > { %v4353_v33 = vpop.f32.mrb[22].mxu1  ;;  %v10445_v55 = vld [vmem:[#allocation9 + $0xa8] ss:$12 sps:$4 sm:$0xff]  }
0x1536   : > { %v4377_v56 = vpack.c.bf16 %v4353_v33, %v4350_v44  ;;  %v10144_v57 = vpack.i.bf16 %v4353_v33, %v4350_v44  ;;  %v9066_v48 = vpop.f32.mrb[23].mxu1  ;;  %v10447_v44 = vld [vmem:[#allocation9 + $0xac] ss:$12 sps:$4 sm:$0xff]  }
0x1537   : > { %v10448_v33 = vld [vmem:[#allocation9 + $0x98] ss:$12 sps:$4 sm:$0xff]  }
0x1538   : > { %10145 = vrot.lane.b32.xlu1 %v10144_v57, %s10941_s23  ;;  %10150 = vrot.lane.b32.xlu0 %v10144_v57, %s10942_s26 }
0x1539   : > { %8381 = vmatmul.mubr.msk.bf16.vlgmr.msra.gmra.mrb[24].mxu1 %vm709_vm2, %v4377_v56  ;;  %9071 = vmatprep.mubr.msk.bf16.mxu0 %vm709_vm2, %v4377_v56 }
0x153a   : > { %4476 = vmatprep.mubr.bf16.mxu1 %v10939_v11  ;;  %4617 = vmatpush1.bf16.msra.mxu1 %v10427_v60 }
0x153b   : > { %4618 = vmatprep.subr.bf16.mxu1 %v10432_v63 }
0x153c   : > { %10155 = vrot.lane.b32.xlu1 %v10144_v57, %s10940_s12 }
0x153e   : > { %4619 = vmatpush1.bf16.msra.mxu1 %v10430_v19 }
0x153f   : > { %4876 = vmatprep.subr.bf16.mxu1 %v10435_v58  ;;  %v10455_v58 = vld [vmem:[#allocation9 + $0xdc] ss:$12 sps:$4 sm:$0xff]  }
0x15aa   : > { %v10146_v52 = vpop.permute.xlu1 %10145  ;;  %v10151_v13 = vpop.permute.xlu0 %10150 }
0x15ab   : > { %v10148_v20 = vunpack.i.h.bf16 %v10146_v52  ;;  %v10147_v25 = vunpack.i.l.bf16 %v10146_v52  ;;  %v10153_v34 = vunpack.i.h.bf16 %v10151_v13  ;;  %v10152_v38 = vunpack.i.l.bf16 %v10151_v13 }
0x15ad   : > { %v4378_v41 = vpack.c.bf16 %v10148_v20, %v10147_v25  ;;  %v4379_v31 = vpack.c.bf16 %v10153_v34, %v10152_v38 }
0x15ae   : > { %v10156_v43 = vpop.permute.xlu1 %10155 }
0x15af   : > { %8382 = vmatmul.mubr.msk.bf16.gmra.mrb[28].mxu1 %vm709_vm2, %v4378_v41  ;;  %9072 = vmatmul.mubr.msk.bf16.vlgmr.msra.gmra.mrb[52].mxu0 %vm709_vm2, %v4378_v41  ;;  %v10158_v4 = vunpack.i.h.bf16 %v10156_v43  ;;  %v10157_v29 = vunpack.i.l.bf16 %v10156_v43 }
0x15b0   : > { %4486 = vmatprep.mubr.bf16.mxu1 %v10939_v11  ;;  %9075 = vmatprep.mubr.msk.bf16.mxu0 %vm709_vm2, %v4379_v31 }
0x15b1   : > { %9080 = vmatpush3.bf16.msra.mxu0 %v10425_v40  ;;  %v4380_v32 = vpack.c.bf16 %v10158_v4, %v10157_v29  ;;  %v10442_v40 = vld [vmem:[#allocation9 + $0x90] ss:$12 sps:$4 sm:$0xff]  }
0x15b2   : > { %9081 = vmatprep.subr.bf16.mxu0 %v10426_v45 }
0x15b5   : > { %9082 = vmatpush3.bf16.msra.mxu0 %v10426_v45 }
0x15b6   : > { %9091 = vmatprep.subr.bf16.mxu0 %v10937_v2 }
0x15b7   : > { %8383 = vmatmul.mubr.msk.bf16.gmra.mrb[32].mxu1 %vm709_vm2, %v4379_v31  ;;  %9076 = vmatmul.mubr.msk.bf16.gmra.mrb[56].mxu0 %vm709_vm2, %v4380_v32 }
0x15b8   : > { %9083 = vmatprep.mubr.msk.bf16.mxu0 %vm709_vm2, %v4293_v37  ;;  %4496 = vmatprep.mubr.bf16.mxu1 %v10939_v11 }
0x15bf   : > { %8384 = vmatmul.mubr.msk.bf16.gmra.mrb[36].mxu1 %vm709_vm2, %v4380_v32  ;;  %9084 = vmatmul.mubr.msk.bf16.vlgmr.msra.gmra.mrb[52].mxu0 %vm709_vm2, %v11755_v16  ;;  %v10452_v32 = vld [vmem:[#allocation9 + $0xc4] ss:$12 sps:$4 sm:$0xff]  }
0x15c0   : > { %9092 = vmatpush3.bf16.msra.mxu0 %v4377_v56  ;;  %9087 = vmatprep.mubr.msk.bf16.mxu0 %vm709_vm2, %v11765_v23  ;;  %v10449_v56 = vld [vmem:[#allocation9 + $0xb0] ss:$12 sps:$4 sm:$0xff]  }
0x15c1   : > { %4648 = vmatprep.mubr.bf16.mxu1 %v10939_v11  ;;  %9097 = vmatprep.subr.bf16.mxu0 %v10439_v62 }
0x15c7   : > { %8395 = vmatmul.mubr.msk.bf16.vlgmr.msra.gmra.mrb[24].mxu1 %vm709_vm2, %v4293_v37  ;;  %9088 = vmatmul.mubr.msk.bf16.gmra.mrb[56].mxu0 %vm709_vm2, %v11762_v12  ;;  %v10450_v37 = vld [vmem:[#allocation9 + $0xc0] ss:$12 sps:$4 sm:$0xff]  }
0x15c8   : > { %4658 = vmatprep.mubr.bf16.mxu1 %v10939_v11  ;;  %9093 = vmatprep.mubr.msk.bf16.mxu0 %vm10938_vm0, %v10937_v2 }
0x15c9   : > { %4877 = vmatpush1.bf16.msra.mxu1 %v10433_v10  ;;  %v10453_v10 = vld [vmem:[#allocation9 + $0xd8] ss:$12 sps:$4 sm:$0xff]  }
0x15cf   : > { %8396 = vmatmul.mubr.msk.bf16.gmra.mrb[28].mxu1 %vm709_vm2, %v11755_v16  ;;  %9094 = vmatmul.mubr.msk.bf16.vlgmr.msra.gmra.mrb[60].mxu0 %vm599_vm1, %v11796_v47  ;;  %v10438_v16 = vld [vmem:[#allocation9 + $0x7c] ss:$12 sps:$4 sm:$0xff]  }
0x15d0   : > { %4668 = vmatprep.mubr.bf16.mxu1 %v10939_v11  ;;  %4878 = vmatprep.subr.bf16.mxu1 %v10438_v16  ;;  %v10456_v16 = vld [vmem:[#allocation9 + $0xc8] ss:$12 sps:$4 sm:$0xff]  }
0x15d1   : > { %4879 = vmatpush1.bf16.msra.mxu1 %v10436_v36  ;;  %9098 = vmatpush3.bf16.msra.mxu0 %v10439_v62  ;;  %v10457_v36 = vld [vmem:[#allocation9 + $0xe0] ss:$12 sps:$4 sm:$0xff]  }
0x15d2   : > { %9099 = vmatprep.subr.bf16.mxu0 %v10440_v0  ;;  %5166 = vmatprep.subr.bf16.mxu1 %v10444_v30  ;;  %v10459_v30 = vld [vmem:[#allocation11 + $0x20] ss:$12 sps:$4 sm:$0xff]  }
0x15d5   : > { %9100 = vmatpush3.bf16.msra.mxu0 %v10440_v0 }
0x15d6   : > { %9109 = vmatprep.subr.bf16.mxu0 %v10937_v2 }
0x15d7   : > { %8397 = vmatmul.mubr.msk.bf16.gmra.mrb[32].mxu1 %vm709_vm2, %v11765_v23 }
0x15d8   : > { %4678 = vmatprep.mubr.bf16.mxu1 %v10939_v11 }
0x15df   : > { %8398 = vmatmul.mubr.msk.bf16.gmra.mrb[36].mxu1 %vm709_vm2, %v11762_v12 }
0x15e0   : > { %4908 = vmatprep.mubr.bf16.mxu1 %v10939_v11 }
0x16a2   : > { %v4788_v1 = vpop.f32.mrb[60].mxu0 }
0x16a3   : > { %v4795_v6 = vmul.f32 2.0, %v4788_v1  ;;  %v9095_v7 = vpop.f32.mrb[61].mxu0 }
0x16a4   : > { %v4791_v3 = vpop.f32.mrb[62].mxu0 }
0x16a5   : > { %v4796_v27 = vmul.f32 2.0, %v4791_v3  ;;  %v9096_v12 = vpop.f32.mrb[63].mxu0  ;;  %v4797_v23 = vsub.f32 %v4795_v6, %v11775_v5 }
0x16a7   : > { %v4798_v28 = vsub.f32 %v4796_v27, %v11785_v42 }
0x16a9   : > { %v4819_v8 = vpack.c.bf16 %v4798_v28, %v4797_v23  ;;  %v10164_v14 = vpack.i.bf16 %v4798_v28, %v4797_v23 }
0x16ab   : > { %10165 = vrot.lane.b32.xlu1 %v10164_v14, %s10942_s26  ;;  %10160 = vrot.lane.b32.xlu0 %v10164_v14, %s10941_s23 }
0x16ac   : > { %8410 = vmatmul.mubr.msk.bf16.vlgmr.msra.gmra.mrb[24].mxu1 %vm709_vm2, %v4819_v8  ;;  %9101 = vmatprep.mubr.msk.bf16.mxu0 %vm709_vm2, %v4819_v8  ;;  %v10458_v8 = vld [vmem:[#allocation11 + $0x8] ss:$12 sps:$4 sm:$0xff]  }
0x16ad   : > { %4918 = vmatprep.mubr.bf16.mxu1 %v10939_v11  ;;  %5167 = vmatpush1.bf16.msra.mxu1 %v10442_v40 }
0x16ae   : > { %5168 = vmatprep.subr.bf16.mxu1 %v10447_v44 }
0x16af   : > { %10170 = vrot.lane.b32.xlu0 %v10164_v14, %s10940_s12  ;;  %v11897_v14 = vld [vmem:[%s11247_s10 + $0x10] sm:$0xff] }
0x16b1   : > { %5169 = vmatpush1.bf16.msra.mxu1 %v10445_v55 }
0x16b2   : > { %5450 = vmatprep.subr.bf16.mxu1 %v10452_v32 }
0x171d   : > { %v10166_v24 = vpop.permute.xlu1 %10165  ;;  %v10161_v9 = vpop.permute.xlu0 %10160 }
0x171e   : > { %v10168_v15 = vunpack.i.h.bf16 %v10166_v24  ;;  %v10167_v17 = vunpack.i.l.bf16 %v10166_v24  ;;  %v10163_v61 = vunpack.i.h.bf16 %v10161_v9  ;;  %v10162_v26 = vunpack.i.l.bf16 %v10161_v9  ;;  %v10460_v24 = vld [vmem:[#allocation11] ss:$12 sps:$4 sm:$0xff]   ;;  %v10465_v9 = vld [vmem:[#allocation11 + $0x1c] ss:$12 sps:$4 sm:$0xff]  }
0x1720   : > { %v4821_v39 = vpack.c.bf16 %v10168_v15, %v10167_v17  ;;  %v4820_v49 = vpack.c.bf16 %v10163_v61, %v10162_v26  ;;  %v10463_v15 = vld [vmem:[#allocation11 + $0x18] ss:$12 sps:$4 sm:$0xff]  }
0x1721   : > { %v10171_v50 = vpop.permute.xlu0 %10170 }
0x1722   : > { %8411 = vmatmul.mubr.msk.bf16.gmra.mrb[28].mxu1 %vm709_vm2, %v4820_v49  ;;  %9102 = vmatmul.mubr.msk.bf16.vlgmr.msra.gmra.mrb[52].mxu0 %vm709_vm2, %v4820_v49  ;;  %v10173_v51 = vunpack.i.h.bf16 %v10171_v50  ;;  %v10172_v53 = vunpack.i.l.bf16 %v10171_v50 }
0x1723   : > { %9110 = vmatpush3.bf16.msra.mxu0 %v11791_v46  ;;  %9105 = vmatprep.mubr.msk.bf16.mxu0 %vm709_vm2, %v4821_v39  ;;  %v11864_v46 = vld [vmem:[%s12296_s2 + $0x8] sm:$0xff]  }
0x1724   : > { %4928 = vmatprep.mubr.bf16.mxu1 %v10939_v11  ;;  %v4822_v54 = vpack.c.bf16 %v10173_v51, %v10172_v53  ;;  %9115 = vmatprep.subr.bf16.mxu0 %v10448_v33 }
0x172a   : > { %8412 = vmatmul.mubr.msk.bf16.gmra.mrb[32].mxu1 %vm709_vm2, %v4821_v39  ;;  %9106 = vmatmul.mubr.msk.bf16.gmra.mrb[56].mxu0 %vm709_vm2, %v4822_v54 }
0x172b   : > { %4938 = vmatprep.mubr.bf16.mxu1 %v10939_v11  ;;  %9111 = vmatprep.mubr.msk.bf16.mxu0 %vm10938_vm0, %v10937_v2 }
0x1732   : > { %8413 = vmatmul.mubr.msk.bf16.gmra.mrb[36].mxu1 %vm709_vm2, %v4822_v54  ;;  %9112 = vmatmul.mubr.msk.bf16.vlgmr.msra.gmra.mrb[64].mxu0 %vm599_vm1, %v11864_v46 }
0x1733   : > { %5198 = vmatprep.mubr.bf16.mxu1 %v10939_v11  ;;  %9116 = vmatpush3.bf16.msra.mxu0 %v10448_v33 }
0x1734   : > { %9117 = vmatprep.subr.bf16.mxu0 %v10449_v56 }
0x1737   : > { %9118 = vmatpush3.bf16.msra.mxu0 %v10449_v56 }
0x1738   : > { %9127 = vmatprep.subr.bf16.mxu0 %v10937_v2 }
0x1805   : > { %v5082_v57 = vpop.f32.mrb[64].mxu0 }
0x1806   : > { %v9113_v48 = vpop.f32.mrb[65].mxu0 }
0x1807   : > { %v5085_v22 = vpop.f32.mrb[66].mxu0 }
0x1808   : > { %v5109_v60 = vpack.c.bf16 %v5085_v22, %v5082_v57  ;;  %v10174_v63 = vpack.i.bf16 %v5085_v22, %v5082_v57  ;;  %v9114_v19 = vpop.f32.mrb[67].mxu0 }
0x180a   : > { %10175 = vrot.lane.b32.xlu1 %v10174_v63, %s10941_s23  ;;  %10180 = vrot.lane.b32.xlu0 %v10174_v63, %s10942_s26 }
0x180b   : > { %8428 = vmatmul.mubr.msk.bf16.vlgmr.msra.gmra.mrb[24].mxu1 %vm709_vm2, %v5109_v60  ;;  %9119 = vmatprep.mubr.msk.bf16.mxu0 %vm709_vm2, %v5109_v60 }
0x180c   : > { %5208 = vmatprep.mubr.bf16.mxu1 %v10939_v11  ;;  %5451 = vmatpush1.bf16.msra.mxu1 %v10450_v37 }
0x180d   : > { %5452 = vmatprep.subr.bf16.mxu1 %v10455_v58 }
0x180e   : > { %10185 = vrot.lane.b32.xlu1 %v10174_v63, %s10940_s12 }
0x1810   : > { %5453 = vmatpush1.bf16.msra.mxu1 %v10453_v10 }
0x187c   : > { %v10176_v52 = vpop.permute.xlu1 %10175  ;;  %v10181_v13 = vpop.permute.xlu0 %10180 }
0x187d   : > { %v10178_v20 = vunpack.i.h.bf16 %v10176_v52  ;;  %v10177_v25 = vunpack.i.l.bf16 %v10176_v52  ;;  %v10183_v34 = vunpack.i.h.bf16 %v10181_v13  ;;  %v10182_v38 = vunpack.i.l.bf16 %v10181_v13 }
0x187f   : > { %v5110_v41 = vpack.c.bf16 %v10178_v20, %v10177_v25  ;;  %v5111_v31 = vpack.c.bf16 %v10183_v34, %v10182_v38  ;;  %v10468_v20 = vld [vmem:[#allocation11 + $0x34] ss:$12 sps:$4 sm:$0xff]   ;;  %v10466_v25 = vld [vmem:[#allocation11 + $0x30] ss:$12 sps:$4 sm:$0xff]   ;;  %v10471_v34 = vld [vmem:[#allocation11 + $0x4c] ss:$12 sps:$4 sm:$0xff]  }
0x1880   : > { %v10186_v43 = vpop.permute.xlu1 %10185  ;;  %v10469_v38 = vld [vmem:[#allocation11 + $0x48] ss:$12 sps:$4 sm:$0xff]  }
0x1881   : > { %8429 = vmatmul.mubr.msk.bf16.gmra.mrb[28].mxu1 %vm709_vm2, %v5110_v41  ;;  %9120 = vmatmul.mubr.msk.bf16.vlgmr.msra.gmra.mrb[52].mxu0 %vm709_vm2, %v5110_v41  ;;  %v10188_v45 = vunpack.i.h.bf16 %v10186_v43  ;;  %v10187_v4 = vunpack.i.l.bf16 %v10186_v43  ;;  %v10472_v41 = vld [vmem:[#allocation11 + $0x38] ss:$12 sps:$4 sm:$0xff]  }
0x1882   : > { %9128 = vmatpush3.bf16.msra.mxu0 %v5109_v60  ;;  %5218 = vmatprep.mubr.bf16.mxu1 %v10939_v11 }
0x1883   : > { %9123 = vmatprep.mubr.msk.bf16.mxu0 %vm709_vm2, %v5111_v31  ;;  %v5112_v29 = vpack.c.bf16 %v10188_v45, %v10187_v4  ;;  %9133 = vmatprep.subr.bf16.mxu0 %v10456_v16 }
0x1889   : > { %8430 = vmatmul.mubr.msk.bf16.gmra.mrb[32].mxu1 %vm709_vm2, %v5111_v31  ;;  %9124 = vmatmul.mubr.msk.bf16.gmra.mrb[56].mxu0 %vm709_vm2, %v5112_v29  ;;  %v10473_v31 = vld [vmem:[#allocation11 + $0x50] ss:$12 sps:$4 sm:$0xff]  }
0x188a   : > { %5228 = vmatprep.mubr.bf16.mxu1 %v10939_v11  ;;  %9129 = vmatprep.mubr.msk.bf16.mxu0 %vm10938_vm0, %v10937_v2 }
0x1891   : > { %8431 = vmatmul.mubr.msk.bf16.gmra.mrb[36].mxu1 %vm709_vm2, %v5112_v29  ;;  %9130 = vmatmul.mubr.msk.bf16.vlgmr.msra.gmra.mrb[68].mxu0 %vm599_vm1, %v11864_v46 }
0x1892   : > { %5482 = vmatprep.mubr.bf16.mxu1 %v10939_v11  ;;  %9134 = vmatpush3.bf16.msra.mxu0 %v10456_v16 }
0x1893   : > { %9135 = vmatprep.subr.bf16.mxu0 %v10457_v36 }
0x1896   : > { %9136 = vmatpush3.bf16.msra.mxu0 %v10457_v36 }
0x1897   : > { %9145 = vmatprep.subr.bf16.mxu0 %v10458_v8 }
0x1964   : > { %v5362_v62 = vpop.f32.mrb[68].mxu0 }
0x1965   : > { %v5369_v0 = vmul.f32 2.0, %v5362_v62  ;;  %v9131_v1 = vpop.f32.mrb[69].mxu0 }
0x1966   : > { %v5365_v6 = vpop.f32.mrb[70].mxu0 }
0x1967   : > { %v5370_v7 = vmul.f32 2.0, %v5365_v6  ;;  %v9132_v3 = vpop.f32.mrb[71].mxu0  ;;  %v5371_v27 = vsub.f32 %v5369_v0, %v11775_v5  ;;  %v11904_v5 = vld [vmem:[%s11247_s10 + $0x18] sm:$0xff] }
0x1968   : > { %v11926_v56 = vpack.c.bf16 %v11904_v5, %v11897_v14 }
0x1969   : > { %v5372_v12 = vsub.f32 %v5370_v7, %v11785_v42  ;;  %v10462_v42 = vld [vmem:[#allocation11 + $0x4] ss:$12 sps:$4 sm:$0xff]  }
0x196a   : > { %5668 = vmatprep.subr.bf16.mxu1 %v10462_v42  ;;  %v10477_v42 = vld [vmem:[#allocation11 + $0x78] ss:$12 sps:$4 sm:$0xff]  }
0x196b   : > { %v5393_v23 = vpack.c.bf16 %v5372_v12, %v5371_v27  ;;  %v10194_v28 = vpack.i.bf16 %v5372_v12, %v5371_v27 }
0x196d   : > { %10195 = vrot.lane.b32.xlu1 %v10194_v28, %s10942_s26  ;;  %10190 = vrot.lane.b32.xlu0 %v10194_v28, %s10941_s23 }
0x196e   : > { %8443 = vmatmul.mubr.msk.bf16.vlgmr.msra.gmra.mrb[24].mxu1 %vm709_vm2, %v5393_v23  ;;  %9137 = vmatprep.mubr.msk.bf16.mxu0 %vm709_vm2, %v5393_v23  ;;  %v10476_v23 = vld [vmem:[#allocation11 + $0x64] ss:$12 sps:$4 sm:$0xff]  }
0x196f   : > { %5492 = vmatprep.mubr.bf16.mxu1 %v10939_v11  ;;  %5669 = vmatpush1.bf16.msra.mxu1 %v10460_v24  ;;  %v10480_v24 = vld [vmem:[#allocation11 + $0x68] ss:$12 sps:$4 sm:$0xff]  }
0x1970   : > { %5670 = vmatprep.subr.bf16.mxu1 %v10465_v9  ;;  %v10481_v9 = vld [vmem:[#allocation11 + $0x80] ss:$12 sps:$4 sm:$0xff]  }
0x1971   : > { %10200 = vrot.lane.b32.xlu0 %v10194_v28, %s10940_s12  ;;  %4275 = vrot.lane.b32.xlu1 %v11897_v14, %s10941_s23  ;;  %v10474_v28 = vld [vmem:[#allocation11 + $0x60] ss:$12 sps:$4 sm:$0xff]  }
0x1973   : > { %5671 = vmatpush1.bf16.msra.mxu1 %v10463_v15 }
0x1974   : > { %5948 = vmatprep.subr.bf16.mxu1 %v10468_v20 }
0x1975   : > { %4277 = vrot.lane.b32.xlu0 %v11904_v5, %s10941_s23  ;;  %4281 = vrot.lane.b32.xlu1 %v11897_v14, %s10942_s26 }
0x1979   : > { %4283 = vrot.lane.b32.xlu0 %v11904_v5, %s10942_s26  ;;  %4287 = vrot.lane.b32.xlu1 %v11897_v14, %s10940_s12 }
0x197d   : > { %4289 = vrot.lane.b32.xlu0 %v11904_v5, %s10940_s12 }
0x19df   : > { %v10196_v17 = vpop.permute.xlu1 %10195  ;;  %v10191_v61 = vpop.permute.xlu0 %10190 }
0x19e0   : > { %v10198_v26 = vunpack.i.h.bf16 %v10196_v17  ;;  %v10197_v39 = vunpack.i.l.bf16 %v10196_v17  ;;  %v10193_v49 = vunpack.i.h.bf16 %v10191_v61  ;;  %v10192_v50 = vunpack.i.l.bf16 %v10191_v61 }
0x19e2   : > { %v5395_v51 = vpack.c.bf16 %v10198_v26, %v10197_v39  ;;  %v5394_v53 = vpack.c.bf16 %v10193_v49, %v10192_v50 }
0x19e3   : > { %v10201_v54 = vpop.permute.xlu0 %10200  ;;  %v11920_v55 = vpop.permute.xlu1 %4275 }
0x19e4   : > { %8444 = vmatmul.mubr.msk.bf16.gmra.mrb[28].mxu1 %vm709_vm2, %v5394_v53  ;;  %9138 = vmatmul.mubr.msk.bf16.vlgmr.msra.gmra.mrb[52].mxu0 %vm709_vm2, %v5394_v53  ;;  %v10203_v40 = vunpack.i.h.bf16 %v10201_v54  ;;  %v10202_v44 = vunpack.i.l.bf16 %v10201_v54 }
0x19e5   : > { %9141 = vmatprep.mubr.msk.bf16.mxu0 %vm709_vm2, %v5395_v51  ;;  %5502 = vmatprep.mubr.bf16.mxu1 %v10939_v11 }
0x19e6   : > { %9146 = vmatpush3.bf16.msra.mxu0 %v10458_v8  ;;  %v5396_v57 = vpack.c.bf16 %v10203_v40, %v10202_v44  ;;  %v10479_v8 = vld [vmem:[#allocation11 + $0x7c] ss:$12 sps:$4 sm:$0xff]  }
0x19e7   : > { %9147 = vmatprep.subr.bf16.mxu0 %v10459_v30  ;;  %v11922_v33 = vpop.permute.xlu0 %4277  ;;  %v11934_v48 = vpop.permute.xlu1 %4281 }
0x19e8   : > { %v5613_v60 = vpack.c.bf16 %v11922_v33, %v11920_v55 }
0x19ea   : > { %9148 = vmatpush3.bf16.msra.mxu0 %v10459_v30 }
0x19eb   : > { %9157 = vmatprep.subr.bf16.mxu0 %v10937_v2  ;;  %v11936_v22 = vpop.permute.xlu0 %4283  ;;  %v11944_v19 = vpop.permute.xlu1 %4287 }
0x19ec   : > { %8445 = vmatmul.mubr.msk.bf16.gmra.mrb[32].mxu1 %vm709_vm2, %v5395_v51  ;;  %9142 = vmatmul.mubr.msk.bf16.gmra.mrb[56].mxu0 %vm709_vm2, %v5396_v57  ;;  %v5614_v63 = vpack.c.bf16 %v11936_v22, %v11934_v48 }
0x19ed   : > { %5512 = vmatprep.mubr.bf16.mxu1 %v10939_v11  ;;  %9149 = vmatprep.mubr.msk.bf16.mxu0 %vm709_vm2, %v11926_v56 }
0x19ef   : > { %v11946_v52 = vpop.permute.xlu0 %4289 }
0x19f0   : > { %v5615_v13 = vpack.c.bf16 %v11946_v52, %v11944_v19 }
0x19f4   : > { %8446 = vmatmul.mubr.msk.bf16.gmra.mrb[36].mxu1 %vm709_vm2, %v5396_v57  ;;  %9150 = vmatmul.mubr.msk.bf16.vlgmr.msra.gmra.mrb[52].mxu0 %vm709_vm2, %v5613_v60 }
0x19f5   : > { %5700 = vmatprep.mubr.bf16.mxu1 %v10939_v11  ;;  %9153 = vmatprep.mubr.msk.bf16.mxu0 %vm709_vm2, %v5614_v63 }
0x19f6   : > { %9158 = vmatpush3.bf16.msra.mxu0 %v11926_v56 }
0x19f7   : > { %9163 = vmatprep.subr.bf16.mxu0 %v10472_v41 }
0x19fc   : > { %8457 = vmatmul.mubr.msk.bf16.vlgmr.msra.gmra.mrb[24].mxu1 %vm709_vm2, %v11926_v56  ;;  %9154 = vmatmul.mubr.msk.bf16.gmra.mrb[56].mxu0 %vm709_vm2, %v5615_v13 }
0x19fd   : > { %5710 = vmatprep.mubr.bf16.mxu1 %v10939_v11  ;;  %9159 = vmatprep.mubr.msk.bf16.mxu0 %vm10938_vm0, %v10937_v2 }
0x19fe   : > { %5949 = vmatpush1.bf16.msra.mxu1 %v10466_v25 }
0x19ff   : > { %5950 = vmatprep.subr.bf16.mxu1 %v10471_v34 }
0x1a02   : > { %5951 = vmatpush1.bf16.msra.mxu1 %v10469_v38 }
0x1a03   : > { %6232 = vmatprep.subr.bf16.mxu1 %v10476_v23 }
0x1a04   : > { %8458 = vmatmul.mubr.msk.bf16.gmra.mrb[28].mxu1 %vm709_vm2, %v5613_v60  ;;  %9160 = vmatmul.mubr.msk.bf16.vlgmr.msra.gmra.mrb[72].mxu0 %vm599_vm1, %v11796_v47 }
0x1a05   : > { %5720 = vmatprep.mubr.bf16.mxu1 %v10939_v11  ;;  %9164 = vmatpush3.bf16.msra.mxu0 %v10472_v41  ;;  %v10484_v41 = vld [vmem:[#allocation11 + $0x94] ss:$12 sps:$4 sm:$0xff]  }
0x1a06   : > { %9165 = vmatprep.subr.bf16.mxu0 %v10473_v31 }
0x1a09   : > { %9166 = vmatpush3.bf16.msra.mxu0 %v10473_v31  ;;  %v10482_v31 = vld [vmem:[#allocation11 + $0x90] ss:$12 sps:$4 sm:$0xff]  }
0x1a0a   : > { %9175 = vmatprep.subr.bf16.mxu0 %v10937_v2 }
0x1a0c   : > { %8459 = vmatmul.mubr.msk.bf16.gmra.mrb[32].mxu1 %vm709_vm2, %v5614_v63 }
0x1a0d   : > { %5730 = vmatprep.mubr.bf16.mxu1 %v10939_v11 }
0x1a14   : > { %8460 = vmatmul.mubr.msk.bf16.gmra.mrb[36].mxu1 %vm709_vm2, %v5615_v13 }
0x1a15   : > { %5980 = vmatprep.mubr.bf16.mxu1 %v10939_v11 }
0x1ad7   : > { %v5864_v43 = vpop.f32.mrb[72].mxu0 }
0x1ad8   : > { %v9161_v45 = vpop.f32.mrb[73].mxu0 }
0x1ad9   : > { %v5867_v4 = vpop.f32.mrb[74].mxu0  ;;  %v10488_v45 = vld [vmem:[#allocation11 + $0x98] ss:$12 sps:$4 sm:$0xff]  }
0x1ada   : > { %v5891_v29 = vpack.c.bf16 %v5867_v4, %v5864_v43  ;;  %v10204_v32 = vpack.i.bf16 %v5867_v4, %v5864_v43  ;;  %v9162_v37 = vpop.f32.mrb[75].mxu0  ;;  %v10485_v43 = vld [vmem:[#allocation11 + $0xa8] ss:$12 sps:$4 sm:$0xff]   ;;  %v10489_v4 = vld [vmem:[#allocation11 + $0xb0] ss:$12 sps:$4 sm:$0xff]  }
0x1adc   : > { %10205 = vrot.lane.b32.xlu1 %v10204_v32, %s10941_s23  ;;  %10210 = vrot.lane.b32.xlu0 %v10204_v32, %s10942_s26 }
0x1add   : > { %8472 = vmatmul.mubr.msk.bf16.vlgmr.msra.gmra.mrb[24].mxu1 %vm709_vm2, %v5891_v29  ;;  %9167 = vmatprep.mubr.msk.bf16.mxu0 %vm709_vm2, %v5891_v29 }
0x1ade   : > { %5990 = vmatprep.mubr.bf16.mxu1 %v10939_v11  ;;  %6233 = vmatpush1.bf16.msra.mxu1 %v10474_v28 }
0x1adf   : > { %6234 = vmatprep.subr.bf16.mxu1 %v10479_v8 }
0x1ae0   : > { %10215 = vrot.lane.b32.xlu1 %v10204_v32, %s10940_s12 }
0x1ae2   : > { %6235 = vmatpush1.bf16.msra.mxu1 %v10477_v42  ;;  %v10492_v42 = vld [vmem:[#allocation11 + $0xc4] ss:$12 sps:$4 sm:$0xff]  }
0x1ae3   : > { %6512 = vmatprep.subr.bf16.mxu1 %v10484_v41 }
0x1b4e   : > { %v10206_v58 = vpop.permute.xlu1 %10205  ;;  %v10211_v10 = vpop.permute.xlu0 %10210 }
0x1b4f   : > { %v10208_v16 = vunpack.i.h.bf16 %v10206_v58  ;;  %v10207_v36 = vunpack.i.l.bf16 %v10206_v58  ;;  %v10213_v62 = vunpack.i.h.bf16 %v10211_v10  ;;  %v10212_v0 = vunpack.i.l.bf16 %v10211_v10 }
0x1b51   : > { %v5892_v1 = vpack.c.bf16 %v10208_v16, %v10207_v36  ;;  %v5893_v6 = vpack.c.bf16 %v10213_v62, %v10212_v0 }
0x1b52   : > { %v10216_v7 = vpop.permute.xlu1 %10215 }
0x1b53   : > { %8473 = vmatmul.mubr.msk.bf16.gmra.mrb[28].mxu1 %vm709_vm2, %v5892_v1  ;;  %9168 = vmatmul.mubr.msk.bf16.vlgmr.msra.gmra.mrb[52].mxu0 %vm709_vm2, %v5892_v1  ;;  %v10218_v3 = vunpack.i.h.bf16 %v10216_v7  ;;  %v10217_v27 = vunpack.i.l.bf16 %v10216_v7 }
0x1b54   : > { %9176 = vmatpush3.bf16.msra.mxu0 %v5891_v29  ;;  %6000 = vmatprep.mubr.bf16.mxu1 %v10939_v11 }
0x1b55   : > { %9171 = vmatprep.mubr.msk.bf16.mxu0 %vm709_vm2, %v5893_v6  ;;  %v5894_v12 = vpack.c.bf16 %v10218_v3, %v10217_v27  ;;  %9181 = vmatprep.subr.bf16.mxu0 %v10480_v24 }
0x1b5b   : > { %8474 = vmatmul.mubr.msk.bf16.gmra.mrb[32].mxu1 %vm709_vm2, %v5893_v6  ;;  %9172 = vmatmul.mubr.msk.bf16.gmra.mrb[56].mxu0 %vm709_vm2, %v5894_v12 }
0x1b5c   : > { %6010 = vmatprep.mubr.bf16.mxu1 %v10939_v11  ;;  %9177 = vmatprep.mubr.msk.bf16.mxu0 %vm10938_vm0, %v10937_v2 }
0x1b63   : > { %8475 = vmatmul.mubr.msk.bf16.gmra.mrb[36].mxu1 %vm709_vm2, %v5894_v12  ;;  %9178 = vmatmul.mubr.msk.bf16.vlgmr.msra.gmra.mrb[76].mxu0 %vm599_vm1, %v11796_v47 }
0x1b64   : > { %6264 = vmatprep.mubr.bf16.mxu1 %v10939_v11  ;;  %9182 = vmatpush3.bf16.msra.mxu0 %v10480_v24  ;;  %v10490_v24 = vld [vmem:[#allocation11 + $0xc0] ss:$12 sps:$4 sm:$0xff]  }
0x1b65   : > { %9183 = vmatprep.subr.bf16.mxu0 %v10481_v9 }
0x1b68   : > { %9184 = vmatpush3.bf16.msra.mxu0 %v10481_v9  ;;  %v10495_v9 = vld [vmem:[#allocation11 + $0xdc] ss:$12 sps:$4 sm:$0xff]  }
0x1b69   : > { %9193 = vmatprep.subr.bf16.mxu0 %v10937_v2 }
0x1c36   : > { %v6144_v15 = vpop.f32.mrb[76].mxu0 }
0x1c37   : > { %v6151_v47 = vmul.f32 2.0, %v6144_v15  ;;  %v9179_v17 = vpop.f32.mrb[77].mxu0  ;;  %v10493_v15 = vld [vmem:[#allocation11 + $0xd8] ss:$12 sps:$4 sm:$0xff]  }
0x1c38   : > { %v6147_v61 = vpop.f32.mrb[78].mxu0  ;;  %v10497_v17 = vld [vmem:[#allocation11 + $0xe0] ss:$12 sps:$4 sm:$0xff]  }
0x1c39   : > { %v6152_v26 = vmul.f32 2.0, %v6147_v61  ;;  %v9180_v39 = vpop.f32.mrb[79].mxu0  ;;  %v6153_v49 = vsub.f32 %v6151_v47, %v11897_v14  ;;  %v10496_v47 = vld [vmem:[#allocation11 + $0xc8] ss:$12 sps:$4 sm:$0xff]  }
0x1c3b   : > { %v6154_v50 = vsub.f32 %v6152_v26, %v11904_v5 }
0x1c3d   : > { %v6175_v51 = vpack.c.bf16 %v6154_v50, %v6153_v49  ;;  %v10219_v53 = vpack.i.bf16 %v6154_v50, %v6153_v49 }
0x1c3f   : > { %10220 = vrot.lane.b32.xlu0 %v10219_v53, %s10941_s23  ;;  %10225 = vrot.lane.b32.xlu1 %v10219_v53, %s10942_s26 }
0x1c40   : > { %8487 = vmatmul.mubr.msk.bf16.vlgmr.msra.gmra.mrb[24].mxu1 %vm709_vm2, %v6175_v51  ;;  %9185 = vmatprep.mubr.msk.bf16.mxu0 %vm709_vm2, %v6175_v51 }
0x1c41   : > { %6274 = vmatprep.mubr.bf16.mxu1 %v10939_v11  ;;  %6513 = vmatpush1.bf16.msra.mxu1 %v10482_v31 }
0x1c43   : > { %10230 = vrot.lane.b32.xlu0 %v10219_v53, %s10940_s12 }
0x1cb1   : > { %v10221_v54 = vpop.permute.xlu0 %10220  ;;  %v10226_v30 = vpop.permute.xlu1 %10225 }
0x1cb2   : > { %v10223_v40 = vunpack.i.h.bf16 %v10221_v54  ;;  %v10222_v44 = vunpack.i.l.bf16 %v10221_v54  ;;  %v10228_v57 = vunpack.i.h.bf16 %v10226_v30  ;;  %v10227_v60 = vunpack.i.l.bf16 %v10226_v30 }
0x1cb4   : > { %v6176_v63 = vpack.c.bf16 %v10223_v40, %v10222_v44  ;;  %v6177_v13 = vpack.c.bf16 %v10228_v57, %v10227_v60 }
0x1cb5   : > { %v10231_v20 = vpop.permute.xlu0 %10230 }
0x1cb6   : > { %8488 = vmatmul.mubr.msk.bf16.gmra.mrb[28].mxu1 %vm709_vm2, %v6176_v63  ;;  %9186 = vmatmul.mubr.msk.bf16.vlgmr.msra.gmra.mrb[52].mxu0 %vm709_vm2, %v6176_v63  ;;  %v10233_v25 = vunpack.i.h.bf16 %v10231_v20  ;;  %v10232_v34 = vunpack.i.l.bf16 %v10231_v20 }
0x1cb7   : > { %6284 = vmatprep.mubr.bf16.mxu1 %v10939_v11  ;;  %9189 = vmatprep.mubr.msk.bf16.mxu0 %vm709_vm2, %v6177_v13 }
0x1cb8   : > { %9194 = vmatpush3.bf16.msra.mxu0 %v11926_v56  ;;  %v6178_v38 = vpack.c.bf16 %v10233_v25, %v10232_v34  ;;  %v10487_v56 = vld [vmem:[#allocation11 + $0xac] ss:$12 sps:$4 sm:$0xff]  }
0x1cb9   : > { %6514 = vmatprep.subr.bf16.mxu1 %v10487_v56  ;;  %9199 = vmatprep.subr.bf16.mxu0 %v10488_v45 }
0x1cba   : > { %6515 = vmatpush1.bf16.msra.mxu1 %v10485_v43 }
0x1cbb   : > { %6796 = vmatprep.subr.bf16.mxu1 %v10492_v42 }
0x1cbe   : > { %8489 = vmatmul.mubr.msk.bf16.gmra.mrb[32].mxu1 %vm709_vm2, %v6177_v13  ;;  %9190 = vmatmul.mubr.msk.bf16.gmra.mrb[56].mxu0 %vm709_vm2, %v6178_v38 }
0x1cbf   : > { %6294 = vmatprep.mubr.bf16.mxu1 %v10939_v11  ;;  %9195 = vmatprep.mubr.msk.bf16.mxu0 %vm10938_vm0, %v10937_v2 }
0x1cc6   : > { %8490 = vmatmul.mubr.msk.bf16.gmra.mrb[36].mxu1 %vm709_vm2, %v6178_v38  ;;  %9196 = vmatmul.mubr.msk.bf16.vlgmr.msra.gmra.mrb[80].mxu0 %vm599_vm1, %v11864_v46 }
0x1cc7   : > { %6544 = vmatprep.mubr.bf16.mxu1 %v10939_v11  ;;  %9200 = vmatpush3.bf16.msra.mxu0 %v10488_v45 }
0x1cc8   : > { %9201 = vmatprep.subr.bf16.mxu0 %v10489_v4 }
0x1ccb   : > { %9202 = vmatpush3.bf16.msra.mxu0 %v10489_v4 }
0x1ccc   : > { %9211 = vmatprep.subr.bf16.mxu0 %v10937_v2 }
0x1d99   : > { %v6428_v29 = vpop.f32.mrb[80].mxu0 }
0x1d9a   : > { %v9197_v32 = vpop.f32.mrb[81].mxu0 }
0x1d9b   : > { %v6431_v37 = vpop.f32.mrb[82].mxu0 }
0x1d9c   : > { %v6455_v58 = vpack.c.bf16 %v6431_v37, %v6428_v29  ;;  %v10234_v10 = vpack.i.bf16 %v6431_v37, %v6428_v29  ;;  %v9198_v16 = vpop.f32.mrb[83].mxu0  ;;  %v12060_v29 = vld [vmem:[%s12349_s22] sm:$0x7] }
0x1d9e   : > { %10235 = vrot.lane.b32.xlu1 %v10234_v10, %s10941_s23  ;;  %10240 = vrot.lane.b32.xlu0 %v10234_v10, %s10942_s26 }
0x1d9f   : > { %8502 = vmatmul.mubr.msk.bf16.vlgmr.msra.gmra.mrb[24].mxu1 %vm709_vm2, %v6455_v58  ;;  %9203 = vmatprep.mubr.msk.bf16.mxu0 %vm709_vm2, %v6455_v58 }
0x1da0   : > { %6554 = vmatprep.mubr.bf16.mxu1 %v10939_v11  ;;  %6797 = vmatpush1.bf16.msra.mxu1 %v10490_v24 }
0x1da1   : > { %6798 = vmatprep.subr.bf16.mxu1 %v10495_v9 }
0x1da2   : > { %10245 = vrot.lane.b32.xlu1 %v10234_v10, %s10940_s12 }
0x1da4   : > { %6799 = vmatpush1.bf16.msra.mxu1 %v10493_v15 }
0x1e10   : > { %v10236_v36 = vpop.permute.xlu1 %10235  ;;  %v10241_v62 = vpop.permute.xlu0 %10240 }
0x1e11   : > { %v10238_v0 = vunpack.i.h.bf16 %v10236_v36  ;;  %v10237_v1 = vunpack.i.l.bf16 %v10236_v36  ;;  %v10243_v6 = vunpack.i.h.bf16 %v10241_v62  ;;  %v10242_v7 = vunpack.i.l.bf16 %v10241_v62 }
0x1e13   : > { %v6456_v3 = vpack.c.bf16 %v10238_v0, %v10237_v1  ;;  %v6457_v27 = vpack.c.bf16 %v10243_v6, %v10242_v7 }
0x1e14   : > { %v10246_v12 = vpop.permute.xlu1 %10245 }
0x1e15   : > { %8503 = vmatmul.mubr.msk.bf16.gmra.mrb[28].mxu1 %vm709_vm2, %v6456_v3  ;;  %9204 = vmatmul.mubr.msk.bf16.vlgmr.msra.gmra.mrb[52].mxu0 %vm709_vm2, %v6456_v3  ;;  %v10248_v23 = vunpack.i.h.bf16 %v10246_v12  ;;  %v10247_v28 = vunpack.i.l.bf16 %v10246_v12 }
0x1e16   : > { %9212 = vmatpush3.bf16.msra.mxu0 %v6455_v58  ;;  %6564 = vmatprep.mubr.bf16.mxu1 %v10939_v11 }
0x1e17   : > { %9207 = vmatprep.mubr.msk.bf16.mxu0 %vm709_vm2, %v6457_v27  ;;  %v6458_v8 = vpack.c.bf16 %v10248_v23, %v10247_v28  ;;  %9217 = vmatprep.subr.bf16.mxu0 %v10496_v47 }
0x1e1d   : > { %8504 = vmatmul.mubr.msk.bf16.gmra.mrb[32].mxu1 %vm709_vm2, %v6457_v27  ;;  %9208 = vmatmul.mubr.msk.bf16.gmra.mrb[56].mxu0 %vm709_vm2, %v6458_v8 }
0x1e1e   : > { %6574 = vmatprep.mubr.bf16.mxu1 %v10939_v11  ;;  %9213 = vmatprep.mubr.msk.bf16.mxu0 %vm10938_vm0, %v10937_v2 }
0x1e25   : > { %8505 = vmatmul.mubr.msk.bf16.gmra.mrb[36].mxu1 %vm709_vm2, %v6458_v8  ;;  %9214 = vmatmul.mubr.msk.bf16.vlgmr.msra.gmra.mrb[84].mxu0 %vm599_vm1, %v11864_v46 }
0x1e26   : > { %6828 = vmatprep.mubr.bf16.mxu1 %v10939_v11  ;;  %9218 = vmatpush3.bf16.msra.mxu0 %v10496_v47 }
0x1e27   : > { %9219 = vmatprep.subr.bf16.mxu0 %v10497_v17 }
0x1e2a   : > { %9220 = vmatpush3.bf16.msra.mxu0 %v10497_v17 }
0x1e2b   : > { %9229 = vmatprep.subr.bf16.mxu0 %v10937_v2 }
0x1ef8   : > { %v6708_v61 = vpop.f32.mrb[84].mxu0 }
0x1ef9   : > { %v6715_v46 = vmul.f32 2.0, %v6708_v61  ;;  %v9215_v26 = vpop.f32.mrb[85].mxu0 }
0x1efa   : > { %v6711_v39 = vpop.f32.mrb[86].mxu0 }
0x1efb   : > { %v6716_v49 = vmul.f32 2.0, %v6711_v39  ;;  %v9216_v50 = vpop.f32.mrb[87].mxu0  ;;  %v6717_v51 = vsub.f32 %v6715_v46, %v11897_v14 }
0x1efd   : > { %v6718_v53 = vsub.f32 %v6716_v49, %v11904_v5 }
0x1eff   : > { %v6739_v54 = vpack.c.bf16 %v6718_v53, %v6717_v51  ;;  %v10249_v30 = vpack.i.bf16 %v6718_v53, %v6717_v51 }
0x1f01   : > { %10250 = vrot.lane.b32.xlu0 %v10249_v30, %s10941_s23  ;;  %8517 = vmatmul.mubr.msk.bf16.vlgmr.msra.gmra.mrb[24].mxu1 %vm709_vm2, %v6739_v54 }
0x1f02   : > { %10255 = vrot.lane.b32.xlu1 %v10249_v30, %s10942_s26  ;;  %9221 = vmatprep.mubr.msk.bf16.mxu0 %vm709_vm2, %v6739_v54 }
0x1f03   : > { %6838 = vmatprep.mubr.bf16.mxu1 %v10939_v11 }
0x1f05   : > { %10260 = vrot.lane.b32.xlu0 %v10249_v30, %s10940_s12 }
0x1f73   : > { %v10251_v40 = vpop.permute.xlu0 %10250 }
0x1f74   : > { %v10253_v44 = vunpack.i.h.bf16 %v10251_v40  ;;  %v10252_v57 = vunpack.i.l.bf16 %v10251_v40  ;;  %v10256_v60 = vpop.permute.xlu1 %10255 }
0x1f75   : > { %v10258_v63 = vunpack.i.h.bf16 %v10256_v60  ;;  %v10257_v13 = vunpack.i.l.bf16 %v10256_v60 }
0x1f76   : > { %v6740_v20 = vpack.c.bf16 %v10253_v44, %v10252_v57 }
0x1f77   : > { %v6741_v25 = vpack.c.bf16 %v10258_v63, %v10257_v13  ;;  %v10261_v34 = vpop.permute.xlu0 %10260 }
0x1f78   : > { %8518 = vmatmul.mubr.msk.bf16.gmra.mrb[28].mxu1 %vm709_vm2, %v6740_v20  ;;  %9222 = vmatmul.mubr.msk.bf16.vlgmr.msra.gmra.mrb[52].mxu0 %vm709_vm2, %v6740_v20  ;;  %v10263_v38 = vunpack.i.h.bf16 %v10261_v34  ;;  %v10262_v41 = vunpack.i.l.bf16 %v10261_v34 }
0x1f79   : > { %6848 = vmatprep.mubr.bf16.mxu1 %v10939_v11  ;;  %9225 = vmatprep.mubr.msk.bf16.mxu0 %vm709_vm2, %v6741_v25 }
0x1f7a   : > { %v6742_v31 = vpack.c.bf16 %v10263_v38, %v10262_v41 }
0x1f80   : > { %8519 = vmatmul.mubr.msk.bf16.gmra.mrb[32].mxu1 %vm709_vm2, %v6741_v25  ;;  %9226 = vmatmul.mubr.msk.bf16.gmra.mrb[56].mxu0 %vm709_vm2, %v6742_v31 }
0x1f81   : > { %6858 = vmatprep.mubr.bf16.mxu1 %v10939_v11  ;;  %9231 = vmatprep.mubr.msk.bf16.mxu0 %vm10938_vm0, %v10937_v2  ;;  %v12065_v11 = vrot.slane %v12060_v29, %v3251_v35 }
0x1f88   : > { %8520 = vmatmul.mubr.msk.bf16.gmra.mrb[36].mxu1 %vm709_vm2, %v6742_v31 }
0x1fd4   : > { %v12049_v56 = vpop.f32.mrb[24].mxu1 }
0x1fd5   : > { %v12051_v43 = vpop.f32.mrb[25].mxu1 }
0x1fd6   : > { %v12053_v45 = vpop.f32.mrb[26].mxu1 }
0x1fd7   : > { %v12055_v4 = vpop.f32.mrb[27].mxu1 }
0x204b   : > { %v6840_v32 = vpop.f32.mrb[28].mxu1 }
0x204c   : > { %v6981_v37 = vadd.f32 %v12065_v11, %v6840_v32  ;;  %v12068_v58 = vpop.f32.mrb[29].mxu1 }
0x204d   : > { %v6844_v10 = vpop.f32.mrb[30].mxu1 }
0x204e   : > { %v8527_v16 = vmul.f32 -1.442695, %v6981_v37  ;;  %v6984_v36 = vadd.f32 %v12065_v11, %v6844_v10  ;;  %v12071_v62 = vpop.f32.mrb[31].mxu1 }
0x2050   : > { %10588 = vpow2.f32 %v8527_v16  ;;  %v8528_v0 = vmul.f32 -1.442695, %v6984_v36 }
0x2052   : > { %10590 = vpow2.f32 %v8528_v0  ;;  %v6975_v0 = vadd.f32 %v12065_v11, %v12049_v56 }
0x2053   : > { %v6850_v1 = vpop.f32.mrb[32].mxu1 }
0x2054   : > { %v6987_v6 = vadd.f32 %v12065_v11, %v6850_v1  ;;  %v12074_v7 = vpop.f32.mrb[33].mxu1  ;;  %v6978_v1 = vadd.f32 %v12065_v11, %v12053_v45 }
0x2055   : > { %v6854_v35 = vpop.f32.mrb[34].mxu1 }
0x2056   : > { %v8529_v3 = vmul.f32 -1.442695, %v6987_v6  ;;  %v6990_v27 = vadd.f32 %v12065_v11, %v6854_v35  ;;  %v12077_v12 = vpop.f32.mrb[35].mxu1  ;;  %v8525_v6 = vmul.f32 -1.442695, %v6975_v0 }
0x2057   : > { %v8526_v35 = vmul.f32 -1.442695, %v6978_v1 }
0x2058   : > { %10592 = vpow2.f32 %v8529_v3  ;;  %v8530_v23 = vmul.f32 -1.442695, %v6990_v27 }
0x205a   : > { %v10589_v28 = vpop.eup %10588  ;;  %10594 = vpow2.f32 %v8530_v23 }
0x205b   : > { %v7025_v8 = vadd.f32 1.0, %v10589_v28  ;;  %v6860_v42 = vpop.f32.mrb[36].mxu1 }
0x205c   : > { %v10591_v24 = vpop.eup %10590  ;;  %v6993_v9 = vadd.f32 %v12065_v11, %v6860_v42  ;;  %v12080_v15 = vpop.f32.mrb[37].mxu1 }
0x205d   : > { %10596 = vrcp.f32 %v7025_v8  ;;  %v7026_v47 = vadd.f32 1.0, %v10591_v24  ;;  %v6864_v17 = vpop.f32.mrb[38].mxu1 }
0x205e   : > { %v8531_v61 = vmul.f32 -1.442695, %v6993_v9  ;;  %v6996_v46 = vadd.f32 %v12065_v11, %v6864_v17  ;;  %v12083_v26 = vpop.f32.mrb[39].mxu1 }
0x205f   : > { %10598 = vrcp.f32 %v7026_v47 }
0x2060   : > { %v8532_v39 = vmul.f32 -1.442695, %v6996_v46  ;;  %10600 = vpow2.f32 %v8531_v61 }
0x2062   : > { %v10593_v49 = vpop.eup %10592  ;;  %10602 = vpow2.f32 %v8532_v39 }
0x2063   : > { %v7027_v50 = vadd.f32 1.0, %v10593_v49 }
0x2064   : > { %v10595_v51 = vpop.eup %10594 }
0x2065   : > { %10604 = vrcp.f32 %v7027_v50  ;;  %v7028_v53 = vadd.f32 1.0, %v10595_v51 }
0x2067   : > { %v10597_v54 = vpop.eup %10596  ;;  %10606 = vrcp.f32 %v7028_v53 }
0x2068   : > { %v12086_v30 = vmul.f32 %v10597_v54, %v11920_v55  ;;  %v10498_v54 = vld [vmem:[#allocation12 + $0x10] sm:$0xff]  }
0x2069   : > { %v10599_v40 = vpop.eup %10598 }
0x206a   : > { %7105 = vrot.lane.b32.xlu1 %v12086_v30, %s10940_s12  ;;  %v12091_v44 = vmul.f32 %v10599_v40, %v11922_v33  ;;  %v10601_v57 = vpop.eup %10600  ;;  %v10499_v40 = vld [vmem:[#allocation12 + $0x18] sm:$0xff]  }
0x206b   : > { %v7029_v60 = vadd.f32 1.0, %v10601_v57  ;;  %v10500_v57 = vld [vmem:[#allocation12] sm:$0xff]  }
0x206c   : > { %7107 = vrot.lane.b32.xlu0 %v12091_v44, %s10940_s12  ;;  %v7134_v63 = vpack.c.bf16 %v12091_v44, %v12086_v30  ;;  %v10603_v13 = vpop.eup %10602  ;;  %v10503_v30 = vld [vmem:[#allocation12 + $0x28] sm:$0xff]  }
0x206d   : > { %10608 = vrcp.f32 %v7029_v60  ;;  %v7030_v20 = vadd.f32 1.0, %v10603_v13 }
0x206f   : > { %v10605_v25 = vpop.eup %10604  ;;  %10610 = vrcp.f32 %v7030_v20 }
0x2070   : > { %v12098_v34 = vmul.f32 %v10605_v25, %v11934_v48  ;;  %10612 = vpow2.f32 %v8525_v6 }
0x2071   : > { %v10607_v38 = vpop.eup %10606  ;;  %10614 = vpow2.f32 %v8526_v35 }
0x2072   : > { %7113 = vrot.lane.b32.xlu1 %v12098_v34, %s10942_s26  ;;  %v12103_v41 = vmul.f32 %v10607_v38, %v11936_v22 }
0x2074   : > { %7115 = vrot.lane.b32.xlu0 %v12103_v41, %s10942_s26  ;;  %v7135_v31 = vpack.c.bf16 %v12103_v41, %v12098_v34 }
0x2077   : > { %v10609_v32 = vpop.eup %10608 }
0x2078   : > { %v12110_v37 = vmul.f32 %v10609_v32, %v11944_v19 }
0x2079   : > { %v10611_v10 = vpop.eup %10610 }
0x207a   : > { %7121 = vrot.lane.b32.xlu1 %v12110_v37, %s10941_s23  ;;  %v12115_v16 = vmul.f32 %v10611_v10, %v11946_v52  ;;  %v10613_v3 = vpop.eup %10612 }
0x207b   : > { %v10615_v27 = vpop.eup %10614  ;;  %v7023_v23 = vadd.f32 1.0, %v10613_v3 }
0x207c   : > { %7123 = vrot.lane.b32.xlu0 %v12115_v16, %s10941_s23  ;;  %v7136_v36 = vpack.c.bf16 %v12115_v16, %v12110_v37  ;;  %v7024_v28 = vadd.f32 1.0, %v10615_v27 }
0x207d   : > { %10616 = vrcp.f32 %v7023_v23 }
0x207e   : > { %10618 = vrcp.f32 %v7024_v28  ;;  %v10501_v28 = vld [vmem:[#allocation12 + $0x8] sm:$0xff]  }
0x2087   : > { %v10617_v24 = vpop.eup %10616 }
0x2088   : > { %v10619_v9 = vpop.eup %10618  ;;  %v7095_v56 = vmul.f32 %v10617_v24, %v11897_v14 }
0x2089   : > { %v7096_v45 = vmul.f32 %v10619_v9, %v11904_v5  ;;  %v10672_v5 = vld [vmem:[%s12296_s2] sm:$0xff]  }
0x20dc   : > { %v7106_v8 = vpop.permute.xlu1 %7105 }
0x20dd   : > { %v7127_v61 = vsel %vm709_vm2, %v7095_v56, %v7106_v8 }
0x20de   : > { %v7108_v42 = vpop.permute.xlu0 %7107 }
0x20df   : > { %v7128_v46 = vsel %vm709_vm2, %v7096_v45, %v7108_v42 }
0x20e4   : > { %v7114_v47 = vpop.permute.xlu1 %7113 }
0x20e5   : > { %v7129_v39 = vsel %vm3418_vm3, %v7127_v61, %v7114_v47  ;;  %v7133_v47 = vpack.c.bf16 %v7096_v45, %v7095_v56 }
0x20e6   : > { %v7116_v17 = vpop.permute.xlu0 %7115 }
0x20e7   : > { %v7130_v49 = vsel %vm3418_vm3, %v7128_v46, %v7116_v17  ;;  %v10502_v17 = vld [vmem:[#allocation12 + $0x20] sm:$0xff]  }
0x20ec   : > { %v7122_v11 = vpop.permute.xlu1 %7121 }
0x20ed   : > { %v12132_v51 = vsel %vm3421_vm4, %v7129_v39, %v7122_v11 }
0x20ee   : > { %v7124_v50 = vpop.permute.xlu0 %7123 }
0x20ef   : > { %v12135_v53 = vsel %vm3421_vm4, %v7130_v49, %v7124_v50 }
0x20f0   : > { %v12139_v14 = vpack.c.bf16 %v12135_v53, %v12132_v51 }
0x20f2   : > { %9230 = vmatpush3.bf16.msra.mxu0 %v12139_v14 }
0x20f3   : > { %9235 = vmatprep.subr.bf16.mxu0 %v10498_v54 }
0x20f5   : > { %9232 = vmatmul.mubr.msk.bf16.vlgmr.msra.gmra.mrb[88].mxu0 %vm599_vm1, %v10672_v5 }
0x20f6   : > { %9236 = vmatpush3.bf16.msra.mxu0 %v10498_v54 }
0x20f7   : > { %9237 = vmatprep.subr.bf16.mxu0 %v10499_v40 }
0x20fa   : > { %9238 = vmatpush3.bf16.msra.mxu0 %v10499_v40 }
0x20fb   : > { %9247 = vmatprep.subr.bf16.mxu0 %v10500_v57 }
0x21c8   : > { %v7176_v60 = vpop.f32.mrb[88].mxu0 }
0x21c9   : > { %v9233_v13 = vpop.f32.mrb[89].mxu0 }
0x21ca   : > { %v7179_v20 = vpop.f32.mrb[90].mxu0 }
0x21cb   : > { %v7203_v25 = vpack.c.bf16 %v7179_v20, %v7176_v60  ;;  %v10264_v38 = vpack.i.bf16 %v7179_v20, %v7176_v60  ;;  %v9234_v32 = vpop.f32.mrb[91].mxu0  ;;  %v10673_v20 = vld [vmem:[%s12296_s2 + $0x8] sm:$0xff]  }
0x21cd   : > { %10265 = vrot.lane.b32.xlu1 %v10264_v38, %s10941_s23  ;;  %10270 = vrot.lane.b32.xlu0 %v10264_v38, %s10942_s26 }
0x21ce   : > { %9239 = vmatprep.mubr.msk.bf16.mxu0 %vm709_vm2, %v7203_v25 }
0x21d1   : > { %10275 = vrot.lane.b32.xlu1 %v10264_v38, %s10940_s12  ;;  %v10505_v38 = vld [vmem:[#allocation12 + $0x38] sm:$0xff]  }
0x223f   : > { %v10266_v10 = vpop.permute.xlu1 %10265  ;;  %v10271_v0 = vpop.permute.xlu0 %10270 }
0x2240   : > { %v10268_v1 = vunpack.i.h.bf16 %v10266_v10  ;;  %v10267_v6 = vunpack.i.l.bf16 %v10266_v10  ;;  %v10273_v35 = vunpack.i.h.bf16 %v10271_v0  ;;  %v10272_v3 = vunpack.i.l.bf16 %v10271_v0 }
0x2242   : > { %v7204_v27 = vpack.c.bf16 %v10268_v1, %v10267_v6  ;;  %v7205_v23 = vpack.c.bf16 %v10273_v35, %v10272_v3 }
0x2243   : > { %v10276_v8 = vpop.permute.xlu1 %10275 }
0x2244   : > { %9240 = vmatmul.mubr.msk.bf16.vlgmr.msra.gmra.mrb[52].mxu0 %vm709_vm2, %v7204_v27  ;;  %v10278_v42 = vunpack.i.h.bf16 %v10276_v8  ;;  %v10277_v24 = vunpack.i.l.bf16 %v10276_v8 }
0x2245   : > { %9243 = vmatprep.mubr.msk.bf16.mxu0 %vm709_vm2, %v7205_v23  ;;  %9248 = vmatpush3.bf16.msra.mxu0 %v10500_v57 }
0x2246   : > { %9249 = vmatprep.subr.bf16.mxu0 %v10501_v28  ;;  %v7206_v9 = vpack.c.bf16 %v10278_v42, %v10277_v24 }
0x2249   : > { %9250 = vmatpush3.bf16.msra.mxu0 %v10501_v28 }
0x224a   : > { %9259 = vmatprep.subr.bf16.mxu0 %v10937_v2 }
0x224c   : > { %9244 = vmatmul.mubr.msk.bf16.gmra.mrb[56].mxu0 %vm709_vm2, %v7206_v9 }
0x224d   : > { %9251 = vmatprep.mubr.msk.bf16.mxu0 %vm709_vm2, %v7133_v47 }
0x2254   : > { %9252 = vmatmul.mubr.msk.bf16.vlgmr.msra.gmra.mrb[52].mxu0 %vm709_vm2, %v7134_v63 }
0x2255   : > { %9260 = vmatpush3.bf16.msra.mxu0 %v7203_v25  ;;  %9255 = vmatprep.mubr.msk.bf16.mxu0 %vm709_vm2, %v7135_v31  ;;  %v10504_v25 = vld [vmem:[#allocation12 + $0x30] sm:$0xff]  }
0x2256   : > { %9265 = vmatprep.subr.bf16.mxu0 %v10502_v17 }
0x225c   : > { %9256 = vmatmul.mubr.msk.bf16.gmra.mrb[56].mxu0 %vm709_vm2, %v7136_v36 }
0x225d   : > { %9261 = vmatprep.mubr.msk.bf16.mxu0 %vm10938_vm0, %v10937_v2 }
0x2264   : > { %9262 = vmatmul.mubr.msk.bf16.vlgmr.msra.gmra.mrb[92].mxu0 %vm599_vm1, %v10672_v5 }
0x2265   : > { %9266 = vmatpush3.bf16.msra.mxu0 %v10502_v17 }
0x2266   : > { %9267 = vmatprep.subr.bf16.mxu0 %v10503_v30 }
0x2269   : > { %9268 = vmatpush3.bf16.msra.mxu0 %v10503_v30 }
0x226a   : > { %9277 = vmatprep.subr.bf16.mxu0 %v10937_v2 }
0x2337   : > { %v7424_v44 = vpop.f32.mrb[92].mxu0 }
0x2338   : > { %v7431_v63 = vmul.f32 2.0, %v7424_v44  ;;  %v9263_v34 = vpop.f32.mrb[93].mxu0  ;;  %v10506_v44 = vld [vmem:[#allocation12 + $0x40] sm:$0xff]  }
0x2339   : > { %v7427_v41 = vpop.f32.mrb[94].mxu0 }
0x233a   : > { %v7432_v31 = vmul.f32 2.0, %v7427_v41  ;;  %v9264_v37 = vpop.f32.mrb[95].mxu0  ;;  %v7433_v16 = vsub.f32 %v7431_v63, %v12132_v51  ;;  %v10507_v63 = vld [vmem:[#allocation12 + $0x48] sm:$0xff]  }
0x233c   : > { %v7434_v36 = vsub.f32 %v7432_v31, %v12135_v53 }
0x233e   : > { %v10284_v56 = vpack.i.bf16 %v7434_v36, %v7433_v16  ;;  %v7455_v45 = vpack.c.bf16 %v7434_v36, %v7433_v16 }
0x2340   : > { %10285 = vrot.lane.b32.xlu1 %v10284_v56, %s10942_s26  ;;  %10280 = vrot.lane.b32.xlu0 %v10284_v56, %s10941_s23 }
0x2341   : > { %9269 = vmatprep.mubr.msk.bf16.mxu0 %vm709_vm2, %v7455_v45 }
0x2344   : > { %10290 = vrot.lane.b32.xlu0 %v10284_v56, %s10940_s12 }
0x23b2   : > { %v10286_v11 = vpop.permute.xlu1 %10285  ;;  %v10281_v61 = vpop.permute.xlu0 %10280 }
0x23b3   : > { %v10288_v46 = vunpack.i.h.bf16 %v10286_v11  ;;  %v10287_v39 = vunpack.i.l.bf16 %v10286_v11  ;;  %v10283_v49 = vunpack.i.h.bf16 %v10281_v61  ;;  %v10282_v50 = vunpack.i.l.bf16 %v10281_v61 }
0x23b5   : > { %v7457_v5 = vpack.c.bf16 %v10288_v46, %v10287_v39  ;;  %v7456_v54 = vpack.c.bf16 %v10283_v49, %v10282_v50 }
0x23b6   : > { %v10291_v40 = vpop.permute.xlu0 %10290 }
0x23b7   : > { %9270 = vmatmul.mubr.msk.bf16.vlgmr.msra.gmra.mrb[52].mxu0 %vm709_vm2, %v7456_v54  ;;  %v10293_v57 = vunpack.i.h.bf16 %v10291_v40  ;;  %v10292_v60 = vunpack.i.l.bf16 %v10291_v40 }
0x23b8   : > { %9278 = vmatpush3.bf16.msra.mxu0 %v12139_v14  ;;  %9273 = vmatprep.mubr.msk.bf16.mxu0 %vm709_vm2, %v7457_v5 }
0x23b9   : > { %v7458_v13 = vpack.c.bf16 %v10293_v57, %v10292_v60  ;;  %9283 = vmatprep.subr.bf16.mxu0 %v10504_v25 }
0x23bf   : > { %9274 = vmatmul.mubr.msk.bf16.gmra.mrb[56].mxu0 %vm709_vm2, %v7458_v13  ;;  %v6967_v13 = vrot.slane %v12060_v29, %v3255_v18 }
0x23c0   : > { %9279 = vmatprep.mubr.msk.bf16.mxu0 %vm10938_vm0, %v10937_v2 }
0x23c1   : > { %v6997_v18 = vadd.f32 %v6967_v13, %v12083_v26  ;;  %v6971_v26 = vrot.slane %v12060_v29, %v3259_v59 }
0x23c7   : > { %9280 = vmatmul.mubr.msk.bf16.vlgmr.msra.gmra.mrb[96].mxu0 %vm599_vm1, %v10673_v20 }
0x23c8   : > { %9284 = vmatpush3.bf16.msra.mxu0 %v10504_v25  ;;  %v6976_v25 = vadd.f32 %v6967_v13, %v12051_v43  ;;  %v6991_v43 = vadd.f32 %v6967_v13, %v12077_v12 }
0x23c9   : > { %9285 = vmatprep.subr.bf16.mxu0 %v10505_v38 }
0x23cc   : > { %9286 = vmatpush3.bf16.msra.mxu0 %v10505_v38  ;;  %v6985_v38 = vadd.f32 %v6967_v13, %v12071_v62 }
0x23cd   : > { %9295 = vmatprep.subr.bf16.mxu0 %v10937_v2 }
0x249a   : > { %v7595_v14 = vpop.f32.mrb[96].mxu0 }
0x249b   : > { %v9281_v32 = vpop.f32.mrb[97].mxu0 }
0x249c   : > { %v7598_v10 = vpop.f32.mrb[98].mxu0 }
0x249d   : > { %v10304_v0 = vpack.i.bf16 %v7598_v10, %v7595_v14  ;;  %v7622_v1 = vpack.c.bf16 %v7598_v10, %v7595_v14  ;;  %v9282_v6 = vpop.f32.mrb[99].mxu0  ;;  %v6979_v14 = vadd.f32 %v6967_v13, %v12055_v4  ;;  %v8533_v10 = vmul.f32 -1.442695, %v6976_v25 }
0x249e   : > { %v6994_v6 = vadd.f32 %v6967_v13, %v12080_v15  ;;  %v8538_v4 = vmul.f32 -1.442695, %v6991_v43 }
0x249f   : > { %10295 = vrot.lane.b32.xlu1 %v10304_v0, %s10941_s23  ;;  %10300 = vrot.lane.b32.xlu0 %v10304_v0, %s10942_s26 }
0x24a0   : > { %9287 = vmatprep.mubr.msk.bf16.mxu0 %vm709_vm2, %v7622_v1 }
0x24a3   : > { %10305 = vrot.lane.b32.xlu1 %v10304_v0, %s10940_s12  ;;  %v8536_v0 = vmul.f32 -1.442695, %v6985_v38 }
0x2511   : > { %v10296_v35 = vpop.permute.xlu1 %10295  ;;  %v10301_v3 = vpop.permute.xlu0 %10300 }
0x2512   : > { %v10298_v27 = vunpack.i.h.bf16 %v10296_v35  ;;  %v10297_v23 = vunpack.i.l.bf16 %v10296_v35  ;;  %v10303_v28 = vunpack.i.h.bf16 %v10301_v3  ;;  %v10302_v8 = vunpack.i.l.bf16 %v10301_v3 }
0x2513   : > { %v6988_v35 = vadd.f32 %v6967_v13, %v12074_v7  ;;  %v8540_v3 = vmul.f32 -1.442695, %v6997_v18 }
0x2514   : > { %v7623_v42 = vpack.c.bf16 %v10298_v27, %v10297_v23  ;;  %v7624_v24 = vpack.c.bf16 %v10303_v28, %v10302_v8 }
0x2515   : > { %v10306_v9 = vpop.permute.xlu1 %10305  ;;  %v8537_v62 = vmul.f32 -1.442695, %v6988_v35 }
0x2516   : > { %9288 = vmatmul.mubr.msk.bf16.vlgmr.msra.gmra.mrb[52].mxu0 %vm709_vm2, %v7623_v42  ;;  %v10308_v47 = vunpack.i.h.bf16 %v10306_v9  ;;  %v10307_v17 = vunpack.i.l.bf16 %v10306_v9 }
0x2517   : > { %9296 = vmatpush3.bf16.msra.mxu0 %v7622_v1  ;;  %9291 = vmatprep.mubr.msk.bf16.mxu0 %vm709_vm2, %v7624_v24  ;;  %v8534_v1 = vmul.f32 -1.442695, %v6979_v14  ;;  %v10674_v14 = vld [vmem:[%s11247_s10 + $0x10] sm:$0xff] }
0x2518   : > { %v7625_v30 = vpack.c.bf16 %v10308_v47, %v10307_v17  ;;  %9301 = vmatprep.subr.bf16.mxu0 %v10506_v44 }
0x251e   : > { %9292 = vmatmul.mubr.msk.bf16.gmra.mrb[56].mxu0 %vm709_vm2, %v7625_v30 }
0x251f   : > { %9297 = vmatprep.mubr.msk.bf16.mxu0 %vm10938_vm0, %v10937_v2 }
0x2526   : > { %9298 = vmatmul.mubr.msk.bf16.vlgmr.msra.gmra.mrb[100].mxu0 %vm599_vm1, %v10673_v20  ;;  %v6982_v20 = vadd.f32 %v6967_v13, %v12068_v58  ;;  %v8539_v58 = vmul.f32 -1.442695, %v6994_v6 }
0x2527   : > { %9302 = vmatpush3.bf16.msra.mxu0 %v10506_v44 }
0x2528   : > { %9303 = vmatprep.subr.bf16.mxu0 %v10507_v63  ;;  %v8535_v32 = vmul.f32 -1.442695, %v6982_v20 }
0x252a   : > { %10620 = vpow2.f32 %v8535_v32 }
0x252b   : > { %9304 = vmatpush3.bf16.msra.mxu0 %v10507_v63  ;;  %10622 = vpow2.f32 %v8533_v10 }
0x252c   : > { %10624 = vpow2.f32 %v8536_v0 }
0x252d   : > { %10626 = vpow2.f32 %v8534_v1 }
0x252e   : > { %10628 = vpow2.f32 %v8539_v58 }
0x252f   : > { %10630 = vpow2.f32 %v8537_v62  ;;  %v10675_v62 = vld [vmem:[%s11247_s10 + $0x18] sm:$0xff]  ;;  %s7993_s10 = sshll.u32 %s11780_s6, 4  ;;  %s12238_s10 = int_to_ptr.vmem [resolvable:$true] %s7993_s10 }
0x2530   : > { %10632 = vpow2.f32 %v8540_v3  ;;  %s10844_s25 = scalar_lea.vmem %s12238_s10, 512  ;;  %p10851_p13 = scmp.lt.s32.totalorder %s12238_s10, %s10849_s16 }
0x2531   : > { %10634 = vpow2.f32 %v8538_v4  ;;  %p10845_p3 = scmp.ne.s32.totalorder %s12238_s10, %s10844_s25  ;;  %p10852_p11 = scmp.lt.s32.totalorder %s10850_s24, %s10844_s25 }
0x2533   : > { %p10846_p6 = pnand %p10845_p3, %p12352_p2  ;;  %p10853_p5 = por %p10852_p11, %p10851_p13 }
0x2534   : > { %v10621_v27 = vpop.eup %10620 }
0x2535   : > { %v10623_v23 = vpop.eup %10622  ;;  %v7073_v8 = vadd.f32 1.0, %v10621_v27  ;;  %p10847_p12 = pneg %p10846_p6 }
0x2536   : > { %v10625_v15 = vpop.eup %10624  ;;  %v7071_v7 = vadd.f32 1.0, %v10623_v23 }
0x2537   : > { %v10627_v28 = vpop.eup %10626  ;;  %v7074_v42 = vadd.f32 1.0, %v10625_v15  ;;  %10636 = vrcp.f32 %v7073_v8  ;;  %p10854_p0 = pnand %p10853_p5, %p10847_p12 }
0x2538   : > { %v7072_v12 = vadd.f32 1.0, %v10627_v28  ;;  %v10629_v24 = vpop.eup %10628  ;;  %10638 = vrcp.f32 %v7071_v7 }
0x2539   : > { %v10631_v47 = vpop.eup %10630  ;;  %10640 = vrcp.f32 %v7074_v42 }
0x253a   : > { %v10633_v44 = vpop.eup %10632  ;;  %10642 = vrcp.f32 %v7072_v12 }
0x253b   : > { %v7078_v29 = vadd.f32 1.0, %v10633_v44 }
0x25f9   : > { %v7762_v34 = vpop.f32.mrb[100].mxu0 }
0x25fa   : > { %v7769_v41 = vmul.f32 2.0, %v7762_v34  ;;  %v9299_v31 = vpop.f32.mrb[101].mxu0 }
0x25fb   : > { %v7765_v37 = vpop.f32.mrb[102].mxu0  ;;  %v7077_v31 = vadd.f32 1.0, %v10629_v24 }
0x25fc   : > { %v7770_v16 = vmul.f32 2.0, %v7765_v37  ;;  %v9300_v36 = vpop.f32.mrb[103].mxu0  ;;  %v7771_v56 = vsub.f32 %v7769_v41, %v12132_v51  ;;  %v10635_v41 = vpop.eup %10634 }
0x25fd   : > { %v7076_v36 = vadd.f32 1.0, %v10635_v41 }
0x25fe   : > { %v7772_v45 = vsub.f32 %v7770_v16, %v12135_v53  ;;  %v7075_v16 = vadd.f32 1.0, %v10631_v47 }
0x2600   : > { %v10314_v11 = vpack.i.bf16 %v7772_v45, %v7771_v56  ;;  %v7793_v2 = vpack.c.bf16 %v7772_v45, %v7771_v56  ;;  %v10637_v45 = vpop.eup %10636 }
0x2601   : > { %v7917_v13 = vmul.f32 %v10637_v45, %v11920_v55 }
0x2602   : > { %10315 = vrot.lane.b32.xlu1 %v10314_v11, %s10942_s26  ;;  %10310 = vrot.lane.b32.xlu0 %v10314_v11, %s10941_s23 }
0x2603   : > { %9305 = vmatprep.mubr.msk.bf16.mxu0 %vm709_vm2, %v7793_v2 }
0x2606   : > { %10320 = vrot.lane.b32.xlu0 %v10314_v11, %s10940_s12 }
0x2674   : > { %v10316_v61 = vpop.permute.xlu1 %10315  ;;  %v10311_v46 = vpop.permute.xlu0 %10310 }
0x2675   : > { %v10318_v39 = vunpack.i.h.bf16 %v10316_v61  ;;  %v10317_v49 = vunpack.i.l.bf16 %v10316_v61  ;;  %v10313_v50 = vunpack.i.h.bf16 %v10311_v46  ;;  %v10312_v5 = vunpack.i.l.bf16 %v10311_v46  ;;  %v10639_v61 = vpop.eup %10638 }
0x2676   : > { %v7915_v32 = vmul.f32 %v10674_v14, %v10639_v61 }
0x2677   : > { %v7795_v54 = vpack.c.bf16 %v10318_v39, %v10317_v49  ;;  %v7794_v51 = vpack.c.bf16 %v10313_v50, %v10312_v5  ;;  %v10641_v49 = vpop.eup %10640 }
0x2678   : > { %v10321_v40 = vpop.permute.xlu0 %10320  ;;  %v7926_v25 = vsub.f32 1.0, %v10641_v49  ;;  %v7918_v35 = vmul.f32 %v10641_v49, %v11922_v33 }
0x2679   : > { %9306 = vmatmul.mubr.msk.bf16.vlgmr.msra.gmra.mrb[52].mxu0 %vm709_vm2, %v7794_v51  ;;  %v10323_v53 = vunpack.i.h.bf16 %v10321_v40  ;;  %v10322_v57 = vunpack.i.l.bf16 %v10321_v40  ;;  %v7925_v40 = vsub.f32 1.0, %v10637_v45 }
0x267a   : > { %9309 = vmatprep.mubr.msk.bf16.mxu0 %vm709_vm2, %v7795_v54  ;;  %v10643_v54 = vpop.eup %10642 }
0x267b   : > { %v7796_v60 = vpack.c.bf16 %v10323_v53, %v10322_v57  ;;  %v7923_v57 = vsub.f32 1.0, %v10639_v61  ;;  %v7924_v0 = vsub.f32 1.0, %v10643_v54  ;;  %v7916_v3 = vmul.f32 %v10675_v62, %v10643_v54 }
0x2681   : > { %9310 = vmatmul.mubr.msk.bf16.gmra.mrb[56].mxu0 %vm709_vm2, %v7796_v60 }
0x274c   : > { %v9307_v9 = vpop.f32.mrb[52].mxu0 }
0x274d   : > { %v9321_v17 = vadd.f32 %v9307_v9, %v6971_v26  ;;  %v7860_v30 = vpop.f32.mrb[53].mxu0 }
0x274e   : > { %v9322_v63 = vadd.f32 %v7860_v30, %v6971_v26  ;;  %v9308_v34 = vpop.f32.mrb[54].mxu0 }
0x274f   : > { %10644 = vtanh.f32 %v9321_v17  ;;  %v9323_v37 = vadd.f32 %v9308_v34, %v6971_v26  ;;  %v7863_v21 = vpop.f32.mrb[55].mxu0 }
0x2750   : > { %10646 = vtanh.f32 %v9322_v63  ;;  %v9324_v59 = vadd.f32 %v7863_v21, %v6971_v26 }
0x2751   : > { %10648 = vtanh.f32 %v9323_v37 }
0x2752   : > { %10650 = vtanh.f32 %v9324_v59 }
0x2753   : > { %10652 = vrcp.f32 %v7077_v31 }
0x2754   : > { %10654 = vrcp.f32 %v7075_v16  ;;  %v9311_v56 = vpop.f32.mrb[56].mxu0 }
0x2755   : > { %10656 = vrcp.f32 %v7078_v29  ;;  %v9325_v11 = vadd.f32 %v9311_v56, %v6971_v26  ;;  %v7876_v2 = vpop.f32.mrb[57].mxu0 }
0x2756   : > { %10658 = vrcp.f32 %v7076_v36  ;;  %v9326_v46 = vadd.f32 %v7876_v2, %v6971_v26  ;;  %v9312_v39 = vpop.f32.mrb[58].mxu0 }
0x2757   : > { %10660 = vtanh.f32 %v9325_v11  ;;  %v9327_v50 = vadd.f32 %v9312_v39, %v6971_v26  ;;  %v7879_v5 = vpop.f32.mrb[59].mxu0 }
0x2758   : > { %10662 = vtanh.f32 %v9326_v46  ;;  %v9328_v51 = vadd.f32 %v7879_v5, %v6971_v26 }
0x2759   : > { %v10645_v53 = vpop.eup %10644  ;;  %10664 = vtanh.f32 %v9327_v50 }
0x275a   : > { %v10647_v60 = vpop.eup %10646  ;;  %10666 = vtanh.f32 %v9328_v51  ;;  %v7933_v20 = vmul.f32 %v10645_v53, %v7925_v40 }
0x275b   : > { %v10649_v38 = vpop.eup %10648  ;;  %v7931_v10 = vmul.f32 %v10647_v60, %v7923_v57 }
0x275c   : > { %v10651_v1 = vpop.eup %10650  ;;  %v7941_v6 = vadd.f32 %v7933_v20, %v7917_v13  ;;  %v7934_v18 = vmul.f32 %v10649_v38, %v7926_v25 }
0x275d   : > { %v10653_v43 = vpop.eup %10652  ;;  %v7939_v58 = vadd.f32 %v7931_v10, %v7915_v32  ;;  %v7932_v4 = vmul.f32 %v10651_v1, %v7924_v0 }
0x275e   : > { %v10655_v27 = vpop.eup %10654  ;;  %7949 = vrot.lane.b32.xlu1 %v7941_v6, %s10940_s12  ;;  %v7942_v55 = vadd.f32 %v7934_v18, %v7918_v35  ;;  %v7929_v8 = vsub.f32 1.0, %v10653_v43  ;;  %v7921_v33 = vmul.f32 %v10653_v43, %v11944_v19 }
0x275f   : > { %v10657_v23 = vpop.eup %10656  ;;  %v7940_v15 = vadd.f32 %v7932_v4, %v7916_v3  ;;  %v7927_v42 = vsub.f32 1.0, %v10655_v27  ;;  %v7919_v47 = vmul.f32 %v10655_v27, %v11934_v48 }
0x2760   : > { %v10659_v28 = vpop.eup %10658  ;;  %7951 = vrot.lane.b32.xlu0 %v7942_v55, %s10940_s12  ;;  %v7930_v24 = vsub.f32 1.0, %v10657_v23  ;;  %v7922_v34 = vmul.f32 %v10657_v23, %v11946_v52  ;;  %s8578_s12 = sshll.u32 %s11028_s21, 7  ;;  %s7981_s21 = scalar_lea.sflag [#allocation5], %s11240_s30 }
0x2761   : > { %v10661_v7 = vpop.eup %10660  ;;  %v7928_v30 = vsub.f32 1.0, %v10659_v28  ;;  %v7920_v37 = vmul.f32 %v10659_v28, %v11936_v22  ;;  %s12246_s17 = scalar_lea.hbm %s12351_s15, %s8578_s12 }
0x2762   : > { %v10663_v26 = vpop.eup %10662  ;;  %v7937_v12 = vmul.f32 %v10661_v7, %v7929_v8 }
0x2763   : > { %v10665_v9 = vpop.eup %10664  ;;  %v7935_v17 = vmul.f32 %v10663_v26, %v7927_v42 }
0x2764   : > { %v10667_v44 = vpop.eup %10666  ;;  %v7945_v63 = vadd.f32 %v7937_v12, %v7921_v33  ;;  %v7938_v41 = vmul.f32 %v10665_v9, %v7930_v24 }
0x2765   : > { %v7943_v31 = vadd.f32 %v7935_v17, %v7919_v47  ;;  %v7936_v21 = vmul.f32 %v10667_v44, %v7928_v30 }
0x2766   : > { %v7946_v16 = vadd.f32 %v7938_v41, %v7922_v34 }
0x2767   : > { %7957 = vrot.lane.b32.xlu1 %v7943_v31, %s10942_s26  ;;  %v7944_v19 = vadd.f32 %v7936_v21, %v7920_v37 }
0x2769   : > { %7959 = vrot.lane.b32.xlu0 %v7944_v19, %s10942_s26 }
0x276b   : > { %7965 = vrot.lane.b32.xlu1 %v7945_v63, %s10941_s23 }
0x276d   : > { %7967 = vrot.lane.b32.xlu0 %v7946_v16, %s10941_s23 }
0x27d0   : > { %v7950_v48 = vpop.permute.xlu1 %7949 }
0x27d1   : > { %v7971_v22 = vsel %vm709_vm2, %v7939_v58, %v7950_v48 }
0x27d2   : > { %v7952_v59 = vpop.permute.xlu0 %7951 }
0x27d3   : > { %v7972_v45 = vsel %vm709_vm2, %v7940_v15, %v7952_v59 }
0x27d9   : > { %v7958_v52 = vpop.permute.xlu1 %7957 }
0x27da   : > { %v7973_v36 = vsel %vm3418_vm3, %v7971_v22, %v7958_v52 }
0x27db   : > { %v7960_v29 = vpop.permute.xlu0 %7959 }
0x27dc   : > { %v7974_v2 = vsel %vm3418_vm3, %v7972_v45, %v7960_v29 }
0x27dd   : > { %v7966_v56 = vpop.permute.xlu1 %7965 }
0x27de   : > { %v7975_v11 = vsel %vm3421_vm4, %v7973_v36, %v7966_v56 }
0x27df   : > { %8575 = vst [vmem:[%s11780_s6 + $0x10] sm:$0xff] %v7975_v11  ;;  %v7968_v61 = vpop.permute.xlu0 %7967 }
0x27e0   : > { %v7976_v46 = vsel %vm3421_vm4, %v7974_v2, %v7968_v61 }
0x27e1   : > { %8576 = vst [vmem:[%s11780_s6 + $0x18] sm:$0xff] %v7976_v46 }
0x27e2   : > { %10857 = shalt.err (!%p10854_p0)
}
0x27e3   : > { %s10858_s6 = scalar_lea.hbm %s12246_s17, 512  ;;  %s10862_s3 = scalar_lea.hbm %s12351_s15, 1024 }
0x27e4   : > { %p10859_p7 = scmp.ne.s32.totalorder %s12246_s17, %s10858_s6  ;;  %p10863_p10 = scmp.lt.u32.totalorder %s12246_s17, %s12351_s15 }
0x27e5   : > { %p10864_p1 = scmp.lt.u32.totalorder %s10862_s3, %s10858_s6  ;;  %p10866_p6 = scmp.lt.u32.totalorder %s10858_s6, %s12246_s17 }
0x27e6   : > { %p10860_p8 = pnand %p10859_p7, %p12352_p2 }
0x27e7   : > { %p10865_p3 = por %p10864_p1, %p10863_p10 }
0x27e8   : > { %p10861_p9 = pneg %p10860_p8 }
0x27e9   : > { %p10867_p12 = por %p10866_p6, %p10865_p3 }
0x27eb   : > { %p10868_p13 = pnand %p10867_p12, %p10861_p9 }
0x27ed   : > { %10871 = shalt.err (!%p10868_p13)
}
0x27ee   : > { %s10944_s5 = smov 128   ;;  %s10945_s12 = smov 256  }
0x27ef   : > { %s10946_s23 = smov 8  }
0x27f0   : > { %9863 = dma.vmem_to_hbm [thread:$0]  (%p12352_p2), %s12238_s10, 512, %s12246_s17, %s7981_s21, %s10944_s5, %s10945_s12, %s10946_s23  }
0x27f1 PF: > { %s12353_s26 = sld [smem:[#allocation20_spill]]  ;;  %s12354_s25 = sld [smem:[#allocation24_spill]] }
0x27f7   : > { %s8008_s13 = sand.u32 1, %s12353_s26   ;;  %p12355_p11 = scmp.ne.s32.totalorder %s12354_s25, 0 }
0x27f8   : > { %s8009_s16 = scalar_lea.sflag [#allocation5], %s8008_s13 }
0x27f9   : > { %p9882_p5 = pnand %p8139_p4, %p12355_p11 }
0x27fb   : > { %10905 = dma.done.wait (!%p9882_p5), %s8009_s16, 512  }
0x27fc   : > { %10907 = vsyncadd (!%p9882_p5), %s8009_s16, 4294966784  ;;  %s12356_s20 = sld [smem:[#allocation21_spill]]  ;;  %s12357_s24 = sld [smem:[#allocation22_spill]] }
0x27fd   : > { %s12358_s17 = smov %s10914_s18  ;;  %s12359_s18 = smov %s10918_s19 }
0x2802   : > { %p27_p0 = scmp.ge.s32.totalorder %s12356_s20, 4   ;;  %s12360_s19 = smov %s12357_s24 }
0x2804   :  { %29 = sbr.rel (!%p27_p0) target bundleno = 14 (0xe), region = 202 }
0x280b   :  { %8014 = vsyncpa [#allocation4], 1 }
0x280c   :  { %8016 = vsyncpa [#allocation4 + $0x1], 1 }
0x280d   :  { %8017 = vsyncpa [#allocation7], 1 }
0x280e   :  { %8018 = vsyncpa [#allocation10], 1 }
0x280f   :  { %8019 = vsyncpa [#allocation13], 1 }
0x2810   :  { %8020 = vsyncpa [#allocation5], 1 }
0x2811   :  { %8022 = vsyncpa [#allocation5 + $0x1], 1 }

</bundles_post_ra>
